<compile_context>
chip_gen: v5e
topology: v5e:2x2
jax: 0.10.0
libtpu: 0.0.40
codegen_flags: <defaults>
</compile_context>

<pallas_src>
import math

import jax
import jax.numpy as jnp
from jax.experimental import pallas as pl
from jax.experimental.pallas import tpu as pltpu

# ----------------------------- model config ---------------------------------
B = 2          # batch
C = 4          # channels
H = 16         # height
W = 16         # width
PATCH = 4      # patch size
N = (H // PATCH) * (W // PATCH)      # 16 tokens per image
P = C * PATCH * PATCH                # 64 pixels per patch
D = 32         # embedding dim
NH = 4         # attention heads
DH = D // NH   # head dim = 8
MLP_H = 64     # transformer MLP hidden
DEC_H = 64     # decoder hidden
DEPTH = 2      # transformer blocks
LN_EPS = 1e-5
BN = B * N     # 32 -- batch folded into the token/sublane axis
NEG_INF = -1e30
LANES = 128    # lane width of all packed slabs / of the output

assert (N & (N - 1)) == 0, "mask generation assumes N is a power of two"
LOG2_N = N.bit_length() - 1

# -------- row layout of the packed weight slab (bf16, [WR_TOTAL, 128]) -------
WR_PE = 0                              # pe_w            [P, D]
WR_BLK = P                             # per-layer block start
WR_PER_BLK = 3 * D + MLP_H             # qkv(32)+o(32)+mlp1(32)+mlp2(64) rows
WR_DEC = WR_BLK + DEPTH * WR_PER_BLK   # decoder w1 [D,DEC_H], w2 [DEC_H,128]
WR_TOTAL = WR_DEC + D + DEC_H          # 480

# -------- row layout of the packed vector slab (f32, [VR_TOTAL, 128]) --------
VR_PER_BLK = 8                         # ln1_g, ln1_b, b_qkv, b_o, ln2_g, ln2_b, b_mlp1, b_mlp2
VR_DEC = DEPTH * VR_PER_BLK            # decoder b1, b2
VR_POS = ((VR_DEC + 2 + 7) // 8) * 8   # pos(+pe_b) block, sublane-aligned
VR_TOTAL = VR_POS + BN                 # 56


# ----------------------------- in-kernel helpers -----------------------------
def _layer_norm(v, g, b):
    m = jnp.mean(v, axis=-1, keepdims=True)
    c = v - m
    var = jnp.mean(c * c, axis=-1, keepdims=True)
    return c * jax.lax.rsqrt(var + LN_EPS) * g + b


def _gelu(x):
    # tanh approximation of GELU (torch nn.GELU default is exact erf; ~1e-3 off).
    # TODO(synk): switch to exact erf GELU if Mosaic erf lowering is required.
    c = math.sqrt(2.0 / math.pi)
    return 0.5 * x * (1.0 + jnp.tanh(c * (x + 0.044715 * x * x * x)))


# ----------------------------- fused kernel ----------------------------------
def _fused_vit_ae_kernel(patches_ref, wrow_ref, vec_ref, out_ref,
                         qa_ref, ka_ref, va_ref, oa_ref):
    f32 = jnp.float32
    bf16 = jnp.bfloat16

    # Block-diagonal additive mask over the (head, batch)-stacked token axis.
    # Row i of the stacked [NH*BN, DH] q/k/v is (head = i // BN, token = i % BN);
    # "same head AND same batch" collapses to i // N == j // N for this layout.
    # Built in-kernel from iota (VPU ops) -> no DMA / VMEM buffer spent on it.
    ri = jax.lax.broadcasted_iota(jnp.int32, (NH * BN, NH * BN), 0)
    ci = jax.lax.broadcasted_iota(jnp.int32, (NH * BN, NH * BN), 1)
    attn_bias = jnp.where((ri >> LOG2_N) == (ci >> LOG2_N),
                          0.0, NEG_INF).astype(f32)

    # ---- patch embedding + positional embedding (pe_b folded into pos) ----
    pe_w = wrow_ref[WR_PE:WR_PE + P, 0:D]                        # [P, D] bf16
    pos = vec_ref[VR_POS:VR_POS + BN, 0:D]                       # [BN, D] f32
    x = jnp.dot(patches_ref[...].astype(bf16), pe_w,
                preferred_element_type=f32) + pos                # [BN, D] f32

    scale = 1.0 / math.sqrt(DH)

    for l in range(DEPTH):                                       # static unroll
        wb = WR_BLK + l * WR_PER_BLK
        vb = l * VR_PER_BLK

        # ---------------- multi-head self-attention ----------------
        h = _layer_norm(x, vec_ref[vb + 0:vb + 1, 0:D],
                        vec_ref[vb + 1:vb + 2, 0:D])
        # fused qkv projection: ONE [BN,D]@[D,3D] MXU op per layer
        qkv = (jnp.dot(h.astype(bf16), wrow_ref[wb:wb + D, 0:3 * D],
                       preferred_element_type=f32)
               + vec_ref[vb + 2:vb + 3, 0:3 * D])                # [BN, 3D]
        # sublane-stack the NH heads -> [NH*BN, DH] scratch; stores use the
        # vst slot (slack) and replace 8 tiny per-head matmuls with 2 dense ones.
        for hh in range(NH):
            r0 = hh * BN
            qa_ref[r0:r0 + BN, :] = qkv[:, hh * DH:(hh + 1) * DH]
            ka_ref[r0:r0 + BN, :] = qkv[:, D + hh * DH:D + (hh + 1) * DH]
            va_ref[r0:r0 + BN, :] = qkv[:, 2 * D + hh * DH:2 * D + (hh + 1) * DH]
        s = jax.lax.dot_general(qa_ref[...].astype(bf16),
                                ka_ref[...].astype(bf16),
                                (((1,), (1,)), ((), ())),
                                preferred_element_type=f32)      # [NH*BN, NH*BN]
        s = s * scale + attn_bias
        s = s - jnp.max(s, axis=-1, keepdims=True)
        e = jnp.exp(s)
        p = e * pl.reciprocal(jnp.sum(e, axis=-1, keepdims=True), approx=True)
        o_all = jnp.dot(p.astype(bf16), va_ref[...].astype(bf16),
                        preferred_element_type=f32)              # [NH*BN, DH]
        # un-stack heads back onto lanes -> [BN, D], then ONE unsplit w_o matmul
        for hh in range(NH):
            oa_ref[:, hh * DH:(hh + 1) * DH] = o_all[hh * BN:(hh + 1) * BN, :]
        attn = (jnp.dot(oa_ref[...].astype(bf16),
                        wrow_ref[wb + D:wb + 2 * D, 0:D],
                        preferred_element_type=f32)
                + vec_ref[vb + 3:vb + 4, 0:D])
        x = x + attn

        # ---------------- MLP ----------------
        h2 = _layer_norm(x, vec_ref[vb + 4:vb + 5, 0:D],
                         vec_ref[vb + 5:vb + 6, 0:D])
        m = (jnp.dot(h2.astype(bf16), wrow_ref[wb + 2 * D:wb + 3 * D, 0:MLP_H],
                     preferred_element_type=f32)
             + vec_ref[vb + 6:vb + 7, 0:MLP_H])
        m = _gelu(m)
        m = (jnp.dot(m.astype(bf16),
                     wrow_ref[wb + 3 * D:wb + 3 * D + MLP_H, 0:D],
                     preferred_element_type=f32)
             + vec_ref[vb + 7:vb + 8, 0:D])
        x = x + m

    # ---- decoder: per-token 2-layer MLP [BN, D] -> [BN, 128] (lane-dense) ----
    hd = (jnp.dot(x.astype(bf16), wrow_ref[WR_DEC:WR_DEC + D, 0:DEC_H],
                  preferred_element_type=f32)
          + vec_ref[VR_DEC:VR_DEC + 1, 0:DEC_H])
    hd = jnp.maximum(hd, 0.0)                                    # ReLU
    # w2/b2 are zero-padded to 128 lanes -> full-width unmasked output store;
    # lanes P:128 are exactly zero and get sliced off in the wrapper.
    out_ref[...] = (jnp.dot(hd.astype(bf16),
                            wrow_ref[WR_DEC + D:WR_DEC + D + DEC_H, :],
                            preferred_element_type=f32)
                    + vec_ref[VR_DEC + 1:VR_DEC + 2, :])


# ----------------------------- pallas_call wrapper ----------------------------
def _full_spec(a):
    zeros = (0,) * a.ndim
    return pl.BlockSpec(a.shape, lambda i, z=zeros: z)


@jax.jit
def vit_autoencoder_forward(x, prep):
    wrow, vecs = prep
    patches = _patchify(x).reshape(BN, P)
    args = (patches, wrow, vecs)
    # Single fused kernel, grid=(1,): one launch, 3 input DMAs + 1 lane-dense
    # output DMA; all weights + activations live in VMEM for the whole call.
    # TODO(synk): pipeline_mode=pl.Buffered(1) on the in_specs would drop the
    # (useless at grid=(1,)) double-buffer; left at default for compile safety.
    # NOTE: on v7x (2 TensorCores) a grid=(B,) "parallel" batch split could use
    # the second core; kept grid=(1,) since v5e/v6e are single-TC and the
    # difference is sub-microsecond for this launch-bound kernel.
    out = pl.pallas_call(
        _fused_vit_ae_kernel,
        out_shape=jax.ShapeDtypeStruct((BN, LANES), jnp.float32),
        grid=(1,),
        in_specs=[_full_spec(a) for a in args],
        out_specs=pl.BlockSpec((BN, LANES), lambda i: (0, 0)),
        scratch_shapes=[
            pltpu.VMEM((NH * BN, DH), jnp.float32),   # stacked q  [128, 8]
            pltpu.VMEM((NH * BN, DH), jnp.float32),   # stacked k  [128, 8]
            pltpu.VMEM((NH * BN, DH), jnp.float32),   # stacked v  [128, 8]
            pltpu.VMEM((BN, D), jnp.float32),         # head-concat buffer
        ],
        compiler_params=pltpu.CompilerParams(
            dimension_semantics=("arbitrary",)),
    )(*args)
    return _unpatchify(out[:, :P].reshape(B, N, P))


# ----------------------------- glue (plain JAX) ------------------------------
def _patchify(x):
    # x: [B, C, H, W] -> [B, N, C*PATCH*PATCH]  (matches conv k=stride=PATCH)
    b = x.shape[0]
    x = x.reshape(b, C, H // PATCH, PATCH, W // PATCH, PATCH)
    x = x.transpose(0, 2, 4, 1, 3, 5)
    return x.reshape(b, N, P)


def _unpatchify(p):
    # p: [B, N, P] -> [B, C, H, W]
    b = p.shape[0]
    x = p.reshape(b, H // PATCH, W // PATCH, C, PATCH, PATCH)
    x = x.transpose(0, 3, 1, 4, 2, 5)
    return x.reshape(b, C, H, W)


def prepare_params(params):
    """One-time layout prep (pure JAX, run once outside jit):
      * wrow: every weight matrix zero-padded to 128 lanes, row-stacked, bf16.
      * vecs: every LN/bias vector as a zero-padded 128-lane row, plus the
        batch-tiled positional embedding with pe_b folded in, f32."""
    f32 = jnp.float32

    def pad_cols(a, width=LANES):
        return jnp.pad(a, ((0, 0), (0, width - a.shape[-1])))

    dec = params["dec"]

    # ---- row-stacked weight slab (bf16 MXU operands) ----
    wrows = [pad_cols(params["pe_w"])]                           # [P, 128]
    for blk in params["blocks"]:
        wrows += [pad_cols(blk["w_qkv"]), pad_cols(blk["w_o"]),
                  pad_cols(blk["w_mlp1"]), pad_cols(blk["w_mlp2"])]
    wrows += [pad_cols(dec["w1"]), pad_cols(dec["w2"])]          # w2 -> [DEC_H,128]
    wrow = jnp.concatenate(wrows, axis=0).astype(jnp.bfloat16)
    assert wrow.shape == (WR_TOTAL, LANES), wrow.shape

    # ---- vector slab (f32 elementwise operands) ----
    vrows = []
    for blk in params["blocks"]:
        vrows += [pad_cols(blk[k]) for k in
                  ("ln1_g", "ln1_b", "b_qkv", "b_o",
                   "ln2_g", "ln2_b", "b_mlp1", "b_mlp2")]
    vrows += [pad_cols(dec["b1"]), pad_cols(dec["b2"])]          # b2 -> [1,128]
    vrows.append(jnp.zeros((VR_POS - (VR_DEC + 2), LANES), f32))
    posb = jnp.tile(params["pos"] + params["pe_b"], (B, 1))      # [BN, D], pe_b folded
    vrows.append(pad_cols(posb))
    vecs = jnp.concatenate(vrows, axis=0).astype(f32)
    assert vecs.shape == (VR_TOTAL, LANES), vecs.shape

    return (wrow, vecs)


# ----------------------------- parameter init --------------------------------
def init_params(key):
    ks = iter(jax.random.split(key, 64))
    f32 = jnp.float32

    def nrm(shape, scale=0.02):
        return (scale * jax.random.normal(next(ks), shape)).astype(f32)

    params = {
        "pe_w": nrm((P, D)),
        "pe_b": jnp.zeros((1, D), f32),
        "pos": nrm((N, D)),
        "blocks": [],
        "dec": {
            "w1": nrm((D, DEC_H)),
            "b1": jnp.zeros((1, DEC_H), f32),
            "w2": nrm((DEC_H, P)),
            "b2": jnp.zeros((1, P), f32),
        },
    }
    for _ in range(DEPTH):
        params["blocks"].append({
            "ln1_g": jnp.ones((1, D), f32),
            "ln1_b": jnp.zeros((1, D), f32),
            "w_qkv": nrm((D, 3 * D)),
            "b_qkv": jnp.zeros((1, 3 * D), f32),
            "w_o": nrm((D, D)),
            "b_o": jnp.zeros((1, D), f32),
            "ln2_g": jnp.ones((1, D), f32),
            "ln2_b": jnp.zeros((1, D), f32),
            "w_mlp1": nrm((D, MLP_H)),
            "b_mlp1": jnp.zeros((1, MLP_H), f32),
            "w_mlp2": nrm((MLP_H, D)),
            "b_mlp2": jnp.zeros((1, D), f32),
        })
    return params


# ----------------------------- main -------------------------------------------
if __name__ == "__main__":
    key = jax.random.PRNGKey(0)
    k_x, k_p = jax.random.split(key)
    x = jax.random.normal(k_x, (B, C, H, W), dtype=jnp.float32)
    params = init_params(k_p)
    prep = prepare_params(params)          # one-time layout prep (outside jit)

    out = vit_autoencoder_forward(x, prep)
    out = jax.block_until_ready(out)

    assert out.shape == (B, C, H, W), out.shape
    assert out.dtype == jnp.float32
    assert bool(jnp.all(jnp.isfinite(out)))
    print("KERNEL_OK")
</pallas_src>

<mosaic_0001>
module attributes {stable_mosaic.version = 11 : i64} {
  func.func @_fused_vit_ae_kernel(%arg0: i32, %arg1: memref<32x64xf32, #tpu.memory_space<vmem>>, %arg2: memref<480x128xbf16, #tpu.memory_space<vmem>>, %arg3: memref<56x128xf32, #tpu.memory_space<vmem>>, %arg4: memref<32x128xf32, #tpu.memory_space<vmem>>, %arg5: memref<128x8xf32, #tpu.memory_space<vmem>>, %arg6: memref<128x8xf32, #tpu.memory_space<vmem>>, %arg7: memref<128x8xf32, #tpu.memory_space<vmem>>, %arg8: memref<32x32xf32, #tpu.memory_space<vmem>>) attributes {dimension_semantics = [#tpu.dimension_semantics<arbitrary>], iteration_bounds = array<i64: 1>, scalar_prefetch = 0 : i64, scratch_operands = 4 : i64, tpu.core_type = #tpu.core_type<tc>, window_params = [{pipeline_mode = #tpu.pipeline_mode<synchronous>, transform_indices = @transform_0, window_bounds = array<i64: 32, 64>}, {pipeline_mode = #tpu.pipeline_mode<synchronous>, transform_indices = @transform_1, window_bounds = array<i64: 480, 128>}, {pipeline_mode = #tpu.pipeline_mode<synchronous>, transform_indices = @transform_2, window_bounds = array<i64: 56, 128>}, {pipeline_mode = #tpu.pipeline_mode<synchronous>, transform_indices = @transform_3, window_bounds = array<i64: 32, 128>}]} {
    %0 = tpu.iota {dimensions = array<i32: 0>} : vector<128x128xi32>
    %1 = tpu.iota {dimensions = array<i32: 1>} : vector<128x128xi32>
    %c4_i32 = arith.constant 4 : i32
    %2 = vector.broadcast %c4_i32 : i32 to vector<128x128xi32>
    %3 = arith.shrsi %0, %2 : vector<128x128xi32>
    %c4_i32_0 = arith.constant 4 : i32
    %4 = vector.broadcast %c4_i32_0 : i32 to vector<128x128xi32>
    %5 = arith.shrsi %1, %4 : vector<128x128xi32>
    %6 = arith.cmpi eq, %3, %5 : vector<128x128xi32>
    %cst = arith.constant 0.000000e+00 : f32
    %cst_1 = arith.constant -1.000000e+30 : f32
    %7 = vector.broadcast %cst : f32 to vector<128x128xf32>
    %8 = vector.broadcast %cst_1 : f32 to vector<128x128xf32>
    %9 = arith.select %6, %7, %8 : vector<128x128xi1>, vector<128x128xf32>
    %c0 = arith.constant 0 : index
    %c0_2 = arith.constant 0 : index
    %10 = vector.load %arg2[%c0, %c0_2] : memref<480x128xbf16, #tpu.memory_space<vmem>>, vector<64x32xbf16>
    %c24 = arith.constant 24 : index
    %c0_3 = arith.constant 0 : index
    %11 = vector.load %arg3[%c24, %c0_3] : memref<56x128xf32, #tpu.memory_space<vmem>>, vector<32x32xf32>
    %c0_4 = arith.constant 0 : index
    %c0_5 = arith.constant 0 : index
    %12 = vector.load %arg1[%c0_4, %c0_5] : memref<32x64xf32, #tpu.memory_space<vmem>>, vector<32x64xf32>
    %13 = arith.truncf %12 : vector<32x64xf32> to vector<32x64xbf16>
    %cst_6 = arith.constant dense<0.000000e+00> : vector<32x32xf32>
    %14 = tpu.matmul %13, %10, %cst_6 {dimension_numbers = #tpu.dot_dimension_numbers<[1], [0], [0], [1], [0, 0, 1, 1], [], []>} : vector<32x64xbf16>, vector<64x32xbf16>, vector<32x32xf32> -> vector<32x32xf32>
    %15 = arith.addf %14, %11 : vector<32x32xf32>
    %c0_7 = arith.constant 0 : index
    %c0_8 = arith.constant 0 : index
    %16 = vector.load %arg3[%c0_7, %c0_8] : memref<56x128xf32, #tpu.memory_space<vmem>>, vector<1x32xf32>
    %c1 = arith.constant 1 : index
    %c0_9 = arith.constant 0 : index
    %17 = vector.load %arg3[%c1, %c0_9] : memref<56x128xf32, #tpu.memory_space<vmem>>, vector<1x32xf32>
    %cst_10 = arith.constant dense<0.000000e+00> : vector<32xf32>
    %18 = vector.multi_reduction <add>, %15, %cst_10 [1] : vector<32x32xf32> to vector<32xf32>
    %19 = vector.shape_cast %18 : vector<32xf32> to vector<32x1xf32>
    %cst_11 = arith.constant 3.200000e+01 : f32
    %20 = vector.broadcast %cst_11 : f32 to vector<32x1xf32>
    %21 = arith.divf %19, %20 : vector<32x1xf32>
    %22 = vector.broadcast %21 : vector<32x1xf32> to vector<32x32xf32>
    %23 = arith.subf %15, %22 : vector<32x32xf32>
    %24 = arith.mulf %23, %23 : vector<32x32xf32>
    %cst_12 = arith.constant dense<0.000000e+00> : vector<32xf32>
    %25 = vector.multi_reduction <add>, %24, %cst_12 [1] : vector<32x32xf32> to vector<32xf32>
    %26 = vector.shape_cast %25 : vector<32xf32> to vector<32x1xf32>
    %cst_13 = arith.constant 3.200000e+01 : f32
    %27 = vector.broadcast %cst_13 : f32 to vector<32x1xf32>
    %28 = arith.divf %26, %27 : vector<32x1xf32>
    %cst_14 = arith.constant 9.99999974E-6 : f32
    %29 = vector.broadcast %cst_14 : f32 to vector<32x1xf32>
    %30 = arith.addf %28, %29 : vector<32x1xf32>
    %31 = math.rsqrt %30 : vector<32x1xf32>
    %32 = vector.broadcast %31 : vector<32x1xf32> to vector<32x32xf32>
    %33 = arith.mulf %23, %32 : vector<32x32xf32>
    %34 = vector.broadcast %16 : vector<1x32xf32> to vector<32x32xf32>
    %35 = arith.mulf %33, %34 : vector<32x32xf32>
    %36 = vector.broadcast %17 : vector<1x32xf32> to vector<32x32xf32>
    %37 = arith.addf %35, %36 : vector<32x32xf32>
    %38 = arith.truncf %37 : vector<32x32xf32> to vector<32x32xbf16>
    %c64 = arith.constant 64 : index
    %c0_15 = arith.constant 0 : index
    %39 = vector.load %arg2[%c64, %c0_15] : memref<480x128xbf16, #tpu.memory_space<vmem>>, vector<32x96xbf16>
    %cst_16 = arith.constant dense<0.000000e+00> : vector<32x96xf32>
    %40 = tpu.matmul %38, %39, %cst_16 {dimension_numbers = #tpu.dot_dimension_numbers<[1], [0], [0], [1], [0, 0, 1, 1], [], []>} : vector<32x32xbf16>, vector<32x96xbf16>, vector<32x96xf32> -> vector<32x96xf32>
    %c2 = arith.constant 2 : index
    %c0_17 = arith.constant 0 : index
    %41 = vector.load %arg3[%c2, %c0_17] : memref<56x128xf32, #tpu.memory_space<vmem>>, vector<1x96xf32>
    %42 = vector.broadcast %41 : vector<1x96xf32> to vector<32x96xf32>
    %43 = arith.addf %40, %42 : vector<32x96xf32>
    %44 = vector.extract_strided_slice %43 {offsets = [0, 0], sizes = [32, 8], strides = [1, 1]} : vector<32x96xf32> to vector<32x8xf32>
    %c0_18 = arith.constant 0 : index
    %c0_19 = arith.constant 0 : index
    %45 = vector.load %arg5[%c0_18, %c0_19] : memref<128x8xf32, #tpu.memory_space<vmem>>, vector<32x8xf32>
    tpu.vector_store %arg5[%c0_18, %c0_19], %44 {strides = array<i32>} : memref<128x8xf32, #tpu.memory_space<vmem>>, vector<32x8xf32>,
    %46 = vector.extract_strided_slice %43 {offsets = [0, 32], sizes = [32, 8], strides = [1, 1]} : vector<32x96xf32> to vector<32x8xf32>
    %c0_20 = arith.constant 0 : index
    %c0_21 = arith.constant 0 : index
    %47 = vector.load %arg6[%c0_20, %c0_21] : memref<128x8xf32, #tpu.memory_space<vmem>>, vector<32x8xf32>
    tpu.vector_store %arg6[%c0_20, %c0_21], %46 {strides = array<i32>} : memref<128x8xf32, #tpu.memory_space<vmem>>, vector<32x8xf32>,
    %48 = vector.extract_strided_slice %43 {offsets = [0, 64], sizes = [32, 8], strides = [1, 1]} : vector<32x96xf32> to vector<32x8xf32>
    %c0_22 = arith.constant 0 : index
    %c0_23 = arith.constant 0 : index
    %49 = vector.load %arg7[%c0_22, %c0_23] : memref<128x8xf32, #tpu.memory_space<vmem>>, vector<32x8xf32>
    tpu.vector_store %arg7[%c0_22, %c0_23], %48 {strides = array<i32>} : memref<128x8xf32, #tpu.memory_space<vmem>>, vector<32x8xf32>,
    %50 = vector.extract_strided_slice %43 {offsets = [0, 8], sizes = [32, 8], strides = [1, 1]} : vector<32x96xf32> to vector<32x8xf32>
    %c32 = arith.constant 32 : index
    %c0_24 = arith.constant 0 : index
    %51 = vector.load %arg5[%c32, %c0_24] : memref<128x8xf32, #tpu.memory_space<vmem>>, vector<32x8xf32>
    tpu.vector_store %arg5[%c32, %c0_24], %50 {strides = array<i32>} : memref<128x8xf32, #tpu.memory_space<vmem>>, vector<32x8xf32>,
    %52 = vector.extract_strided_slice %43 {offsets = [0, 40], sizes = [32, 8], strides = [1, 1]} : vector<32x96xf32> to vector<32x8xf32>
    %c32_25 = arith.constant 32 : index
    %c0_26 = arith.constant 0 : index
    %53 = vector.load %arg6[%c32_25, %c0_26] : memref<128x8xf32, #tpu.memory_space<vmem>>, vector<32x8xf32>
    tpu.vector_store %arg6[%c32_25, %c0_26], %52 {strides = array<i32>} : memref<128x8xf32, #tpu.memory_space<vmem>>, vector<32x8xf32>,
    %54 = vector.extract_strided_slice %43 {offsets = [0, 72], sizes = [32, 8], strides = [1, 1]} : vector<32x96xf32> to vector<32x8xf32>
    %c32_27 = arith.constant 32 : index
    %c0_28 = arith.constant 0 : index
    %55 = vector.load %arg7[%c32_27, %c0_28] : memref<128x8xf32, #tpu.memory_space<vmem>>, vector<32x8xf32>
    tpu.vector_store %arg7[%c32_27, %c0_28], %54 {strides = array<i32>} : memref<128x8xf32, #tpu.memory_space<vmem>>, vector<32x8xf32>,
    %56 = vector.extract_strided_slice %43 {offsets = [0, 16], sizes = [32, 8], strides = [1, 1]} : vector<32x96xf32> to vector<32x8xf32>
    %c64_29 = arith.constant 64 : index
    %c0_30 = arith.constant 0 : index
    %57 = vector.load %arg5[%c64_29, %c0_30] : memref<128x8xf32, #tpu.memory_space<vmem>>, vector<32x8xf32>
    tpu.vector_store %arg5[%c64_29, %c0_30], %56 {strides = array<i32>} : memref<128x8xf32, #tpu.memory_space<vmem>>, vector<32x8xf32>,
    %58 = vector.extract_strided_slice %43 {offsets = [0, 48], sizes = [32, 8], strides = [1, 1]} : vector<32x96xf32> to vector<32x8xf32>
    %c64_31 = arith.constant 64 : index
    %c0_32 = arith.constant 0 : index
    %59 = vector.load %arg6[%c64_31, %c0_32] : memref<128x8xf32, #tpu.memory_space<vmem>>, vector<32x8xf32>
    tpu.vector_store %arg6[%c64_31, %c0_32], %58 {strides = array<i32>} : memref<128x8xf32, #tpu.memory_space<vmem>>, vector<32x8xf32>,
    %60 = vector.extract_strided_slice %43 {offsets = [0, 80], sizes = [32, 8], strides = [1, 1]} : vector<32x96xf32> to vector<32x8xf32>
    %c64_33 = arith.constant 64 : index
    %c0_34 = arith.constant 0 : index
    %61 = vector.load %arg7[%c64_33, %c0_34] : memref<128x8xf32, #tpu.memory_space<vmem>>, vector<32x8xf32>
    tpu.vector_store %arg7[%c64_33, %c0_34], %60 {strides = array<i32>} : memref<128x8xf32, #tpu.memory_space<vmem>>, vector<32x8xf32>,
    %62 = vector.extract_strided_slice %43 {offsets = [0, 24], sizes = [32, 8], strides = [1, 1]} : vector<32x96xf32> to vector<32x8xf32>
    %c96 = arith.constant 96 : index
    %c0_35 = arith.constant 0 : index
    %63 = vector.load %arg5[%c96, %c0_35] : memref<128x8xf32, #tpu.memory_space<vmem>>, vector<32x8xf32>
    tpu.vector_store %arg5[%c96, %c0_35], %62 {strides = array<i32>} : memref<128x8xf32, #tpu.memory_space<vmem>>, vector<32x8xf32>,
    %64 = vector.extract_strided_slice %43 {offsets = [0, 56], sizes = [32, 8], strides = [1, 1]} : vector<32x96xf32> to vector<32x8xf32>
    %c96_36 = arith.constant 96 : index
    %c0_37 = arith.constant 0 : index
    %65 = vector.load %arg6[%c96_36, %c0_37] : memref<128x8xf32, #tpu.memory_space<vmem>>, vector<32x8xf32>
    tpu.vector_store %arg6[%c96_36, %c0_37], %64 {strides = array<i32>} : memref<128x8xf32, #tpu.memory_space<vmem>>, vector<32x8xf32>,
    %66 = vector.extract_strided_slice %43 {offsets = [0, 88], sizes = [32, 8], strides = [1, 1]} : vector<32x96xf32> to vector<32x8xf32>
    %c96_38 = arith.constant 96 : index
    %c0_39 = arith.constant 0 : index
    %67 = vector.load %arg7[%c96_38, %c0_39] : memref<128x8xf32, #tpu.memory_space<vmem>>, vector<32x8xf32>
    tpu.vector_store %arg7[%c96_38, %c0_39], %66 {strides = array<i32>} : memref<128x8xf32, #tpu.memory_space<vmem>>, vector<32x8xf32>,
    %c0_40 = arith.constant 0 : index
    %c0_41 = arith.constant 0 : index
    %68 = vector.load %arg5[%c0_40, %c0_41] : memref<128x8xf32, #tpu.memory_space<vmem>>, vector<128x8xf32>
    %69 = arith.truncf %68 : vector<128x8xf32> to vector<128x8xbf16>
    %c0_42 = arith.constant 0 : index
    %c0_43 = arith.constant 0 : index
    %70 = vector.load %arg6[%c0_42, %c0_43] : memref<128x8xf32, #tpu.memory_space<vmem>>, vector<128x8xf32>
    %71 = arith.truncf %70 : vector<128x8xf32> to vector<128x8xbf16>
    %cst_44 = arith.constant dense<0.000000e+00> : vector<128x128xf32>
    %72 = tpu.matmul %69, %71, %cst_44 {dimension_numbers = #tpu.dot_dimension_numbers<[1], [1], [0], [0], [0, 0, 1, 0], [], []>} : vector<128x8xbf16>, vector<128x8xbf16>, vector<128x128xf32> -> vector<128x128xf32>
    %cst_45 = arith.constant 0.353553385 : f32
    %73 = vector.broadcast %cst_45 : f32 to vector<128x128xf32>
    %74 = arith.mulf %72, %73 : vector<128x128xf32>
    %75 = arith.addf %74, %9 : vector<128x128xf32>
    %cst_46 = arith.constant dense<0xFF800000> : vector<128xf32>
    %76 = vector.multi_reduction <maximumf>, %75, %cst_46 [1] : vector<128x128xf32> to vector<128xf32>
    %77 = vector.shape_cast %76 : vector<128xf32> to vector<128x1xf32>
    %78 = vector.broadcast %77 : vector<128x1xf32> to vector<128x128xf32>
    %79 = arith.subf %75, %78 : vector<128x128xf32>
    %80 = math.exp %79 : vector<128x128xf32>
    %cst_47 = arith.constant dense<0.000000e+00> : vector<128xf32>
    %81 = vector.multi_reduction <add>, %80, %cst_47 [1] : vector<128x128xf32> to vector<128xf32>
    %82 = vector.shape_cast %81 : vector<128xf32> to vector<128x1xf32>
    %83 = tpu.reciprocal %82 {approx = true} : vector<128x1xf32> -> vector<128x1xf32>
    %84 = vector.broadcast %83 : vector<128x1xf32> to vector<128x128xf32>
    %85 = arith.mulf %80, %84 : vector<128x128xf32>
    %86 = arith.truncf %85 : vector<128x128xf32> to vector<128x128xbf16>
    %c0_48 = arith.constant 0 : index
    %c0_49 = arith.constant 0 : index
    %87 = vector.load %arg7[%c0_48, %c0_49] : memref<128x8xf32, #tpu.memory_space<vmem>>, vector<128x8xf32>
    %88 = arith.truncf %87 : vector<128x8xf32> to vector<128x8xbf16>
    %cst_50 = arith.constant dense<0.000000e+00> : vector<128x8xf32>
    %89 = tpu.matmul %86, %88, %cst_50 {dimension_numbers = #tpu.dot_dimension_numbers<[1], [0], [0], [1], [0, 0, 1, 1], [], []>} : vector<128x128xbf16>, vector<128x8xbf16>, vector<128x8xf32> -> vector<128x8xf32>
    %90 = vector.extract_strided_slice %89 {offsets = [0, 0], sizes = [32, 8], strides = [1, 1]} : vector<128x8xf32> to vector<32x8xf32>
    %c0_51 = arith.constant 0 : index
    %c0_52 = arith.constant 0 : index
    %91 = vector.load %arg8[%c0_51, %c0_52] : memref<32x32xf32, #tpu.memory_space<vmem>>, vector<32x8xf32>
    tpu.vector_store %arg8[%c0_51, %c0_52], %90 {strides = array<i32>} : memref<32x32xf32, #tpu.memory_space<vmem>>, vector<32x8xf32>,
    %92 = vector.extract_strided_slice %89 {offsets = [32, 0], sizes = [32, 8], strides = [1, 1]} : vector<128x8xf32> to vector<32x8xf32>
    %c0_53 = arith.constant 0 : index
    %c8 = arith.constant 8 : index
    %93 = vector.load %arg8[%c0_53, %c8] : memref<32x32xf32, #tpu.memory_space<vmem>>, vector<32x8xf32>
    tpu.vector_store %arg8[%c0_53, %c8], %92 {strides = array<i32>} : memref<32x32xf32, #tpu.memory_space<vmem>>, vector<32x8xf32>,
    %94 = vector.extract_strided_slice %89 {offsets = [64, 0], sizes = [32, 8], strides = [1, 1]} : vector<128x8xf32> to vector<32x8xf32>
    %c0_54 = arith.constant 0 : index
    %c16 = arith.constant 16 : index
    %95 = vector.load %arg8[%c0_54, %c16] : memref<32x32xf32, #tpu.memory_space<vmem>>, vector<32x8xf32>
    tpu.vector_store %arg8[%c0_54, %c16], %94 {strides = array<i32>} : memref<32x32xf32, #tpu.memory_space<vmem>>, vector<32x8xf32>,
    %96 = vector.extract_strided_slice %89 {offsets = [96, 0], sizes = [32, 8], strides = [1, 1]} : vector<128x8xf32> to vector<32x8xf32>
    %c0_55 = arith.constant 0 : index
    %c24_56 = arith.constant 24 : index
    %97 = vector.load %arg8[%c0_55, %c24_56] : memref<32x32xf32, #tpu.memory_space<vmem>>, vector<32x8xf32>
    tpu.vector_store %arg8[%c0_55, %c24_56], %96 {strides = array<i32>} : memref<32x32xf32, #tpu.memory_space<vmem>>, vector<32x8xf32>,
    %c0_57 = arith.constant 0 : index
    %c0_58 = arith.constant 0 : index
    %98 = vector.load %arg8[%c0_57, %c0_58] : memref<32x32xf32, #tpu.memory_space<vmem>>, vector<32x32xf32>
    %99 = arith.truncf %98 : vector<32x32xf32> to vector<32x32xbf16>
    %c96_59 = arith.constant 96 : index
    %c0_60 = arith.constant 0 : index
    %100 = vector.load %arg2[%c96_59, %c0_60] : memref<480x128xbf16, #tpu.memory_space<vmem>>, vector<32x32xbf16>
    %cst_61 = arith.constant dense<0.000000e+00> : vector<32x32xf32>
    %101 = tpu.matmul %99, %100, %cst_61 {dimension_numbers = #tpu.dot_dimension_numbers<[1], [0], [0], [1], [0, 0, 1, 1], [], []>} : vector<32x32xbf16>, vector<32x32xbf16>, vector<32x32xf32> -> vector<32x32xf32>
    %c3 = arith.constant 3 : index
    %c0_62 = arith.constant 0 : index
    %102 = vector.load %arg3[%c3, %c0_62] : memref<56x128xf32, #tpu.memory_space<vmem>>, vector<1x32xf32>
    %103 = vector.broadcast %102 : vector<1x32xf32> to vector<32x32xf32>
    %104 = arith.addf %101, %103 : vector<32x32xf32>
    %105 = arith.addf %15, %104 : vector<32x32xf32>
    %c4 = arith.constant 4 : index
    %c0_63 = arith.constant 0 : index
    %106 = vector.load %arg3[%c4, %c0_63] : memref<56x128xf32, #tpu.memory_space<vmem>>, vector<1x32xf32>
    %c5 = arith.constant 5 : index
    %c0_64 = arith.constant 0 : index
    %107 = vector.load %arg3[%c5, %c0_64] : memref<56x128xf32, #tpu.memory_space<vmem>>, vector<1x32xf32>
    %cst_65 = arith.constant dense<0.000000e+00> : vector<32xf32>
    %108 = vector.multi_reduction <add>, %105, %cst_65 [1] : vector<32x32xf32> to vector<32xf32>
    %109 = vector.shape_cast %108 : vector<32xf32> to vector<32x1xf32>
    %cst_66 = arith.constant 3.200000e+01 : f32
    %110 = vector.broadcast %cst_66 : f32 to vector<32x1xf32>
    %111 = arith.divf %109, %110 : vector<32x1xf32>
    %112 = vector.broadcast %111 : vector<32x1xf32> to vector<32x32xf32>
    %113 = arith.subf %105, %112 : vector<32x32xf32>
    %114 = arith.mulf %113, %113 : vector<32x32xf32>
    %cst_67 = arith.constant dense<0.000000e+00> : vector<32xf32>
    %115 = vector.multi_reduction <add>, %114, %cst_67 [1] : vector<32x32xf32> to vector<32xf32>
    %116 = vector.shape_cast %115 : vector<32xf32> to vector<32x1xf32>
    %cst_68 = arith.constant 3.200000e+01 : f32
    %117 = vector.broadcast %cst_68 : f32 to vector<32x1xf32>
    %118 = arith.divf %116, %117 : vector<32x1xf32>
    %cst_69 = arith.constant 9.99999974E-6 : f32
    %119 = vector.broadcast %cst_69 : f32 to vector<32x1xf32>
    %120 = arith.addf %118, %119 : vector<32x1xf32>
    %121 = math.rsqrt %120 : vector<32x1xf32>
    %122 = vector.broadcast %121 : vector<32x1xf32> to vector<32x32xf32>
    %123 = arith.mulf %113, %122 : vector<32x32xf32>
    %124 = vector.broadcast %106 : vector<1x32xf32> to vector<32x32xf32>
    %125 = arith.mulf %123, %124 : vector<32x32xf32>
    %126 = vector.broadcast %107 : vector<1x32xf32> to vector<32x32xf32>
    %127 = arith.addf %125, %126 : vector<32x32xf32>
    %128 = arith.truncf %127 : vector<32x32xf32> to vector<32x32xbf16>
    %c128 = arith.constant 128 : index
    %c0_70 = arith.constant 0 : index
    %129 = vector.load %arg2[%c128, %c0_70] : memref<480x128xbf16, #tpu.memory_space<vmem>>, vector<32x64xbf16>
    %cst_71 = arith.constant dense<0.000000e+00> : vector<32x64xf32>
    %130 = tpu.matmul %128, %129, %cst_71 {dimension_numbers = #tpu.dot_dimension_numbers<[1], [0], [0], [1], [0, 0, 1, 1], [], []>} : vector<32x32xbf16>, vector<32x64xbf16>, vector<32x64xf32> -> vector<32x64xf32>
    %c6 = arith.constant 6 : index
    %c0_72 = arith.constant 0 : index
    %131 = vector.load %arg3[%c6, %c0_72] : memref<56x128xf32, #tpu.memory_space<vmem>>, vector<1x64xf32>
    %132 = vector.broadcast %131 : vector<1x64xf32> to vector<32x64xf32>
    %133 = arith.addf %130, %132 : vector<32x64xf32>
    %cst_73 = arith.constant 5.000000e-01 : f32
    %134 = vector.broadcast %cst_73 : f32 to vector<32x64xf32>
    %135 = arith.mulf %134, %133 : vector<32x64xf32>
    %cst_74 = arith.constant 4.471500e-02 : f32
    %136 = vector.broadcast %cst_74 : f32 to vector<32x64xf32>
    %137 = arith.mulf %136, %133 : vector<32x64xf32>
    %138 = arith.mulf %137, %133 : vector<32x64xf32>
    %139 = arith.mulf %138, %133 : vector<32x64xf32>
    %140 = arith.addf %133, %139 : vector<32x64xf32>
    %cst_75 = arith.constant 0.797884583 : f32
    %141 = vector.broadcast %cst_75 : f32 to vector<32x64xf32>
    %142 = arith.mulf %141, %140 : vector<32x64xf32>
    %143 = math.tanh %142 : vector<32x64xf32>
    %cst_76 = arith.constant 1.000000e+00 : f32
    %144 = vector.broadcast %cst_76 : f32 to vector<32x64xf32>
    %145 = arith.addf %144, %143 : vector<32x64xf32>
    %146 = arith.mulf %135, %145 : vector<32x64xf32>
    %147 = arith.truncf %146 : vector<32x64xf32> to vector<32x64xbf16>
    %c160 = arith.constant 160 : index
    %c0_77 = arith.constant 0 : index
    %148 = vector.load %arg2[%c160, %c0_77] : memref<480x128xbf16, #tpu.memory_space<vmem>>, vector<64x32xbf16>
    %cst_78 = arith.constant dense<0.000000e+00> : vector<32x32xf32>
    %149 = tpu.matmul %147, %148, %cst_78 {dimension_numbers = #tpu.dot_dimension_numbers<[1], [0], [0], [1], [0, 0, 1, 1], [], []>} : vector<32x64xbf16>, vector<64x32xbf16>, vector<32x32xf32> -> vector<32x32xf32>
    %c7 = arith.constant 7 : index
    %c0_79 = arith.constant 0 : index
    %150 = vector.load %arg3[%c7, %c0_79] : memref<56x128xf32, #tpu.memory_space<vmem>>, vector<1x32xf32>
    %151 = vector.broadcast %150 : vector<1x32xf32> to vector<32x32xf32>
    %152 = arith.addf %149, %151 : vector<32x32xf32>
    %153 = arith.addf %105, %152 : vector<32x32xf32>
    %c8_80 = arith.constant 8 : index
    %c0_81 = arith.constant 0 : index
    %154 = vector.load %arg3[%c8_80, %c0_81] : memref<56x128xf32, #tpu.memory_space<vmem>>, vector<1x32xf32>
    %c9 = arith.constant 9 : index
    %c0_82 = arith.constant 0 : index
    %155 = vector.load %arg3[%c9, %c0_82] : memref<56x128xf32, #tpu.memory_space<vmem>>, vector<1x32xf32>
    %cst_83 = arith.constant dense<0.000000e+00> : vector<32xf32>
    %156 = vector.multi_reduction <add>, %153, %cst_83 [1] : vector<32x32xf32> to vector<32xf32>
    %157 = vector.shape_cast %156 : vector<32xf32> to vector<32x1xf32>
    %cst_84 = arith.constant 3.200000e+01 : f32
    %158 = vector.broadcast %cst_84 : f32 to vector<32x1xf32>
    %159 = arith.divf %157, %158 : vector<32x1xf32>
    %160 = vector.broadcast %159 : vector<32x1xf32> to vector<32x32xf32>
    %161 = arith.subf %153, %160 : vector<32x32xf32>
    %162 = arith.mulf %161, %161 : vector<32x32xf32>
    %cst_85 = arith.constant dense<0.000000e+00> : vector<32xf32>
    %163 = vector.multi_reduction <add>, %162, %cst_85 [1] : vector<32x32xf32> to vector<32xf32>
    %164 = vector.shape_cast %163 : vector<32xf32> to vector<32x1xf32>
    %cst_86 = arith.constant 3.200000e+01 : f32
    %165 = vector.broadcast %cst_86 : f32 to vector<32x1xf32>
    %166 = arith.divf %164, %165 : vector<32x1xf32>
    %cst_87 = arith.constant 9.99999974E-6 : f32
    %167 = vector.broadcast %cst_87 : f32 to vector<32x1xf32>
    %168 = arith.addf %166, %167 : vector<32x1xf32>
    %169 = math.rsqrt %168 : vector<32x1xf32>
    %170 = vector.broadcast %169 : vector<32x1xf32> to vector<32x32xf32>
    %171 = arith.mulf %161, %170 : vector<32x32xf32>
    %172 = vector.broadcast %154 : vector<1x32xf32> to vector<32x32xf32>
    %173 = arith.mulf %171, %172 : vector<32x32xf32>
    %174 = vector.broadcast %155 : vector<1x32xf32> to vector<32x32xf32>
    %175 = arith.addf %173, %174 : vector<32x32xf32>
    %176 = arith.truncf %175 : vector<32x32xf32> to vector<32x32xbf16>
    %c224 = arith.constant 224 : index
    %c0_88 = arith.constant 0 : index
    %177 = vector.load %arg2[%c224, %c0_88] : memref<480x128xbf16, #tpu.memory_space<vmem>>, vector<32x96xbf16>
    %cst_89 = arith.constant dense<0.000000e+00> : vector<32x96xf32>
    %178 = tpu.matmul %176, %177, %cst_89 {dimension_numbers = #tpu.dot_dimension_numbers<[1], [0], [0], [1], [0, 0, 1, 1], [], []>} : vector<32x32xbf16>, vector<32x96xbf16>, vector<32x96xf32> -> vector<32x96xf32>
    %c10 = arith.constant 10 : index
    %c0_90 = arith.constant 0 : index
    %179 = vector.load %arg3[%c10, %c0_90] : memref<56x128xf32, #tpu.memory_space<vmem>>, vector<1x96xf32>
    %180 = vector.broadcast %179 : vector<1x96xf32> to vector<32x96xf32>
    %181 = arith.addf %178, %180 : vector<32x96xf32>
    %182 = vector.extract_strided_slice %181 {offsets = [0, 0], sizes = [32, 8], strides = [1, 1]} : vector<32x96xf32> to vector<32x8xf32>
    %c0_91 = arith.constant 0 : index
    %c0_92 = arith.constant 0 : index
    %183 = vector.load %arg5[%c0_91, %c0_92] : memref<128x8xf32, #tpu.memory_space<vmem>>, vector<32x8xf32>
    tpu.vector_store %arg5[%c0_91, %c0_92], %182 {strides = array<i32>} : memref<128x8xf32, #tpu.memory_space<vmem>>, vector<32x8xf32>,
    %184 = vector.extract_strided_slice %181 {offsets = [0, 32], sizes = [32, 8], strides = [1, 1]} : vector<32x96xf32> to vector<32x8xf32>
    %c0_93 = arith.constant 0 : index
    %c0_94 = arith.constant 0 : index
    %185 = vector.load %arg6[%c0_93, %c0_94] : memref<128x8xf32, #tpu.memory_space<vmem>>, vector<32x8xf32>
    tpu.vector_store %arg6[%c0_93, %c0_94], %184 {strides = array<i32>} : memref<128x8xf32, #tpu.memory_space<vmem>>, vector<32x8xf32>,
    %186 = vector.extract_strided_slice %181 {offsets = [0, 64], sizes = [32, 8], strides = [1, 1]} : vector<32x96xf32> to vector<32x8xf32>
    %c0_95 = arith.constant 0 : index
    %c0_96 = arith.constant 0 : index
    %187 = vector.load %arg7[%c0_95, %c0_96] : memref<128x8xf32, #tpu.memory_space<vmem>>, vector<32x8xf32>
    tpu.vector_store %arg7[%c0_95, %c0_96], %186 {strides = array<i32>} : memref<128x8xf32, #tpu.memory_space<vmem>>, vector<32x8xf32>,
    %188 = vector.extract_strided_slice %181 {offsets = [0, 8], sizes = [32, 8], strides = [1, 1]} : vector<32x96xf32> to vector<32x8xf32>
    %c32_97 = arith.constant 32 : index
    %c0_98 = arith.constant 0 : index
    %189 = vector.load %arg5[%c32_97, %c0_98] : memref<128x8xf32, #tpu.memory_space<vmem>>, vector<32x8xf32>
    tpu.vector_store %arg5[%c32_97, %c0_98], %188 {strides = array<i32>} : memref<128x8xf32, #tpu.memory_space<vmem>>, vector<32x8xf32>,
    %190 = vector.extract_strided_slice %181 {offsets = [0, 40], sizes = [32, 8], strides = [1, 1]} : vector<32x96xf32> to vector<32x8xf32>
    %c32_99 = arith.constant 32 : index
    %c0_100 = arith.constant 0 : index
    %191 = vector.load %arg6[%c32_99, %c0_100] : memref<128x8xf32, #tpu.memory_space<vmem>>, vector<32x8xf32>
    tpu.vector_store %arg6[%c32_99, %c0_100], %190 {strides = array<i32>} : memref<128x8xf32, #tpu.memory_space<vmem>>, vector<32x8xf32>,
    %192 = vector.extract_strided_slice %181 {offsets = [0, 72], sizes = [32, 8], strides = [1, 1]} : vector<32x96xf32> to vector<32x8xf32>
    %c32_101 = arith.constant 32 : index
    %c0_102 = arith.constant 0 : index
    %193 = vector.load %arg7[%c32_101, %c0_102] : memref<128x8xf32, #tpu.memory_space<vmem>>, vector<32x8xf32>
    tpu.vector_store %arg7[%c32_101, %c0_102], %192 {strides = array<i32>} : memref<128x8xf32, #tpu.memory_space<vmem>>, vector<32x8xf32>,
    %194 = vector.extract_strided_slice %181 {offsets = [0, 16], sizes = [32, 8], strides = [1, 1]} : vector<32x96xf32> to vector<32x8xf32>
    %c64_103 = arith.constant 64 : index
    %c0_104 = arith.constant 0 : index
    %195 = vector.load %arg5[%c64_103, %c0_104] : memref<128x8xf32, #tpu.memory_space<vmem>>, vector<32x8xf32>
    tpu.vector_store %arg5[%c64_103, %c0_104], %194 {strides = array<i32>} : memref<128x8xf32, #tpu.memory_space<vmem>>, vector<32x8xf32>,
    %196 = vector.extract_strided_slice %181 {offsets = [0, 48], sizes = [32, 8], strides = [1, 1]} : vector<32x96xf32> to vector<32x8xf32>
    %c64_105 = arith.constant 64 : index
    %c0_106 = arith.constant 0 : index
    %197 = vector.load %arg6[%c64_105, %c0_106] : memref<128x8xf32, #tpu.memory_space<vmem>>, vector<32x8xf32>
    tpu.vector_store %arg6[%c64_105, %c0_106], %196 {strides = array<i32>} : memref<128x8xf32, #tpu.memory_space<vmem>>, vector<32x8xf32>,
    %198 = vector.extract_strided_slice %181 {offsets = [0, 80], sizes = [32, 8], strides = [1, 1]} : vector<32x96xf32> to vector<32x8xf32>
    %c64_107 = arith.constant 64 : index
    %c0_108 = arith.constant 0 : index
    %199 = vector.load %arg7[%c64_107, %c0_108] : memref<128x8xf32, #tpu.memory_space<vmem>>, vector<32x8xf32>
    tpu.vector_store %arg7[%c64_107, %c0_108], %198 {strides = array<i32>} : memref<128x8xf32, #tpu.memory_space<vmem>>, vector<32x8xf32>,
    %200 = vector.extract_strided_slice %181 {offsets = [0, 24], sizes = [32, 8], strides = [1, 1]} : vector<32x96xf32> to vector<32x8xf32>
    %c96_109 = arith.constant 96 : index
    %c0_110 = arith.constant 0 : index
    %201 = vector.load %arg5[%c96_109, %c0_110] : memref<128x8xf32, #tpu.memory_space<vmem>>, vector<32x8xf32>
    tpu.vector_store %arg5[%c96_109, %c0_110], %200 {strides = array<i32>} : memref<128x8xf32, #tpu.memory_space<vmem>>, vector<32x8xf32>,
    %202 = vector.extract_strided_slice %181 {offsets = [0, 56], sizes = [32, 8], strides = [1, 1]} : vector<32x96xf32> to vector<32x8xf32>
    %c96_111 = arith.constant 96 : index
    %c0_112 = arith.constant 0 : index
    %203 = vector.load %arg6[%c96_111, %c0_112] : memref<128x8xf32, #tpu.memory_space<vmem>>, vector<32x8xf32>
    tpu.vector_store %arg6[%c96_111, %c0_112], %202 {strides = array<i32>} : memref<128x8xf32, #tpu.memory_space<vmem>>, vector<32x8xf32>,
    %204 = vector.extract_strided_slice %181 {offsets = [0, 88], sizes = [32, 8], strides = [1, 1]} : vector<32x96xf32> to vector<32x8xf32>
    %c96_113 = arith.constant 96 : index
    %c0_114 = arith.constant 0 : index
    %205 = vector.load %arg7[%c96_113, %c0_114] : memref<128x8xf32, #tpu.memory_space<vmem>>, vector<32x8xf32>
    tpu.vector_store %arg7[%c96_113, %c0_114], %204 {strides = array<i32>} : memref<128x8xf32, #tpu.memory_space<vmem>>, vector<32x8xf32>,
    %c0_115 = arith.constant 0 : index
    %c0_116 = arith.constant 0 : index
    %206 = vector.load %arg5[%c0_115, %c0_116] : memref<128x8xf32, #tpu.memory_space<vmem>>, vector<128x8xf32>
    %207 = arith.truncf %206 : vector<128x8xf32> to vector<128x8xbf16>
    %c0_117 = arith.constant 0 : index
    %c0_118 = arith.constant 0 : index
    %208 = vector.load %arg6[%c0_117, %c0_118] : memref<128x8xf32, #tpu.memory_space<vmem>>, vector<128x8xf32>
    %209 = arith.truncf %208 : vector<128x8xf32> to vector<128x8xbf16>
    %cst_119 = arith.constant dense<0.000000e+00> : vector<128x128xf32>
    %210 = tpu.matmul %207, %209, %cst_119 {dimension_numbers = #tpu.dot_dimension_numbers<[1], [1], [0], [0], [0, 0, 1, 0], [], []>} : vector<128x8xbf16>, vector<128x8xbf16>, vector<128x128xf32> -> vector<128x128xf32>
    %cst_120 = arith.constant 0.353553385 : f32
    %211 = vector.broadcast %cst_120 : f32 to vector<128x128xf32>
    %212 = arith.mulf %210, %211 : vector<128x128xf32>
    %213 = arith.addf %212, %9 : vector<128x128xf32>
    %cst_121 = arith.constant dense<0xFF800000> : vector<128xf32>
    %214 = vector.multi_reduction <maximumf>, %213, %cst_121 [1] : vector<128x128xf32> to vector<128xf32>
    %215 = vector.shape_cast %214 : vector<128xf32> to vector<128x1xf32>
    %216 = vector.broadcast %215 : vector<128x1xf32> to vector<128x128xf32>
    %217 = arith.subf %213, %216 : vector<128x128xf32>
    %218 = math.exp %217 : vector<128x128xf32>
    %cst_122 = arith.constant dense<0.000000e+00> : vector<128xf32>
    %219 = vector.multi_reduction <add>, %218, %cst_122 [1] : vector<128x128xf32> to vector<128xf32>
    %220 = vector.shape_cast %219 : vector<128xf32> to vector<128x1xf32>
    %221 = tpu.reciprocal %220 {approx = true} : vector<128x1xf32> -> vector<128x1xf32>
    %222 = vector.broadcast %221 : vector<128x1xf32> to vector<128x128xf32>
    %223 = arith.mulf %218, %222 : vector<128x128xf32>
    %224 = arith.truncf %223 : vector<128x128xf32> to vector<128x128xbf16>
    %c0_123 = arith.constant 0 : index
    %c0_124 = arith.constant 0 : index
    %225 = vector.load %arg7[%c0_123, %c0_124] : memref<128x8xf32, #tpu.memory_space<vmem>>, vector<128x8xf32>
    %226 = arith.truncf %225 : vector<128x8xf32> to vector<128x8xbf16>
    %cst_125 = arith.constant dense<0.000000e+00> : vector<128x8xf32>
    %227 = tpu.matmul %224, %226, %cst_125 {dimension_numbers = #tpu.dot_dimension_numbers<[1], [0], [0], [1], [0, 0, 1, 1], [], []>} : vector<128x128xbf16>, vector<128x8xbf16>, vector<128x8xf32> -> vector<128x8xf32>
    %228 = vector.extract_strided_slice %227 {offsets = [0, 0], sizes = [32, 8], strides = [1, 1]} : vector<128x8xf32> to vector<32x8xf32>
    %c0_126 = arith.constant 0 : index
    %c0_127 = arith.constant 0 : index
    %229 = vector.load %arg8[%c0_126, %c0_127] : memref<32x32xf32, #tpu.memory_space<vmem>>, vector<32x8xf32>
    tpu.vector_store %arg8[%c0_126, %c0_127], %228 {strides = array<i32>} : memref<32x32xf32, #tpu.memory_space<vmem>>, vector<32x8xf32>,
    %230 = vector.extract_strided_slice %227 {offsets = [32, 0], sizes = [32, 8], strides = [1, 1]} : vector<128x8xf32> to vector<32x8xf32>
    %c0_128 = arith.constant 0 : index
    %c8_129 = arith.constant 8 : index
    %231 = vector.load %arg8[%c0_128, %c8_129] : memref<32x32xf32, #tpu.memory_space<vmem>>, vector<32x8xf32>
    tpu.vector_store %arg8[%c0_128, %c8_129], %230 {strides = array<i32>} : memref<32x32xf32, #tpu.memory_space<vmem>>, vector<32x8xf32>,
    %232 = vector.extract_strided_slice %227 {offsets = [64, 0], sizes = [32, 8], strides = [1, 1]} : vector<128x8xf32> to vector<32x8xf32>
    %c0_130 = arith.constant 0 : index
    %c16_131 = arith.constant 16 : index
    %233 = vector.load %arg8[%c0_130, %c16_131] : memref<32x32xf32, #tpu.memory_space<vmem>>, vector<32x8xf32>
    tpu.vector_store %arg8[%c0_130, %c16_131], %232 {strides = array<i32>} : memref<32x32xf32, #tpu.memory_space<vmem>>, vector<32x8xf32>,
    %234 = vector.extract_strided_slice %227 {offsets = [96, 0], sizes = [32, 8], strides = [1, 1]} : vector<128x8xf32> to vector<32x8xf32>
    %c0_132 = arith.constant 0 : index
    %c24_133 = arith.constant 24 : index
    %235 = vector.load %arg8[%c0_132, %c24_133] : memref<32x32xf32, #tpu.memory_space<vmem>>, vector<32x8xf32>
    tpu.vector_store %arg8[%c0_132, %c24_133], %234 {strides = array<i32>} : memref<32x32xf32, #tpu.memory_space<vmem>>, vector<32x8xf32>,
    %c0_134 = arith.constant 0 : index
    %c0_135 = arith.constant 0 : index
    %236 = vector.load %arg8[%c0_134, %c0_135] : memref<32x32xf32, #tpu.memory_space<vmem>>, vector<32x32xf32>
    %237 = arith.truncf %236 : vector<32x32xf32> to vector<32x32xbf16>
    %c256 = arith.constant 256 : index
    %c0_136 = arith.constant 0 : index
    %238 = vector.load %arg2[%c256, %c0_136] : memref<480x128xbf16, #tpu.memory_space<vmem>>, vector<32x32xbf16>
    %cst_137 = arith.constant dense<0.000000e+00> : vector<32x32xf32>
    %239 = tpu.matmul %237, %238, %cst_137 {dimension_numbers = #tpu.dot_dimension_numbers<[1], [0], [0], [1], [0, 0, 1, 1], [], []>} : vector<32x32xbf16>, vector<32x32xbf16>, vector<32x32xf32> -> vector<32x32xf32>
    %c11 = arith.constant 11 : index
    %c0_138 = arith.constant 0 : index
    %240 = vector.load %arg3[%c11, %c0_138] : memref<56x128xf32, #tpu.memory_space<vmem>>, vector<1x32xf32>
    %241 = vector.broadcast %240 : vector<1x32xf32> to vector<32x32xf32>
    %242 = arith.addf %239, %241 : vector<32x32xf32>
    %243 = arith.addf %153, %242 : vector<32x32xf32>
    %c12 = arith.constant 12 : index
    %c0_139 = arith.constant 0 : index
    %244 = vector.load %arg3[%c12, %c0_139] : memref<56x128xf32, #tpu.memory_space<vmem>>, vector<1x32xf32>
    %c13 = arith.constant 13 : index
    %c0_140 = arith.constant 0 : index
    %245 = vector.load %arg3[%c13, %c0_140] : memref<56x128xf32, #tpu.memory_space<vmem>>, vector<1x32xf32>
    %cst_141 = arith.constant dense<0.000000e+00> : vector<32xf32>
    %246 = vector.multi_reduction <add>, %243, %cst_141 [1] : vector<32x32xf32> to vector<32xf32>
    %247 = vector.shape_cast %246 : vector<32xf32> to vector<32x1xf32>
    %cst_142 = arith.constant 3.200000e+01 : f32
    %248 = vector.broadcast %cst_142 : f32 to vector<32x1xf32>
    %249 = arith.divf %247, %248 : vector<32x1xf32>
    %250 = vector.broadcast %249 : vector<32x1xf32> to vector<32x32xf32>
    %251 = arith.subf %243, %250 : vector<32x32xf32>
    %252 = arith.mulf %251, %251 : vector<32x32xf32>
    %cst_143 = arith.constant dense<0.000000e+00> : vector<32xf32>
    %253 = vector.multi_reduction <add>, %252, %cst_143 [1] : vector<32x32xf32> to vector<32xf32>
    %254 = vector.shape_cast %253 : vector<32xf32> to vector<32x1xf32>
    %cst_144 = arith.constant 3.200000e+01 : f32
    %255 = vector.broadcast %cst_144 : f32 to vector<32x1xf32>
    %256 = arith.divf %254, %255 : vector<32x1xf32>
    %cst_145 = arith.constant 9.99999974E-6 : f32
    %257 = vector.broadcast %cst_145 : f32 to vector<32x1xf32>
    %258 = arith.addf %256, %257 : vector<32x1xf32>
    %259 = math.rsqrt %258 : vector<32x1xf32>
    %260 = vector.broadcast %259 : vector<32x1xf32> to vector<32x32xf32>
    %261 = arith.mulf %251, %260 : vector<32x32xf32>
    %262 = vector.broadcast %244 : vector<1x32xf32> to vector<32x32xf32>
    %263 = arith.mulf %261, %262 : vector<32x32xf32>
    %264 = vector.broadcast %245 : vector<1x32xf32> to vector<32x32xf32>
    %265 = arith.addf %263, %264 : vector<32x32xf32>
    %266 = arith.truncf %265 : vector<32x32xf32> to vector<32x32xbf16>
    %c288 = arith.constant 288 : index
    %c0_146 = arith.constant 0 : index
    %267 = vector.load %arg2[%c288, %c0_146] : memref<480x128xbf16, #tpu.memory_space<vmem>>, vector<32x64xbf16>
    %cst_147 = arith.constant dense<0.000000e+00> : vector<32x64xf32>
    %268 = tpu.matmul %266, %267, %cst_147 {dimension_numbers = #tpu.dot_dimension_numbers<[1], [0], [0], [1], [0, 0, 1, 1], [], []>} : vector<32x32xbf16>, vector<32x64xbf16>, vector<32x64xf32> -> vector<32x64xf32>
    %c14 = arith.constant 14 : index
    %c0_148 = arith.constant 0 : index
    %269 = vector.load %arg3[%c14, %c0_148] : memref<56x128xf32, #tpu.memory_space<vmem>>, vector<1x64xf32>
    %270 = vector.broadcast %269 : vector<1x64xf32> to vector<32x64xf32>
    %271 = arith.addf %268, %270 : vector<32x64xf32>
    %cst_149 = arith.constant 5.000000e-01 : f32
    %272 = vector.broadcast %cst_149 : f32 to vector<32x64xf32>
    %273 = arith.mulf %272, %271 : vector<32x64xf32>
    %cst_150 = arith.constant 4.471500e-02 : f32
    %274 = vector.broadcast %cst_150 : f32 to vector<32x64xf32>
    %275 = arith.mulf %274, %271 : vector<32x64xf32>
    %276 = arith.mulf %275, %271 : vector<32x64xf32>
    %277 = arith.mulf %276, %271 : vector<32x64xf32>
    %278 = arith.addf %271, %277 : vector<32x64xf32>
    %cst_151 = arith.constant 0.797884583 : f32
    %279 = vector.broadcast %cst_151 : f32 to vector<32x64xf32>
    %280 = arith.mulf %279, %278 : vector<32x64xf32>
    %281 = math.tanh %280 : vector<32x64xf32>
    %cst_152 = arith.constant 1.000000e+00 : f32
    %282 = vector.broadcast %cst_152 : f32 to vector<32x64xf32>
    %283 = arith.addf %282, %281 : vector<32x64xf32>
    %284 = arith.mulf %273, %283 : vector<32x64xf32>
    %285 = arith.truncf %284 : vector<32x64xf32> to vector<32x64xbf16>
    %c320 = arith.constant 320 : index
    %c0_153 = arith.constant 0 : index
    %286 = vector.load %arg2[%c320, %c0_153] : memref<480x128xbf16, #tpu.memory_space<vmem>>, vector<64x32xbf16>
    %cst_154 = arith.constant dense<0.000000e+00> : vector<32x32xf32>
    %287 = tpu.matmul %285, %286, %cst_154 {dimension_numbers = #tpu.dot_dimension_numbers<[1], [0], [0], [1], [0, 0, 1, 1], [], []>} : vector<32x64xbf16>, vector<64x32xbf16>, vector<32x32xf32> -> vector<32x32xf32>
    %c15 = arith.constant 15 : index
    %c0_155 = arith.constant 0 : index
    %288 = vector.load %arg3[%c15, %c0_155] : memref<56x128xf32, #tpu.memory_space<vmem>>, vector<1x32xf32>
    %289 = vector.broadcast %288 : vector<1x32xf32> to vector<32x32xf32>
    %290 = arith.addf %287, %289 : vector<32x32xf32>
    %291 = arith.addf %243, %290 : vector<32x32xf32>
    %292 = arith.truncf %291 : vector<32x32xf32> to vector<32x32xbf16>
    %c384 = arith.constant 384 : index
    %c0_156 = arith.constant 0 : index
    %293 = vector.load %arg2[%c384, %c0_156] : memref<480x128xbf16, #tpu.memory_space<vmem>>, vector<32x64xbf16>
    %cst_157 = arith.constant dense<0.000000e+00> : vector<32x64xf32>
    %294 = tpu.matmul %292, %293, %cst_157 {dimension_numbers = #tpu.dot_dimension_numbers<[1], [0], [0], [1], [0, 0, 1, 1], [], []>} : vector<32x32xbf16>, vector<32x64xbf16>, vector<32x64xf32> -> vector<32x64xf32>
    %c16_158 = arith.constant 16 : index
    %c0_159 = arith.constant 0 : index
    %295 = vector.load %arg3[%c16_158, %c0_159] : memref<56x128xf32, #tpu.memory_space<vmem>>, vector<1x64xf32>
    %296 = vector.broadcast %295 : vector<1x64xf32> to vector<32x64xf32>
    %297 = arith.addf %294, %296 : vector<32x64xf32>
    %cst_160 = arith.constant 0.000000e+00 : f32
    %298 = vector.broadcast %cst_160 : f32 to vector<32x64xf32>
    %299 = arith.maximumf %297, %298 : vector<32x64xf32>
    %300 = arith.truncf %299 : vector<32x64xf32> to vector<32x64xbf16>
    %c416 = arith.constant 416 : index
    %c0_161 = arith.constant 0 : index
    %301 = vector.load %arg2[%c416, %c0_161] : memref<480x128xbf16, #tpu.memory_space<vmem>>, vector<64x128xbf16>
    %cst_162 = arith.constant dense<0.000000e+00> : vector<32x128xf32>
    %302 = tpu.matmul %300, %301, %cst_162 {dimension_numbers = #tpu.dot_dimension_numbers<[1], [0], [0], [1], [0, 0, 1, 1], [], []>} : vector<32x64xbf16>, vector<64x128xbf16>, vector<32x128xf32> -> vector<32x128xf32>
    %c17 = arith.constant 17 : index
    %c0_163 = arith.constant 0 : index
    %303 = vector.load %arg3[%c17, %c0_163] : memref<56x128xf32, #tpu.memory_space<vmem>>, vector<1x128xf32>
    %304 = vector.broadcast %303 : vector<1x128xf32> to vector<32x128xf32>
    %305 = arith.addf %302, %304 : vector<32x128xf32>
    %c0_164 = arith.constant 0 : index
    %c0_165 = arith.constant 0 : index
    %306 = vector.load %arg4[%c0_164, %c0_165] : memref<32x128xf32, #tpu.memory_space<vmem>>, vector<32x128xf32>
    tpu.vector_store %arg4[%c0_164, %c0_165], %305 {strides = array<i32>} : memref<32x128xf32, #tpu.memory_space<vmem>>, vector<32x128xf32>,
    return
  }
  func.func @transform_0(%arg0: i32) -> (i32, i32) {
    %c0_i32 = arith.constant 0 : i32
    %c0_i32_0 = arith.constant 0 : i32
    %c0_i32_1 = arith.constant 0 : i32
    return %c0_i32, %c0_i32_0 : i32, i32
  }
  func.func @transform_1(%arg0: i32) -> (i32, i32) {
    %c0_i32 = arith.constant 0 : i32
    %c0_i32_0 = arith.constant 0 : i32
    %c0_i32_1 = arith.constant 0 : i32
    return %c0_i32, %c0_i32_0 : i32, i32
  }
  func.func @transform_2(%arg0: i32) -> (i32, i32) {
    %c0_i32 = arith.constant 0 : i32
    %c0_i32_0 = arith.constant 0 : i32
    %c0_i32_1 = arith.constant 0 : i32
    return %c0_i32, %c0_i32_0 : i32, i32
  }
  func.func @transform_3(%arg0: i32) -> (i32, i32) {
    %c0_i32 = arith.constant 0 : i32
    %c0_i32_0 = arith.constant 0 : i32
    %c0_i32_1 = arith.constant 0 : i32
    return %c0_i32, %c0_i32_0 : i32, i32
  }
}

</mosaic_0001>

<bundles_post_ra>
// kernel: vit_autoencoder_forward.1
= control target key start
LH: loop header
LB: loop body
LE: loop exit
PB: predicated region body
PF: predicated region fallthrough
CT: control target
= control target key end

     0   :  { %vm125_vm0 = vcmask 523264   ;;  %vm153_vm1 = vcmask 261120   ;;  %v2871_v26 = vmov 32.0   ;;  %vm304_vm15 = vcmask 64512   ;;  %s2872_s18 = smov 72   ;;  %s2873_s19 = smov 80   ;;  %s4012_s1 = inlined_call_operand.vmem [shape: bf16[480,128], index: 1, kind: input, shape index: {}]   ;;  %s4013_s2 = inlined_call_operand.vmem [shape: f32[56,128], index: 2, kind: input, shape index: {}]   ;;  %s4014_s0 = inlined_call_operand.vmem [shape: f32[32,64], index: 0, kind: input, shape index: {}]   ;;  %s4015_s3 = inlined_call_operand.vmem [shape: f32[32,128], index: 3, kind: output, shape index: {}]  }
   0x1   :  { %v2630_v0 = vld [vmem:[%s4012_s1 + $0x18] sm:$0xff]  ;;  %v2629_v1 = vld [vmem:[%s4012_s1 + $0x10] sm:$0xff]  ;;  %v2628_v2 = vld [vmem:[%s4012_s1 + $0x8] sm:$0xff]  ;;  %2693 = vrcp.f32 %v2871_v26  ;;  %s2874_s20 = smov 88   ;;  %s2875_s21 = smov 96  }
   0x2   :  { %136 = vmatpush.bf16.msra.mxu0 %v2630_v0  ;;  %v2627_v3 = vld [vmem:[%s4012_s1] sm:$0xff]  ;;  %v96_v5 = vld [vmem:[%s4014_s0 + $0x8] sm:$0xff]  ;;  %v97_v7 = vld [vmem:[%s4014_s0 + $0x10] sm:$0xff]  ;;  %s2876_s22 = smov 120   ;;  %s2877_s23 = smov 112  }
   0x3   :  { %v95_v4 = vld [vmem:[%s4014_s0] sm:$0xff]  ;;  %v98_v8 = vld [vmem:[%s4014_s0 + $0x18] sm:$0xff]  ;;  %v93_v18 = vld [vmem:[%s4013_s2 + $0x28] sm:$0xff]  ;;  %s2878_s24 = smov 104   ;;  %s2879_s25 = smov 48  }
   0x4   :  { %v99_v6 = vpack.c.bf16 %v96_v5, %v95_v4  ;;  %v100_v9 = vpack.c.bf16 %v98_v8, %v97_v7  ;;  %v91_v10 = vld [vmem:[%s4013_s2 + $0x18] sm:$0xff]  ;;  %v92_v14 = vld [vmem:[%s4013_s2 + $0x20] sm:$0xff]  ;;  %v94_v22 = vld [vmem:[%s4013_s2 + $0x30] sm:$0xff]  ;;  %s2880_s26 = smov 56   ;;  %s2881_s27 = smov 40  }
   0x5   :  { %v2632_v53 = vld [vmem:[%s4012_s1 + $0x28] sm:$0xff]  ;;  %v2631_v56 = vld [vmem:[%s4012_s1 + $0x20] sm:$0xff]  ;;  %s2883_s28 = smov 64   ;;  %s2884_s29 = smov 8  }
   0x6   :  { %137 = vmatpush.bf16.msra.mxu0 %v2629_v1  ;;  %2657 = vmatpush.bf16.msra.mxu1 %v2632_v53  ;;  %s2885_s30 = smov 16   ;;  %s2886_s4 = smov 24  }
   0x7   :  { %v2694_v27 = vpop.eup %2693 }
   0x8   :  { %v167_v28 = vmul.f32 32.0, %v2694_v27  ;;  %vm171_vm2 = vweird.f32 %v2694_v27 }
   0xa   :  { %138 = vmatpush.bf16.msra.mxu0 %v2628_v2  ;;  %v168_v29 = vsub.f32 1.0, %v167_v28  ;;  %2658 = vmatpush.bf16.msra.mxu1 %v2631_v56  ;;  %v2676_v28 = vld [vmem:[%s4013_s2 + $0x1] ss:$0 sm:$0xff] }
   0xc   :  { %v169_v30 = vmul.f32 %v2694_v27, %v168_v29 }
   0xe   :  { %139 = vmatpush.bf16.msra.mxu0 %v2627_v3  ;;  %v170_v31 = vadd.f32 %v2694_v27, %v169_v30 }
  0x10   :  { %v2961_v32 = vsel %vm171_vm2, %v2694_v27, %v170_v31 }
  0x11   :  { %2485 = vmatmul.msk.bf16.vlgmr.msra.gmra.mxu0 %vm125_vm0, %v99_v6 }
  0x12   :  { %291 = vmatpush.bf16.msrb.mxu0 %v2632_v53 }
  0x16   :  { %292 = vmatpush.bf16.msrb.mxu0 %v2631_v56 }
  0x21   :  { %2486 = vmatmul.msk.bf16.gmra.mxu0 %vm125_vm0, %v100_v9 }
  0x8e   :  { %v141_v11 = vpop.f32.mrf.mxu0 }
  0x8f   :  { %v2936_v12 = vadd.f32 %v141_v11, %v91_v10 }
  0x91   :  { %v154_v13 = vsel %vm153_vm1, %v2936_v12, 0.0 }
  0x92   :  { %155 = vadd.xlane.f32.xlu1 %v154_v13 }
  0x96   :  { %v143_v15 = vpop.f32.mrf.mxu0 }
  0x97   :  { %v2943_v16 = vadd.f32 %v143_v15, %v92_v14 }
  0x99   :  { %v157_v17 = vsel %vm153_vm1, %v2943_v16, 0.0 }
  0x9a   :  { %158 = vadd.xlane.f32.xlu1 %v157_v17 }
  0x9e   :  { %v146_v19 = vpop.f32.mrf.mxu0 }
  0x9f   :  { %v2950_v20 = vadd.f32 %v146_v19, %v93_v18  ;;  %v2675_v19 = vld [vmem:[%s4013_s2] ss:$0 sm:$0xff] }
  0xa1   :  { %v160_v21 = vsel %vm153_vm1, %v2950_v20, 0.0 }
  0xa2   :  { %161 = vadd.xlane.f32.xlu0 %v160_v21 }
  0xa6   :  { %v148_v23 = vpop.f32.mrf.mxu0 }
  0xa7   :  { %v2957_v24 = vadd.f32 %v148_v23, %v94_v22 }
  0xa9   :  { %v163_v25 = vsel %vm153_vm1, %v2957_v24, 0.0 }
  0xaa   :  { %164 = vadd.xlane.f32.xlu0 %v163_v25 }
 0x105   :  { %v156_v33 = vpop.xlane.xlu1 %155 }
 0x106   :  { %v173_v34 = vmul.f32 %v2961_v32, %v156_v33 }
 0x108   :  { %v177_v35 = vsub.f32 %v2936_v12, %v173_v34 }
 0x10a   :  { %v181_v36 = vmul.f32 %v177_v35, %v177_v35 }
 0x10c   :  { %v185_v37 = vsel %vm153_vm1, %v181_v36, 0.0 }
 0x10d   :  { %186 = vadd.xlane.f32.xlu0 %v185_v37  ;;  %v159_v38 = vpop.xlane.xlu1 %158 }
 0x10e   :  { %v174_v39 = vmul.f32 %v2961_v32, %v159_v38 }
 0x110   :  { %v2968_v40 = vsub.f32 %v2943_v16, %v174_v39 }
 0x112   :  { %v182_v41 = vmul.f32 %v2968_v40, %v2968_v40 }
 0x114   :  { %v188_v42 = vsel %vm153_vm1, %v182_v41, 0.0 }
 0x115   :  { %v162_v43 = vpop.xlane.xlu0 %161  ;;  %189 = vadd.xlane.f32.xlu1 %v188_v42 }
 0x116   :  { %v175_v44 = vmul.f32 %v2961_v32, %v162_v43 }
 0x118   :  { %v2975_v45 = vsub.f32 %v2950_v20, %v175_v44 }
 0x11a   :  { %v183_v46 = vmul.f32 %v2975_v45, %v2975_v45 }
 0x11c   :  { %v191_v47 = vsel %vm153_vm1, %v183_v46, 0.0 }
 0x11d   :  { %192 = vadd.xlane.f32.xlu2 %v191_v47  ;;  %v165_v48 = vpop.xlane.xlu0 %164 }
 0x11e   :  { %v176_v49 = vmul.f32 %v2961_v32, %v165_v48 }
 0x120   :  { %v2982_v50 = vsub.f32 %v2957_v24, %v176_v49 }
 0x122   :  { %v184_v51 = vmul.f32 %v2982_v50, %v2982_v50 }
 0x124   :  { %v194_v52 = vsel %vm153_vm1, %v184_v51, 0.0 }
 0x125   :  { %195 = vadd.xlane.f32.xlu2 %v194_v52 }
 0x180   :  { %v187_v54 = vpop.xlane.xlu0 %186 }
 0x181   :  { %v197_v55 = vmul.f32 %v187_v54, %v2961_v32  ;;  %v2677_v54 = vld [vmem:[%s4013_s2 + $0x2] ss:$0 sm:$0xff] }
 0x183   :  { %v201_v57 = vadd.f32 1e-05, %v197_v55 }
 0x185   :  { %2695 = vrsqrt.f32 %v201_v57  ;;  %vm211_vm4 = vweird.f32 %v201_v57 }
 0x188   :  { %v190_v58 = vpop.xlane.xlu1 %189 }
 0x189   :  { %v198_v59 = vmul.f32 %v190_v58, %v2961_v32 }
 0x18b   :  { %v2696_v60 = vpop.eup %2695  ;;  %v202_v61 = vadd.f32 1e-05, %v198_v59 }
 0x18c   :  { %v206_v62 = vmul.f32 %v2696_v60, %v201_v57  ;;  %vm212_vm3 = vweird.f32 %v2696_v60 }
 0x18d   :  { %2697 = vrsqrt.f32 %v202_v61  ;;  %vm213_vm5 = vmor %vm211_vm4, %vm212_vm3  ;;  %vm221_vm7 = vweird.f32 %v202_v61 }
 0x18e   :  { %v207_v63 = vmul.f32 %v2696_v60, %v206_v62 }
 0x190   :  { %v208_v0 = vmul.f32 0.5, %v207_v63  ;;  %v193_v1 = vpop.xlane.xlu2 %192 }
 0x191   :  { %v199_v2 = vmul.f32 %v193_v1, %v2961_v32 }
 0x192   :  { %v209_v3 = vsub.f32 1.5, %v208_v0 }
 0x193   :  { %v2698_v4 = vpop.eup %2697  ;;  %v203_v5 = vadd.f32 1e-05, %v199_v2 }
 0x194   :  { %v210_v6 = vmul.f32 %v2696_v60, %v209_v3  ;;  %v216_v7 = vmul.f32 %v2698_v4, %v202_v61  ;;  %vm222_vm6 = vweird.f32 %v2698_v4 }
 0x195   :  { %2699 = vrsqrt.f32 %v203_v5  ;;  %vm223_vm8 = vmor %vm221_vm7, %vm222_vm6  ;;  %vm231_vm10 = vweird.f32 %v203_v5 }
 0x196   :  { %v217_v8 = vmul.f32 %v2698_v4, %v216_v7  ;;  %v214_v9 = vsel %vm213_vm5, %v2696_v60, %v210_v6 }
 0x197   :  { %v245_v17 = vmul.f32 %v214_v9, %v177_v35 }
 0x198   :  { %v218_v10 = vmul.f32 0.5, %v217_v8  ;;  %v196_v11 = vpop.xlane.xlu2 %195 }
 0x199   :  { %v200_v13 = vmul.f32 %v196_v11, %v2961_v32  ;;  %v250_v27 = vmul.f32 %v2675_v19, %v245_v17 }
 0x19a   :  { %v219_v14 = vsub.f32 1.5, %v218_v10 }
 0x19b   :  { %v2700_v15 = vpop.eup %2699  ;;  %v204_v18 = vadd.f32 1e-05, %v200_v13  ;;  %v255_v34 = vadd.f32 %v2676_v28, %v250_v27 }
 0x19c   :  { %v220_v21 = vmul.f32 %v2698_v4, %v219_v14  ;;  %v226_v22 = vmul.f32 %v2700_v15, %v203_v5  ;;  %vm232_vm9 = vweird.f32 %v2700_v15 }
 0x19d   :  { %2701 = vrsqrt.f32 %v204_v18  ;;  %vm233_vm11 = vmor %vm231_vm10, %vm232_vm9  ;;  %vm241_vm13 = vweird.f32 %v204_v18 }
 0x19e   :  { %v224_v23 = vsel %vm223_vm8, %v2698_v4, %v220_v21  ;;  %v227_v25 = vmul.f32 %v2700_v15, %v226_v22 }
 0x19f   :  { %v246_v26 = vmul.f32 %v224_v23, %v2968_v40 }
 0x1a0   :  { %v228_v29 = vmul.f32 0.5, %v227_v25 }
 0x1a1   :  { %v251_v30 = vmul.f32 %v2675_v19, %v246_v26 }
 0x1a2   :  { %v229_v31 = vsub.f32 1.5, %v228_v29 }
 0x1a3   :  { %v2702_v33 = vpop.eup %2701  ;;  %v256_v35 = vadd.f32 %v2676_v28, %v251_v30 }
 0x1a4   :  { %v230_v36 = vmul.f32 %v2700_v15, %v229_v31  ;;  %v236_v37 = vmul.f32 %v2702_v33, %v204_v18  ;;  %vm242_vm12 = vweird.f32 %v2702_v33 }
 0x1a5   :  { %v259_v38 = vpack.c.bf16 %v256_v35, %v255_v34  ;;  %vm243_vm14 = vmor %vm241_vm13, %vm242_vm12 }
 0x1a6   :  { %v237_v39 = vmul.f32 %v2702_v33, %v236_v37  ;;  %v234_v40 = vsel %vm233_vm11, %v2700_v15, %v230_v36 }
 0x1a7   :  { %2495 = vmatmul.msk.bf16.vlgmr.msrb.gmra.mxu0 %vm153_vm1, %v259_v38  ;;  %v247_v43 = vmul.f32 %v234_v40, %v2975_v45 }
 0x1a8   :  { %v238_v41 = vmul.f32 0.5, %v237_v39 }
 0x1a9   :  { %v252_v48 = vmul.f32 %v2675_v19, %v247_v43 }
 0x1aa   :  { %v239_v42 = vsub.f32 1.5, %v238_v41 }
 0x1ab   :  { %v257_v51 = vadd.f32 %v2676_v28, %v252_v48 }
 0x1ac   :  { %v240_v44 = vmul.f32 %v2702_v33, %v239_v42 }
 0x1ae   :  { %v244_v46 = vsel %vm243_vm14, %v2702_v33, %v240_v44 }
 0x1af   :  { %v248_v47 = vmul.f32 %v244_v46, %v2982_v50 }
 0x1b1   :  { %v253_v49 = vmul.f32 %v2675_v19, %v248_v47 }
 0x1b3   :  { %v258_v52 = vadd.f32 %v2676_v28, %v253_v49 }
 0x1b5   :  { %v260_v53 = vpack.c.bf16 %v258_v52, %v257_v51 }
 0x1b7   :  { %2496 = vmatmul.msk.bf16.vlgmr.msra.gmra.mxu1 %vm153_vm1, %v260_v53 }
 0x224   :  { %v294_v55 = vpop.f32.mrf.mxu0 }
 0x225   :  { %v3011_v45 = vadd.f32 %v2677_v54, %v294_v55 }
 0x227   :  { %457 = vrot.lane.b32.xlu1 %v3011_v45, %s2872_s18  ;;  %305 = vst.msk [vmem:[#allocation2] sm:$0xff] %vm304_vm15, %v3011_v45 }
 0x22c   :  { %v296_v50 = vpop.f32.mrf.mxu0 }
 0x22d   :  { %v3017_v56 = vadd.f32 %v2677_v54, %v296_v50 }
 0x22f   :  { %409 = vrot.lane.b32.xlu1 %v3011_v45, %s2873_s19  ;;  %306 = vst.msk [vmem:[#allocation2 + $0x8] sm:$0xff] %vm304_vm15, %v3017_v56 }
 0x234   :  { %v299_v57 = vpop.f32.mrf.mxu1 }
 0x235   :  { %v3023_v58 = vadd.f32 %v2677_v54, %v299_v57 }
 0x237   :  { %461 = vrot.lane.b32.xlu2 %v3023_v58, %s2872_s18  ;;  %307 = vst.msk [vmem:[#allocation2 + $0x10] sm:$0xff] %vm304_vm15, %v3023_v58 }
 0x23c   :  { %v301_v59 = vpop.f32.mrf.mxu1 }
 0x23d   :  { %v3029_v60 = vadd.f32 %v2677_v54, %v301_v59 }
 0x23f   :  { %463 = vrot.lane.b32.xlu0 %v3029_v60, %s2872_s18  ;;  %459 = vrot.lane.b32.xlu2 %v3017_v56, %s2872_s18  ;;  %308 = vst.msk [vmem:[#allocation2 + $0x18] sm:$0xff] %vm304_vm15, %v3029_v60 }
 0x240   :  { %367 = vrot.lane.b32.xlu1 %v3029_v60, %s2874_s20 }
 0x247   :  { %413 = vrot.lane.b32.xlu0 %v3023_v58, %s2873_s19  ;;  %415 = vrot.lane.b32.xlu2 %v3029_v60, %s2873_s19 }
 0x248   :  { %317 = vrot.lane.b32.xlu1 %v3023_v58, %s2875_s21 }
 0x24f   :  { %411 = vrot.lane.b32.xlu0 %v3017_v56, %s2873_s19  ;;  %365 = vrot.lane.b32.xlu2 %v3023_v58, %s2874_s20 }
 0x250   :  { %315 = vrot.lane.b32.xlu1 %v3017_v56, %s2875_s21 }
 0x257   :  { %363 = vrot.lane.b32.xlu2 %v3017_v56, %s2874_s20  ;;  %361 = vrot.lane.b32.xlu0 %v3011_v45, %s2874_s20 }
 0x258   :  { %349 = vrot.lane.b32.xlu1 %v3023_v58, %s2876_s22 }
 0x25f   :  { %313 = vrot.lane.b32.xlu2 %v3011_v45, %s2875_s21  ;;  %319 = vrot.lane.b32.xlu0 %v3029_v60, %s2875_s21 }
 0x260   :  { %395 = vrot.lane.b32.xlu1 %v3017_v56, %s2877_s23 }
 0x267   :  { %347 = vrot.lane.b32.xlu2 %v3017_v56, %s2876_s22  ;;  %345 = vrot.lane.b32.xlu0 %v3011_v45, %s2876_s22 }
 0x268   :  { %441 = vrot.lane.b32.xlu1 %v3011_v45, %s2878_s24 }
 0x26f   :  { %393 = vrot.lane.b32.xlu2 %v3011_v45, %s2877_s23  ;;  %351 = vrot.lane.b32.xlu0 %v3029_v60, %s2876_s22 }
 0x270   :  { %425 = vrot.lane.b32.xlu1 %v3011_v45, %s2879_s25 }
 0x277   :  { %399 = vrot.lane.b32.xlu2 %v3029_v60, %s2877_s23  ;;  %397 = vrot.lane.b32.xlu0 %v3023_v58, %s2877_s23 }
 0x278   :  { %427 = vrot.lane.b32.xlu1 %v3017_v56, %s2879_s25 }
 0x27f   :  { %445 = vrot.lane.b32.xlu2 %v3023_v58, %s2878_s24  ;;  %443 = vrot.lane.b32.xlu0 %v3017_v56, %s2878_s24 }
 0x280   :  { %381 = vrot.lane.b32.xlu1 %v3023_v58, %s2880_s26 }
 0x287   :  { %477 = vrot.lane.b32.xlu2 %v3023_v58, %s2881_s27  ;;  %473 = vrot.lane.b32.xlu0 %v3011_v45, %s2881_s27 }
 0x288   :  { %447 = vrot.lane.b32.xlu1 %v3029_v60, %s2878_s24 }
 0x28f   :  { %475 = vrot.lane.b32.xlu2 %v3017_v56, %s2881_s27  ;;  %429 = vrot.lane.b32.xlu0 %v3023_v58, %s2879_s25 }
 0x290   :  { %377 = vrot.lane.b32.xlu1 %v3011_v45, %s2880_s26 }
 0x291   :  { %v462_v61 = vpop.permute.xlu2 %461 }
 0x292   :  { %471 = vst.msk [vmem:[#allocation3 + $0x70] sm:$0xff] %vm304_vm15, %v462_v61 }
 0x297   :  { %379 = vrot.lane.b32.xlu2 %v3017_v56, %s2880_s26 }
 0x298   :  { %479 = vrot.lane.b32.xlu1 %v3029_v60, %s2881_s27 }
 0x299   :  { %v460_v62 = vpop.permute.xlu2 %459  ;;  %v458_v63 = vpop.permute.xlu1 %457  ;;  %v527_v8 = vld [vmem:[#allocation3 + $0x70] sm:$0xff] }
 0x29a   :  { %470 = vst.msk [vmem:[#allocation3 + $0x68] sm:$0xff] %vm304_vm15, %v460_v62 }
 0x29b   :  { %469 = vst.msk [vmem:[#allocation3 + $0x60] sm:$0xff] %vm304_vm15, %v458_v63 }
 0x2a0   :  { %431 = vrot.lane.b32.xlu1 %v3029_v60, %s2879_s25 }
 0x2a1   :  { %v416_v0 = vpop.permute.xlu2 %415  ;;  %v410_v1 = vpop.permute.xlu1 %409  ;;  %v526_v15 = vld [vmem:[#allocation3 + $0x68] sm:$0xff] }
 0x2a2   :  { %424 = vst.msk [vmem:[#allocation3 + $0x58] sm:$0xff] %vm304_vm15, %v416_v0  ;;  %v525_v14 = vld [vmem:[#allocation3 + $0x60] sm:$0xff] }
 0x2a3   :  { %421 = vst.msk [vmem:[#allocation3 + $0x40] sm:$0xff] %vm304_vm15, %v410_v1  ;;  %v535_v17 = vpack.c.bf16 %v526_v15, %v525_v14  ;;  %v492_v15 = vld [vmem:[#allocation2 + $0x18] sm:$0xff] }
 0x2a5   :  { %v580_v22 = vsel %vm304_vm15, %v535_v17, 0  ;;  %v491_v17 = vld [vmem:[#allocation2 + $0x10] sm:$0xff] }
 0x2a8   :  { %383 = vrot.lane.b32.xlu1 %v3029_v60, %s2880_s26 }
 0x2a9   :  { %v366_v2 = vpop.permute.xlu2 %365  ;;  %v524_v25 = vld [vmem:[#allocation3 + $0x58] sm:$0xff] }
 0x2aa   :  { %375 = vst.msk [vmem:[#allocation3 + $0x30] sm:$0xff] %vm304_vm15, %v366_v2  ;;  %v521_v33 = vld [vmem:[#allocation3 + $0x40] sm:$0xff] }
 0x2b1   :  { %v464_v3 = vpop.permute.xlu0 %463  ;;  %v364_v4 = vpop.permute.xlu2 %363  ;;  %v519_v40 = vld [vmem:[#allocation3 + $0x30] sm:$0xff] }
 0x2b2   :  { %472 = vst.msk [vmem:[#allocation3 + $0x78] sm:$0xff] %vm304_vm15, %v464_v3  ;;  %v368_v5 = vpop.permute.xlu1 %367 }
 0x2b3   :  { %374 = vst.msk [vmem:[#allocation3 + $0x28] sm:$0xff] %vm304_vm15, %v364_v4 }
 0x2b4   :  { %376 = vst.msk [vmem:[#allocation3 + $0x38] sm:$0xff] %vm304_vm15, %v368_v5 }
 0x2b9   :  { %v414_v6 = vpop.permute.xlu0 %413  ;;  %v314_v7 = vpop.permute.xlu2 %313  ;;  %v528_v9 = vld [vmem:[#allocation3 + $0x78] sm:$0xff] }
 0x2ba   :  { %423 = vst.msk [vmem:[#allocation3 + $0x50] sm:$0xff] %vm304_vm15, %v414_v6  ;;  %v318_v10 = vpop.permute.xlu1 %317  ;;  %v536_v11 = vpack.c.bf16 %v528_v9, %v527_v8  ;;  %v518_v48 = vld [vmem:[#allocation3 + $0x28] sm:$0xff]  ;;  %v489_v9 = vld [vmem:[#allocation2] sm:$0xff] }
 0x2bb   :  { %325 = vst.msk [vmem:[#allocation3] sm:$0xff] %vm304_vm15, %v314_v7  ;;  %v520_v39 = vld [vmem:[#allocation3 + $0x38] sm:$0xff]  ;;  %v490_v7 = vld [vmem:[#allocation2 + $0x8] sm:$0xff] }
 0x2bc   :  { %327 = vst.msk [vmem:[#allocation3 + $0x10] sm:$0xff] %vm304_vm15, %v318_v10  ;;  %v583_v13 = vsel %vm304_vm15, %v536_v11, 0  ;;  %v532_v41 = vpack.c.bf16 %v520_v39, %v519_v40  ;;  %v505_v11 = vpack.c.bf16 %v490_v7, %v489_v9 }
 0x2bd   :  { %585 = vmatpush.bf16.xpose.msra.mxu2 %v583_v13 }
 0x2be   :  { %v571_v46 = vsel %vm304_vm15, %v532_v41, 0 }
 0x2c1   :  { %v412_v18 = vpop.permute.xlu0 %411  ;;  %v348_v19 = vpop.permute.xlu2 %347  ;;  %v523_v23 = vld [vmem:[#allocation3 + $0x50] sm:$0xff] }
 0x2c2   :  { %422 = vst.msk [vmem:[#allocation3 + $0x48] sm:$0xff] %vm304_vm15, %v412_v18  ;;  %v316_v21 = vpop.permute.xlu1 %315  ;;  %v534_v26 = vpack.c.bf16 %v524_v25, %v523_v23  ;;  %v513_v1 = vld [vmem:[#allocation3] sm:$0xff] }
 0x2c3   :  { %358 = vst.msk [vmem:[#allocation2 + $0x28] sm:$0xff] %vm304_vm15, %v348_v19  ;;  %v515_v50 = vld [vmem:[#allocation3 + $0x10] sm:$0xff]  ;;  %v506_v19 = vpack.c.bf16 %v492_v15, %v491_v17 }
 0x2c4   :  { %326 = vst.msk [vmem:[#allocation3 + $0x8] sm:$0xff] %vm304_vm15, %v316_v21  ;;  %v577_v30 = vsel %vm304_vm15, %v534_v26, 0 }
 0x2c5   :  { %586 = vmatpush.bf16.xpose.msra.mxu2 %v580_v22 }
 0x2c9   :  { %v394_v27 = vpop.permute.xlu2 %393  ;;  %v362_v28 = vpop.permute.xlu0 %361  ;;  %v522_v31 = vld [vmem:[#allocation3 + $0x48] sm:$0xff] }
 0x2ca   :  { %405 = vst.msk [vmem:[#allocation2 + $0x40] sm:$0xff] %vm304_vm15, %v394_v27  ;;  %v350_v29 = vpop.permute.xlu1 %349  ;;  %v533_v34 = vpack.c.bf16 %v522_v31, %v521_v33 }
 0x2cb   :  { %373 = vst.msk [vmem:[#allocation3 + $0x20] sm:$0xff] %vm304_vm15, %v362_v28  ;;  %v514_v0 = vld [vmem:[#allocation3 + $0x8] sm:$0xff] }
 0x2cc   :  { %359 = vst.msk [vmem:[#allocation2 + $0x30] sm:$0xff] %vm304_vm15, %v350_v29  ;;  %v574_v38 = vsel %vm304_vm15, %v533_v34, 0  ;;  %v529_v2 = vpack.c.bf16 %v514_v0, %v513_v1  ;;  %v15_v1 = vlaneseq }
 0x2cd   :  { %587 = vmatpush.bf16.xpose.msra.mxu2 %v577_v30  ;;  %v494_v30 = vld [vmem:[#allocation2 + $0x28] sm:$0xff] }
 0x2ce   :  { %v562_v6 = vsel %vm304_vm15, %v529_v2, 0  ;;  %v3163_v2 = vshrl.u32 %v15_v1, 7 }
 0x2d1   :  { %v400_v35 = vpop.permute.xlu2 %399  ;;  %v320_v36 = vpop.permute.xlu0 %319 }
 0x2d2   :  { %408 = vst.msk [vmem:[#allocation2 + $0x58] sm:$0xff] %vm304_vm15, %v400_v35  ;;  %v396_v37 = vpop.permute.xlu1 %395  ;;  %v517_v47 = vld [vmem:[#allocation3 + $0x20] sm:$0xff] }
 0x2d3   :  { %328 = vst.msk [vmem:[#allocation3 + $0x18] sm:$0xff] %vm304_vm15, %v320_v36  ;;  %v531_v49 = vpack.c.bf16 %v518_v48, %v517_v47  ;;  %v495_v48 = vld [vmem:[#allocation2 + $0x30] sm:$0xff] }
 0x2d4   :  { %406 = vst.msk [vmem:[#allocation2 + $0x48] sm:$0xff] %vm304_vm15, %v396_v37 }
 0x2d5   :  { %588 = vmatpush.bf16.xpose.msra.mxu2 %v574_v38  ;;  %v568_v54 = vsel %vm304_vm15, %v531_v49, 0 }
 0x2d9   :  { %v446_v42 = vpop.permute.xlu2 %445  ;;  %v346_v43 = vpop.permute.xlu0 %345 }
 0x2da   :  { %455 = vst.msk [vmem:[#allocation2 + $0x70] sm:$0xff] %vm304_vm15, %v446_v42  ;;  %v442_v44 = vpop.permute.xlu1 %441  ;;  %v516_v55 = vld [vmem:[#allocation3 + $0x18] sm:$0xff] }
 0x2db   :  { %357 = vst.msk [vmem:[#allocation2 + $0x20] sm:$0xff] %vm304_vm15, %v346_v43  ;;  %v530_v57 = vpack.c.bf16 %v516_v55, %v515_v50  ;;  %v500_v55 = vld [vmem:[#allocation2 + $0x58] sm:$0xff] }
 0x2dc   :  { %453 = vst.msk [vmem:[#allocation2 + $0x60] sm:$0xff] %vm304_vm15, %v442_v44 }
 0x2dd   :  { %589 = vmatpush.bf16.xpose.msra.mxu2 %v571_v46  ;;  %v565_v63 = vsel %vm304_vm15, %v530_v57, 0 }
 0x2e1   :  { %v478_v51 = vpop.permute.xlu2 %477  ;;  %v352_v52 = vpop.permute.xlu0 %351 }
 0x2e2   :  { %487 = vst.msk [vmem:[#allocation4 + $0x70] sm:$0xff] %vm304_vm15, %v478_v51  ;;  %v426_v53 = vpop.permute.xlu1 %425  ;;  %v493_v29 = vld [vmem:[#allocation2 + $0x20] sm:$0xff]  ;;  %v498_v51 = vld [vmem:[#allocation2 + $0x48] sm:$0xff] }
 0x2e3   :  { %360 = vst.msk [vmem:[#allocation2 + $0x38] sm:$0xff] %vm304_vm15, %v352_v52  ;;  %v507_v33 = vpack.c.bf16 %v494_v30, %v493_v29  ;;  %v497_v52 = vld [vmem:[#allocation2 + $0x40] sm:$0xff]  ;;  %v20_v29 = vadd.s32 32, %v3163_v2 }
 0x2e4   :  { %437 = vst.msk [vmem:[#allocation4 + $0x40] sm:$0xff] %vm304_vm15, %v426_v53  ;;  %v509_v53 = vpack.c.bf16 %v498_v51, %v497_v52 }
 0x2e5   :  { %590 = vmatpush.bf16.xpose.msra.mxu2 %v568_v54 }
 0x2e9   :  { %v476_v59 = vpop.permute.xlu2 %475  ;;  %v398_v61 = vpop.permute.xlu0 %397  ;;  %v832_v22 = vld [vmem:[#allocation4 + $0x70] sm:$0xff] }
 0x2ea   :  { %486 = vst.msk [vmem:[#allocation4 + $0x68] sm:$0xff] %vm304_vm15, %v476_v59  ;;  %v428_v62 = vpop.permute.xlu1 %427  ;;  %v496_v47 = vld [vmem:[#allocation2 + $0x38] sm:$0xff]  ;;  %v501_v59 = vld [vmem:[#allocation2 + $0x60] sm:$0xff] }
 0x2eb   :  { %407 = vst.msk [vmem:[#allocation2 + $0x50] sm:$0xff] %vm304_vm15, %v398_v61  ;;  %v826_v38 = vld [vmem:[#allocation4 + $0x40] sm:$0xff]  ;;  %v508_v49 = vpack.c.bf16 %v496_v47, %v495_v48  ;;  %v22_v47 = vadd.s32 48, %v3163_v2 }
 0x2ec   :  { %438 = vst.msk [vmem:[#allocation4 + $0x48] sm:$0xff] %vm304_vm15, %v428_v62 }
 0x2ed   :  { %591 = vmatpush.bf16.xpose.msra.mxu2 %v565_v63  ;;  %v503_v63 = vld [vmem:[#allocation2 + $0x70] sm:$0xff] }
 0x2f1   :  { %v380_v3 = vpop.permute.xlu2 %379  ;;  %v444_v4 = vpop.permute.xlu0 %443  ;;  %v831_v27 = vld [vmem:[#allocation4 + $0x68] sm:$0xff] }
 0x2f2   :  { %390 = vst.msk [vmem:[#allocation4 + $0x28] sm:$0xff] %vm304_vm15, %v380_v3  ;;  %v382_v5 = vpop.permute.xlu1 %381  ;;  %v499_v54 = vld [vmem:[#allocation2 + $0x50] sm:$0xff]  ;;  %v33_v3 = vand.u32 127, %v15_v1 }
 0x2f3   :  { %454 = vst.msk [vmem:[#allocation2 + $0x68] sm:$0xff] %vm304_vm15, %v444_v4  ;;  %v827_v37 = vld [vmem:[#allocation4 + $0x48] sm:$0xff]  ;;  %v510_v50 = vpack.c.bf16 %v500_v55, %v499_v54  ;;  %v34_v4 = vshra.s32 %v3163_v2, 4  ;;  %v25_v54 = vadd.s32 72, %v3163_v2 }
 0x2f4   :  { %391 = vst.msk [vmem:[#allocation4 + $0x30] sm:$0xff] %vm304_vm15, %v382_v5  ;;  %v838_v39 = vpack.c.bf16 %v827_v37, %v826_v38  ;;  %v3166_v5 = vshra.s32 %v33_v3, 4 }
 0x2f5   :  { %592 = vmatpush.bf16.xpose.msra.mxu2 %v562_v6  ;;  %v17_v6 = vadd.s32 8, %v3163_v2 }
 0x2f6   :  { %vm51_vm2 = vcmp.eq.s32.totalorder %v34_v4, %v3166_v5 }
 0x2f9   :  { %v474_v8 = vpop.permute.xlu0 %473  ;;  %v823_v44 = vld [vmem:[#allocation4 + $0x28] sm:$0xff] }
 0x2fa   :  { %485 = vst.msk [vmem:[#allocation4 + $0x60] sm:$0xff] %vm304_vm15, %v474_v8  ;;  %v448_v10 = vpop.permute.xlu1 %447  ;;  %v502_v57 = vld [vmem:[#allocation2 + $0x68] sm:$0xff]  ;;  %v2882_v8 = vmov -1e+30  }
 0x2fb   :  { %456 = vst.msk [vmem:[#allocation2 + $0x78] sm:$0xff] %vm304_vm15, %v448_v10  ;;  %v824_v40 = vld [vmem:[#allocation4 + $0x30] sm:$0xff]  ;;  %v511_v61 = vpack.c.bf16 %v502_v57, %v501_v59  ;;  %v3171_v9 = vsel %vm51_vm2, 0.0, %v2882_v8  ;;  %v43_v57 = vshra.s32 %v25_v54, 4 }
 0x2fc   :  { %2497 = vmatmul.msk.bf16.vlgmr.msra.gmra.mxu2 %vm304_vm15, %v505_v11  ;;  %v35_v11 = vshra.s32 %v17_v6, 4 }
 0x2fd   :  { %vm60_vm10 = vcmp.eq.s32.totalorder %v43_v57, %v3166_v5 }
 0x2fe   :  { %vm52_vm3 = vcmp.eq.s32.totalorder %v35_v11, %v3166_v5 }
 0x2ff   :  { %v3180_v17 = vsel %vm52_vm3, 0.0, %v2882_v8 }
 0x301   :  { %v430_v13 = vpop.permute.xlu0 %429  ;;  %v830_v26 = vld [vmem:[#allocation4 + $0x60] sm:$0xff] }
 0x302   :  { %439 = vst.msk [vmem:[#allocation4 + $0x50] sm:$0xff] %vm304_vm15, %v430_v13  ;;  %v378_v14 = vpop.permute.xlu1 %377  ;;  %v840_v28 = vpack.c.bf16 %v831_v27, %v830_v26  ;;  %v504_v62 = vld [vmem:[#allocation2 + $0x78] sm:$0xff] }
 0x303   :  { %389 = vst.msk [vmem:[#allocation4 + $0x20] sm:$0xff] %vm304_vm15, %v378_v14  ;;  %v512_v0 = vpack.c.bf16 %v504_v62, %v503_v63  ;;  %v18_v14 = vadd.s32 16, %v3163_v2  ;;  %v3250_v63 = vsel %vm60_vm10, 0.0, %v2882_v8 }
 0x309   :  { %v828_v34 = vld [vmem:[#allocation4 + $0x50] sm:$0xff] }
 0x30a   :  { %v480_v18 = vpop.permute.xlu1 %479  ;;  %v822_v43 = vld [vmem:[#allocation4 + $0x20] sm:$0xff] }
 0x30b   :  { %488 = vst.msk [vmem:[#allocation4 + $0x78] sm:$0xff] %vm304_vm15, %v480_v18  ;;  %v836_v46 = vpack.c.bf16 %v823_v44, %v822_v43 }
 0x30c   :  { %2498 = vmatmul.msk.bf16.gmra.mxu2 %vm304_vm15, %v506_v19  ;;  %v36_v19 = vshra.s32 %v18_v14, 4 }
 0x30e   :  { %vm53_vm4 = vcmp.eq.s32.totalorder %v36_v19, %v3166_v5 }
 0x312   :  { %v432_v21 = vpop.permute.xlu1 %431  ;;  %v833_v23 = vld [vmem:[#allocation4 + $0x78] sm:$0xff] }
 0x313   :  { %440 = vst.msk [vmem:[#allocation4 + $0x58] sm:$0xff] %vm304_vm15, %v432_v21  ;;  %v841_v25 = vpack.c.bf16 %v833_v23, %v832_v22  ;;  %v19_v22 = vadd.s32 24, %v3163_v2 }
 0x315   :  { %842 = vmatpush.bf16.msra.mxu3 %v841_v25  ;;  %v3189_v25 = vsel %vm53_vm4, 0.0, %v2882_v8  ;;  %v37_v27 = vshra.s32 %v19_v22, 4 }
 0x317   :  { %vm54_vm5 = vcmp.eq.s32.totalorder %v37_v27, %v3166_v5 }
 0x319   :  { %843 = vmatpush.bf16.msra.mxu3 %v840_v28 }
 0x31a   :  { %v384_v31 = vpop.permute.xlu1 %383  ;;  %v829_v35 = vld [vmem:[#allocation4 + $0x58] sm:$0xff] }
 0x31b   :  { %392 = vst.msk [vmem:[#allocation4 + $0x38] sm:$0xff] %vm304_vm15, %v384_v31  ;;  %v839_v36 = vpack.c.bf16 %v829_v35, %v828_v34  ;;  %v3198_v31 = vsel %vm54_vm5, 0.0, %v2882_v8  ;;  %v38_v34 = vshra.s32 %v20_v29, 4  ;;  %vm911_vm5 = vcmask 130112  }
 0x31c   :  { %2499 = vmatmul.msk.bf16.gmra.mxu2 %vm304_vm15, %v507_v33 }
 0x31d   :  { %844 = vmatpush.bf16.msra.mxu3 %v839_v36  ;;  %vm55_vm6 = vcmp.eq.s32.totalorder %v38_v34, %v3166_v5  ;;  %v21_v36 = vadd.s32 40, %v3163_v2 }
 0x31e   :  { %v3207_v38 = vsel %vm55_vm6, 0.0, %v2882_v8  ;;  %vm932_vm6 = vcmask 195712  }
 0x321   :  { %845 = vmatpush.bf16.msra.mxu3 %v838_v39 }
 0x322   :  { %v825_v41 = vld [vmem:[#allocation4 + $0x38] sm:$0xff] }
 0x323   :  { %v837_v42 = vpack.c.bf16 %v825_v41, %v824_v40  ;;  %v39_v40 = vshra.s32 %v21_v36, 4  ;;  %v27_v36 = vadd.s32 88, %v3163_v2 }
 0x325   :  { %846 = vmatpush.bf16.msra.mxu3 %v837_v42  ;;  %vm56_vm7 = vcmp.eq.s32.totalorder %v39_v40, %v3166_v5 }
 0x326   :  { %v3215_v43 = vsel %vm56_vm7, 0.0, %v2882_v8  ;;  %vm953_vm7 = vcmask 261312  }
 0x329   :  { %847 = vmatpush.bf16.msra.mxu3 %v836_v46 }
 0x32c   :  { %2500 = vmatmul.msk.bf16.gmra.mxu2 %vm304_vm15, %v508_v49  ;;  %v40_v49 = vshra.s32 %v22_v47, 4 }
 0x32e   :  { %vm57_vm8 = vcmp.eq.s32.totalorder %v40_v49, %v3166_v5  ;;  %v29_v49 = vadd.s32 104, %v3163_v2 }
 0x32f   :  { %v3232_v52 = vsel %vm57_vm8, 0.0, %v2882_v8 }
 0x33c   :  { %2501 = vmatmul.msk.bf16.gmra.mxu2 %vm304_vm15, %v509_v53 }
 0x34c   :  { %2502 = vmatmul.msk.bf16.gmra.mxu2 %vm304_vm15, %v510_v50 }
 0x35c   :  { %2503 = vmatmul.msk.bf16.gmra.mxu2 %vm304_vm15, %v511_v61 }
 0x36c   :  { %2504 = vmatmul.msk.bf16.gmra.mxu2 %vm304_vm15, %v512_v0 }
 0x37f   :  { %v594_v7 = vpop.f32.mrf.mxu2 }
 0x380   :  { %v634_v10 = vmul.f32 0.35355338, %v594_v7 }
 0x382   :  { %v3174_v13 = vadd.f32 %v634_v10, %v3171_v9 }
 0x384   :  { %666 = vmax.xlane.f32.xlu0 %v3174_v13 }
 0x387   :  { %v596_v15 = vpop.f32.mrf.mxu2 }
 0x388   :  { %v635_v18 = vmul.f32 0.35355338, %v596_v15  ;;  %v24_v15 = vadd.s32 64, %v3163_v2 }
 0x38a   :  { %v3183_v21 = vadd.f32 %v635_v18, %v3180_v17  ;;  %v42_v18 = vshra.s32 %v24_v15, 4 }
 0x38c   :  { %668 = vmax.xlane.f32.xlu2 %v3183_v21  ;;  %vm59_vm11 = vcmp.eq.s32.totalorder %v42_v18, %v3166_v5 }
 0x38f   :  { %v599_v23 = vpop.f32.mrf.mxu2 }
 0x390   :  { %v636_v26 = vmul.f32 0.35355338, %v599_v23 }
 0x392   :  { %v3192_v28 = vadd.f32 %v636_v26, %v3189_v25  ;;  %v3268_v26 = vsel %vm59_vm11, 0.0, %v2882_v8 }
 0x394   :  { %670 = vmax.xlane.f32.xlu1 %v3192_v28 }
 0x397   :  { %v601_v30 = vpop.f32.mrf.mxu2 }
 0x398   :  { %v637_v33 = vmul.f32 0.35355338, %v601_v30 }
 0x39a   :  { %v3201_v35 = vadd.f32 %v637_v33, %v3198_v31 }
 0x39c   :  { %672 = vmax.xlane.f32.xlu0 %v3201_v35 }
 0x39f   :  { %v604_v37 = vpop.f32.mrf.mxu2 }
 0x3a0   :  { %v638_v39 = vmul.f32 0.35355338, %v604_v37 }
 0x3a2   :  { %v3210_v41 = vadd.f32 %v638_v39, %v3207_v38 }
 0x3a4   :  { %674 = vmax.xlane.f32.xlu2 %v3210_v41 }
 0x3a7   :  { %v606_v42 = vpop.f32.mrf.mxu2 }
 0x3a8   :  { %v639_v44 = vmul.f32 0.35355338, %v606_v42 }
 0x3aa   :  { %v3218_v46 = vadd.f32 %v639_v44, %v3215_v43  ;;  %v45_v44 = vshra.s32 %v27_v36, 4 }
 0x3ac   :  { %676 = vmax.xlane.f32.xlu0 %v3218_v46  ;;  %vm62_vm13 = vcmp.eq.s32.totalorder %v45_v44, %v3166_v5 }
 0x3ad   :  { %335 = vrot.lane.b32.xlu1 %v3029_v60, %s2883_s28  ;;  %v3292_v54 = vsel %vm62_vm13, 0.0, %v2882_v8 }
 0x3af   :  { %v609_v48 = vpop.f32.mrf.mxu2 }
 0x3b0   :  { %v640_v51 = vmul.f32 0.35355338, %v609_v48 }
 0x3b2   :  { %v3235_v53 = vadd.f32 %v640_v51, %v3232_v52  ;;  %v28_v51 = vadd.s32 96, %v3163_v2 }
 0x3b7   :  { %v611_v60 = vpop.f32.mrf.mxu2 }
 0x3b8   :  { %v641_v55 = vmul.f32 0.35355338, %v611_v60 }
 0x3bc   :  { %329 = vrot.lane.b32.xlu2 %v3011_v45, %s2883_s28  ;;  %v23_v45 = vadd.s32 56, %v3163_v2 }
 0x3c0   :  { %333 = vrot.lane.b32.xlu0 %v3023_v58, %s2883_s28  ;;  %v41_v58 = vshra.s32 %v23_v45, 4 }
 0x3c2   :  { %vm58_vm9 = vcmp.eq.s32.totalorder %v41_v58, %v3166_v5 }
 0x3c3   :  { %v3242_v50 = vsel %vm58_vm9, 0.0, %v2882_v8 }
 0x3c4   :  { %331 = vrot.lane.b32.xlu2 %v3017_v56, %s2883_s28  ;;  %v614_v56 = vpop.f32.mrf.mxu2  ;;  %v3245_v59 = vadd.f32 %v641_v55, %v3242_v50  ;;  %v47_v55 = vshra.s32 %v29_v49, 4 }
 0x3c5   :  { %v642_v23 = vmul.f32 0.35355338, %v614_v56 }
 0x3c6   :  { %vm64_vm14 = vcmp.eq.s32.totalorder %v47_v55, %v3166_v5 }
 0x3c7   :  { %v3272_v33 = vadd.f32 %v642_v23, %v3268_v26  ;;  %v3312_v15 = vsel %vm64_vm14, 0.0, %v2882_v8 }
 0x3cc   :  { %v616_v61 = vpop.f32.mrf.mxu2 }
 0x3cd   :  { %v643_v62 = vmul.f32 0.35355338, %v616_v61 }
 0x3cf   :  { %v3253_v0 = vadd.f32 %v643_v62, %v3250_v63  ;;  %v46_v62 = vshra.s32 %v28_v51, 4 }
 0x3d1   :  { %vm63_vm2 = vcmp.eq.s32.totalorder %v46_v62, %v3166_v5 }
 0x3d4   :  { %v619_v11 = vpop.f32.mrf.mxu2 }
 0x3d7   :  { %678 = vmax.xlane.f32.xlu1 %v3235_v53 }
 0x3ea   :  { %680 = vmax.xlane.f32.xlu0 %v3245_v59 }
 0x3f2   :  { %684 = vmax.xlane.f32.xlu0 %v3253_v0 }
 0x3f7   :  { %v667_v1 = vpop.xlane.xlu0 %666 }
 0x3f8   :  { %v698_v3 = vsub.f32 %v3174_v13, %v667_v1 }
 0x3fa   :  { %v714_v4 = vmul.f32 1.442695, %v698_v3 }
 0x3fc   :  { %2703 = vpow2.f32 %v714_v4 }
 0x3ff   :  { %v669_v6 = vpop.xlane.xlu2 %668 }
 0x400   :  { %v699_v7 = vsub.f32 %v3183_v21, %v669_v6  ;;  %v621_v21 = vpop.f32.mrf.mxu2 }
 0x401   :  { %v645_v60 = vmul.f32 0.35355338, %v621_v21 }
 0x402   :  { %v3258_v10 = vpop.eup %2703  ;;  %v716_v14 = vmul.f32 1.442695, %v699_v7 }
 0x403   :  { %746 = vadd.xlane.f32.xlu2 %v3258_v10  ;;  %v3303_v6 = vadd.f32 %v645_v60, %v3292_v54  ;;  %v31_v60 = vadd.s32 120, %v3163_v2 }
 0x404   :  { %2705 = vpow2.f32 %v716_v14 }
 0x407   :  { %v671_v19 = vpop.xlane.xlu1 %670 }
 0x408   :  { %v700_v13 = vsub.f32 %v3192_v28, %v671_v19  ;;  %v26_v28 = vadd.s32 80, %v3163_v2  ;;  %v624_v37 = vpop.f32.mrf.mxu2  ;;  %v3315_v19 = vsel %vm63_vm2, 0.0, %v2882_v8 }
 0x409   :  { %v646_v14 = vmul.f32 0.35355338, %v624_v37 }
 0x40a   :  { %v3262_v22 = vpop.eup %2705  ;;  %v718_v27 = vmul.f32 1.442695, %v700_v13  ;;  %v44_v40 = vshra.s32 %v26_v28, 4 }
 0x40b   :  { %748 = vadd.xlane.f32.xlu1 %v3262_v22 }
 0x40c   :  { %2707 = vpow2.f32 %v718_v27  ;;  %vm61_vm12 = vcmp.eq.s32.totalorder %v44_v40, %v3166_v5  ;;  %v3322_v27 = vadd.f32 %v646_v14, %v3315_v19 }
 0x40d   :  { %v3289_v45 = vsel %vm61_vm12, 0.0, %v2882_v8 }
 0x40f   :  { %v673_v29 = vpop.xlane.xlu0 %672 }
 0x410   :  { %v701_v30 = vsub.f32 %v3201_v35, %v673_v29  ;;  %v626_v57 = vpop.f32.mrf.mxu2 }
 0x412   :  { %v720_v34 = vmul.f32 1.442695, %v701_v30  ;;  %v3278_v47 = vpop.eup %2707 }
 0x413   :  { %682 = vmax.xlane.f32.xlu1 %v3272_v33 }
 0x414   :  { %2709 = vpow2.f32 %v720_v34 }
 0x417   :  { %v675_v39 = vpop.xlane.xlu2 %674 }
 0x418   :  { %v702_v42 = vsub.f32 %v3210_v41, %v675_v39  ;;  %v644_v41 = vmul.f32 0.35355338, %v619_v11  ;;  %v30_v11 = vadd.s32 112, %v3163_v2  ;;  %v629_v23 = vpop.f32.mrf.mxu2 }
 0x419   :  { %v648_v30 = vmul.f32 0.35355338, %v629_v23 }
 0x41a   :  { %v3280_v35 = vpop.eup %2709  ;;  %v722_v48 = vmul.f32 1.442695, %v702_v42  ;;  %v3298_v3 = vadd.f32 %v644_v41, %v3289_v45  ;;  %v48_v13 = vshra.s32 %v30_v11, 4 }
 0x41b   :  { %750 = vadd.xlane.f32.xlu1 %v3278_v47  ;;  %752 = vadd.xlane.f32.xlu0 %v3280_v35 }
 0x41c   :  { %2711 = vpow2.f32 %v722_v48  ;;  %vm65_vm3 = vcmp.eq.s32.totalorder %v48_v13, %v3166_v5 }
 0x41d   :  { %v3331_v34 = vsel %vm65_vm3, 0.0, %v2882_v8 }
 0x41e   :  { %v3334_v28 = vadd.f32 %v648_v30, %v3331_v34 }
 0x41f   :  { %v336_v58 = vpop.permute.xlu1 %335  ;;  %v330_v56 = vpop.permute.xlu2 %329 }
 0x420   :  { %344 = vst.msk [vmem:[#allocation4 + $0x18] sm:$0xff] %vm304_vm15, %v336_v58  ;;  %v677_v61 = vpop.xlane.xlu0 %676  ;;  %v49_v58 = vshra.s32 %v31_v60, 4  ;;  %v631_v55 = vpop.f32.mrf.mxu2 }
 0x421   :  { %341 = vst.msk [vmem:[#allocation4] sm:$0xff] %vm304_vm15, %v330_v56  ;;  %v703_v1 = vsub.f32 %v3218_v46, %v677_v61  ;;  %v647_v46 = vmul.f32 0.35355338, %v626_v57  ;;  %v649_v57 = vmul.f32 0.35355338, %v631_v55 }
 0x422   :  { %v3300_v4 = vpop.eup %2711  ;;  %vm66_vm4 = vcmp.eq.s32.totalorder %v49_v58, %v3166_v5 }
 0x423   :  { %v724_v7 = vmul.f32 1.442695, %v703_v1  ;;  %754 = vadd.xlane.f32.xlu2 %v3300_v4  ;;  %686 = vmax.xlane.f32.xlu1 %v3298_v3  ;;  %v3319_v21 = vadd.f32 %v647_v46, %v3312_v15  ;;  %v3345_v61 = vsel %vm66_vm4, 0.0, %v2882_v8 }
 0x424   :  { %688 = vmax.xlane.f32.xlu0 %v3303_v6  ;;  %v3348_v62 = vadd.f32 %v649_v57, %v3345_v61 }
 0x425   :  { %2713 = vpow2.f32 %v724_v7 }
 0x427   :  { %v332_v18 = vpop.permute.xlu2 %331  ;;  %v821_v39 = vld [vmem:[#allocation4 + $0x18] sm:$0xff] }
 0x428   :  { %342 = vst.msk [vmem:[#allocation4 + $0x8] sm:$0xff] %vm304_vm15, %v332_v18  ;;  %v818_v44 = vld [vmem:[#allocation4] sm:$0xff] }
 0x42b   :  { %v3324_v29 = vpop.eup %2713  ;;  %692 = vmax.xlane.f32.xlu2 %v3319_v21 }
 0x42c   :  { %756 = vadd.xlane.f32.xlu1 %v3324_v29  ;;  %690 = vmax.xlane.f32.xlu0 %v3322_v27 }
 0x42f   :  { %v819_v42 = vld [vmem:[#allocation4 + $0x8] sm:$0xff] }
 0x430   :  { %v834_v48 = vpack.c.bf16 %v819_v42, %v818_v44 }
 0x432   :  { %v334_v36 = vpop.permute.xlu0 %333 }
 0x433   :  { %343 = vst.msk [vmem:[#allocation4 + $0x10] sm:$0xff] %vm304_vm15, %v334_v36  ;;  %694 = vmax.xlane.f32.xlu2 %v3334_v28 }
 0x43a   :  { %v820_v37 = vld [vmem:[#allocation4 + $0x10] sm:$0xff] }
 0x43b   :  { %v835_v40 = vpack.c.bf16 %v821_v39, %v820_v37 }
 0x43d   :  { %848 = vmatpush.bf16.msra.mxu3 %v835_v40 }
 0x441   :  { %849 = vmatpush.bf16.msra.mxu3 %v834_v48 }
 0x44a   :  { %v679_v49 = vpop.xlane.xlu1 %678 }
 0x44b   :  { %v704_v51 = vsub.f32 %v3235_v53, %v679_v49 }
 0x44d   :  { %v726_v41 = vmul.f32 1.442695, %v704_v51 }
 0x44f   :  { %2715 = vpow2.f32 %v726_v41 }
 0x455   :  { %v3340_v56 = vpop.eup %2715 }
 0x456   :  { %758 = vadd.xlane.f32.xlu1 %v3340_v56 }
 0x45d   :  { %v681_v53 = vpop.xlane.xlu0 %680 }
 0x45e   :  { %v705_v1 = vsub.f32 %v3245_v59, %v681_v53  ;;  %696 = vmax.xlane.f32.xlu1 %v3348_v62 }
 0x460   :  { %v728_v2 = vmul.f32 1.442695, %v705_v1 }
 0x462   :  { %2717 = vpow2.f32 %v728_v2 }
 0x465   :  { %v685_v7 = vpop.xlane.xlu0 %684 }
 0x466   :  { %v707_v11 = vsub.f32 %v3253_v0, %v685_v7 }
 0x468   :  { %v3353_v46 = vpop.eup %2717  ;;  %v732_v5 = vmul.f32 1.442695, %v707_v11 }
 0x469   :  { %760 = vadd.xlane.f32.xlu0 %v3353_v46 }
 0x46a   :  { %2719 = vpow2.f32 %v732_v5 }
 0x470   :  { %v3356_v8 = vpop.eup %2719 }
 0x471   :  { %764 = vadd.xlane.f32.xlu2 %v3356_v8 }
 0x476   :  { %v747_v14 = vpop.xlane.xlu2 %746 }
 0x477   :  { %2721 = vrcp.f32 %v747_v14 }
 0x47d   :  { %v2722_v18 = vpop.eup %2721 }
 0x47e   :  { %v749_v59 = vpop.xlane.xlu1 %748  ;;  %v794_v30 = vmul.f32 %v2722_v18, %v3258_v10 }
 0x47f   :  { %2723 = vrcp.f32 %v749_v59 }
 0x485   :  { %v2724_v13 = vpop.eup %2723 }
 0x486   :  { %v683_v23 = vpop.xlane.xlu1 %682  ;;  %v795_v0 = vmul.f32 %v2724_v13, %v3262_v22 }
 0x487   :  { %v706_v36 = vsub.f32 %v3272_v33, %v683_v23 }
 0x488   :  { %v810_v37 = vpack.c.bf16 %v795_v0, %v794_v30 }
 0x489   :  { %v730_v39 = vmul.f32 1.442695, %v706_v36 }
 0x48a   :  { %850 = vmatmul.bf16.vlgmr.msra.gmra.mxu3 %v810_v37 }
 0x48b   :  { %2725 = vpow2.f32 %v730_v39 }
 0x48e   :  { %v751_v40 = vpop.xlane.xlu1 %750  ;;  %v753_v42 = vpop.xlane.xlu0 %752 }
 0x48f   :  { %2727 = vrcp.f32 %v751_v40 }
 0x490   :  { %2729 = vrcp.f32 %v753_v42 }
 0x491   :  { %v3362_v44 = vpop.eup %2725 }
 0x492   :  { %762 = vadd.xlane.f32.xlu0 %v3362_v44 }
 0x495   :  { %v2728_v48 = vpop.eup %2727 }
 0x496   :  { %v2730_v49 = vpop.eup %2729  ;;  %v755_v51 = vpop.xlane.xlu2 %754  ;;  %v796_v22 = vmul.f32 %v2728_v48, %v3278_v47 }
 0x497   :  { %v687_v10 = vpop.xlane.xlu1 %686  ;;  %v689_v41 = vpop.xlane.xlu0 %688  ;;  %v797_v60 = vmul.f32 %v2730_v49, %v3280_v35 }
 0x498   :  { %v708_v33 = vsub.f32 %v3298_v3, %v687_v10  ;;  %v709_v58 = vsub.f32 %v3303_v6, %v689_v41 }
 0x499   :  { %v811_v57 = vpack.c.bf16 %v797_v60, %v796_v22 }
 0x49a   :  { %v734_v55 = vmul.f32 1.442695, %v708_v33  ;;  %v736_v53 = vmul.f32 1.442695, %v709_v58 }
 0x49b   :  { %855 = vmatmul.bf16.gmra.mxu3 %v811_v57 }
 0x49c   :  { %2731 = vpow2.f32 %v734_v55 }
 0x49d   :  { %2733 = vpow2.f32 %v736_v53 }
 0x49e   :  { %2735 = vrcp.f32 %v755_v51  ;;  %v693_v1 = vpop.xlane.xlu2 %692 }
 0x49f   :  { %v757_v2 = vpop.xlane.xlu1 %756  ;;  %v691_v7 = vpop.xlane.xlu0 %690  ;;  %v711_v11 = vsub.f32 %v3319_v21, %v693_v1 }
 0x4a0   :  { %2737 = vrcp.f32 %v757_v2  ;;  %v710_v47 = vsub.f32 %v3322_v27, %v691_v7 }
 0x4a1   :  { %v740_v5 = vmul.f32 1.442695, %v711_v11 }
 0x4a2   :  { %v2732_v3 = vpop.eup %2731  ;;  %v738_v14 = vmul.f32 1.442695, %v710_v47 }
 0x4a3   :  { %v2734_v35 = vpop.eup %2733  ;;  %766 = vadd.xlane.f32.xlu1 %v2732_v3  ;;  %2739 = vpow2.f32 %v740_v5 }
 0x4a4   :  { %768 = vadd.xlane.f32.xlu0 %v2734_v35  ;;  %v2736_v6 = vpop.eup %2735  ;;  %2741 = vpow2.f32 %v738_v14 }
 0x4a5   :  { %v798_v23 = vmul.f32 %v2736_v6, %v3300_v4 }
 0x4a6   :  { %v2738_v59 = vpop.eup %2737  ;;  %v695_v18 = vpop.xlane.xlu2 %694 }
 0x4a7   :  { %v712_v13 = vsub.f32 %v3334_v28, %v695_v18  ;;  %v799_v21 = vmul.f32 %v2738_v59, %v3324_v29 }
 0x4a9   :  { %v2740_v30 = vpop.eup %2739  ;;  %v742_v0 = vmul.f32 1.442695, %v712_v13  ;;  %v812_v27 = vpack.c.bf16 %v799_v21, %v798_v23 }
 0x4aa   :  { %v2742_v36 = vpop.eup %2741 }
 0x4ab   :  { %772 = vadd.xlane.f32.xlu1 %v2740_v30  ;;  %2743 = vpow2.f32 %v742_v0  ;;  %860 = vmatmul.bf16.gmra.mxu3 %v812_v27 }
 0x4ac   :  { %770 = vadd.xlane.f32.xlu2 %v2742_v36 }
 0x4b1   :  { %v3374_v37 = vpop.eup %2743 }
 0x4b2   :  { %774 = vadd.xlane.f32.xlu0 %v3374_v37 }
 0x4c9   :  { %v759_v39 = vpop.xlane.xlu1 %758 }
 0x4d1   :  { %v697_v40 = vpop.xlane.xlu1 %696 }
 0x4d2   :  { %v713_v28 = vsub.f32 %v3348_v62, %v697_v40 }
 0x4d4   :  { %v744_v42 = vmul.f32 1.442695, %v713_v28 }
 0x4d6   :  { %2745 = vpow2.f32 %v744_v42 }
 0x4d7   :  { %2747 = vrcp.f32 %v759_v39 }
 0x4dc   :  { %v2746_v4 = vpop.eup %2745  ;;  %v761_v29 = vpop.xlane.xlu0 %760 }
 0x4dd   :  { %2749 = vrcp.f32 %v761_v29  ;;  %776 = vadd.xlane.f32.xlu2 %v2746_v4  ;;  %v2748_v48 = vpop.eup %2747 }
 0x4de   :  { %v800_v51 = vmul.f32 %v2748_v48, %v3340_v56 }
 0x4e3   :  { %v2750_v49 = vpop.eup %2749 }
 0x4e4   :  { %v801_v10 = vmul.f32 %v2750_v49, %v3353_v46  ;;  %v765_v33 = vpop.xlane.xlu2 %764 }
 0x4e5   :  { %2751 = vrcp.f32 %v765_v33 }
 0x4e6   :  { %v813_v22 = vpack.c.bf16 %v801_v10, %v800_v51 }
 0x4e8   :  { %865 = vmatmul.bf16.gmra.mxu3 %v813_v22 }
 0x4eb   :  { %v2752_v62 = vpop.eup %2751 }
 0x4ec   :  { %v803_v57 = vmul.f32 %v2752_v62, %v3356_v8 }
 0x505   :  { %v763_v41 = vpop.xlane.xlu0 %762 }
 0x506   :  { %2753 = vrcp.f32 %v763_v41 }
 0x50c   :  { %v2754_v60 = vpop.eup %2753 }
 0x50d   :  { %v851_v58 = vpop.f32.mrf.mxu3  ;;  %v802_v55 = vmul.f32 %v2754_v60, %v3362_v44 }
 0x50e   :  { %891 = vst.msk [vmem:[#allocation5] sm:$0xff] %vm304_vm15, %v851_v58  ;;  %v2634_v58 = vld [vmem:[%s4012_s1 + $0x38] sm:$0xff] }
 0x50f   :  { %v814_v53 = vpack.c.bf16 %v803_v57, %v802_v55  ;;  %994 = vmatpush.bf16.msrb.mxu1 %v2634_v58  ;;  %v2633_v55 = vld [vmem:[%s4012_s1 + $0x30] sm:$0xff] }
 0x511   :  { %870 = vmatmul.bf16.gmra.mxu3 %v814_v53 }
 0x513   :  { %995 = vmatpush.bf16.msrb.mxu1 %v2633_v55 }
 0x515   :  { %v853_v56 = vpop.f32.mrf.mxu3 }
 0x516   :  { %v767_v1 = vpop.xlane.xlu1 %766  ;;  %892 = vst.msk [vmem:[#allocation5 + $0x8] sm:$0xff] %vm304_vm15, %v853_v56 }
 0x517   :  { %v769_v46 = vpop.xlane.xlu0 %768  ;;  %2755 = vrcp.f32 %v767_v1 }
 0x518   :  { %2757 = vrcp.f32 %v769_v46 }
 0x51d   :  { %v2756_v2 = vpop.eup %2755 }
 0x51e   :  { %v2758_v7 = vpop.eup %2757  ;;  %v804_v11 = vmul.f32 %v2756_v2, %v2732_v3  ;;  %v856_v47 = vpop.f32.mrf.mxu3 }
 0x51f   :  { %v805_v5 = vmul.f32 %v2758_v7, %v2734_v35  ;;  %893 = vst.msk [vmem:[#allocation5 + $0x10] sm:$0xff] %vm304_vm15, %v856_v47  ;;  %v773_v44 = vpop.xlane.xlu1 %772  ;;  %v771_v8 = vpop.xlane.xlu2 %770 }
 0x520   :  { %2759 = vrcp.f32 %v773_v44 }
 0x521   :  { %v815_v14 = vpack.c.bf16 %v805_v5, %v804_v11  ;;  %2761 = vrcp.f32 %v771_v8 }
 0x523   :  { %875 = vmatmul.bf16.gmra.mxu3 %v815_v14 }
 0x525   :  { %v775_v0 = vpop.xlane.xlu0 %774 }
 0x526   :  { %v858_v6 = vpop.f32.mrf.mxu3  ;;  %v2760_v59 = vpop.eup %2759  ;;  %2763 = vrcp.f32 %v775_v0 }
 0x527   :  { %894 = vst.msk [vmem:[#allocation5 + $0x18] sm:$0xff] %vm304_vm15, %v858_v6  ;;  %v2762_v18 = vpop.eup %2761  ;;  %v807_v23 = vmul.f32 %v2760_v59, %v2740_v30 }
 0x528   :  { %v806_v13 = vmul.f32 %v2762_v18, %v2742_v36  ;;  %v2678_v18 = vld [vmem:[%s4013_s2 + $0x3] ss:$0 sm:$0xff] }
 0x52a   :  { %v816_v3 = vpack.c.bf16 %v807_v23, %v806_v13 }
 0x52c   :  { %v2764_v39 = vpop.eup %2763 }
 0x52d   :  { %v808_v28 = vmul.f32 %v2764_v39, %v3374_v37 }
 0x52e   :  { %v861_v21 = vpop.f32.mrf.mxu3 }
 0x52f   :  { %899 = vrot.lane.b32.xlu1 %v861_v21, %s2884_s29 }
 0x533   :  { %880 = vmatmul.bf16.gmra.mxu3 %v816_v3 }
 0x536   :  { %v863_v35 = vpop.f32.mrf.mxu3 }
 0x537   :  { %901 = vrot.lane.b32.xlu0 %v863_v35, %s2884_s29 }
 0x550   :  { %v777_v27 = vpop.xlane.xlu2 %776 }
 0x551   :  { %2765 = vrcp.f32 %v777_v27 }
 0x557   :  { %v2766_v40 = vpop.eup %2765 }
 0x558   :  { %v809_v42 = vmul.f32 %v2766_v40, %v2746_v4 }
 0x55a   :  { %v817_v36 = vpack.c.bf16 %v809_v42, %v808_v28 }
 0x55c   :  { %885 = vmatmul.bf16.gmra.mxu3 %v817_v36 }
 0x56b   :  { %v866_v30 = vpop.f32.mrf.mxu3 }
 0x573   :  { %v868_v29 = vpop.f32.mrf.mxu3 }
 0x594   :  { %v871_v48 = vpop.f32.mrf.mxu3 }
 0x595   :  { %920 = vrot.lane.b32.xlu2 %v871_v48, %s2885_s30 }
 0x59c   :  { %v873_v49 = vpop.f32.mrf.mxu3 }
 0x59d   :  { %922 = vrot.lane.b32.xlu0 %v873_v49, %s2885_s30 }
 0x5a1   :  { %v900_v51 = vpop.permute.xlu1 %899 }
 0x5a2   :  { %912 = vst.msk [vmem:[#allocation5] sm:$0xff] %vm911_vm5, %v900_v51 }
 0x5a5   :  { %903 = vrot.lane.b32.xlu0 %v866_v30, %s2884_s29 }
 0x5a6   :  { %v876_v10 = vpop.f32.mrf.mxu3 }
 0x5a9   :  { %v902_v37 = vpop.permute.xlu0 %901 }
 0x5aa   :  { %913 = vst.msk [vmem:[#allocation5 + $0x8] sm:$0xff] %vm911_vm5, %v902_v37 }
 0x5ae   :  { %v878_v4 = vpop.f32.mrf.mxu3 }
 0x5af   :  { %926 = vrot.lane.b32.xlu0 %v878_v4, %s2885_s30 }
 0x5b6   :  { %v881_v22 = vpop.f32.mrf.mxu3 }
 0x5b7   :  { %941 = vrot.lane.b32.xlu1 %v881_v22, %s2886_s4 }
 0x5be   :  { %v883_v33 = vpop.f32.mrf.mxu3 }
 0x5bf   :  { %905 = vrot.lane.b32.xlu1 %v868_v29, %s2884_s29  ;;  %943 = vrot.lane.b32.xlu2 %v883_v33, %s2886_s4 }
 0x5c7   :  { %924 = vrot.lane.b32.xlu2 %v876_v10, %s2885_s30 }
 0x5df   :  { %v886_v41 = vpop.f32.mrf.mxu3 }
 0x5e0   :  { %945 = vrot.lane.b32.xlu1 %v886_v41, %s2886_s4 }
 0x5e7   :  { %v888_v62 = vpop.f32.mrf.mxu3 }
 0x5e8   :  { %947 = vrot.lane.b32.xlu2 %v888_v62, %s2886_s4 }
 0x5ef   :  { %v921_v60 = vpop.permute.xlu2 %920 }
 0x5f0   :  { %933 = vst.msk [vmem:[#allocation5] sm:$0xff] %vm932_vm6, %v921_v60 }
 0x60f   :  { %v923_v57 = vpop.permute.xlu0 %922 }
 0x610   :  { %934 = vst.msk [vmem:[#allocation5 + $0x8] sm:$0xff] %vm932_vm6, %v923_v57 }
 0x617   :  { %v904_v53 = vpop.permute.xlu0 %903 }
 0x618   :  { %914 = vst.msk [vmem:[#allocation5 + $0x10] sm:$0xff] %vm911_vm5, %v904_v53 }
 0x619   :  { %v944_v56 = vpop.permute.xlu2 %943 }
 0x61a   :  { %955 = vst.msk [vmem:[#allocation5 + $0x8] sm:$0xff] %vm953_vm7, %v944_v56 }
 0x621   :  { %v925_v1 = vpop.permute.xlu2 %924  ;;  %v959_v11 = vld [vmem:[#allocation5 + $0x8] sm:$0xff]  ;;  %v927_v47 = vpop.permute.xlu0 %926 }
 0x622   :  { %935 = vst.msk [vmem:[#allocation5 + $0x10] sm:$0xff] %vm932_vm6, %v925_v1 }
 0x629   :  { %v942_v46 = vpop.permute.xlu1 %941 }
 0x62a   :  { %954 = vst.msk [vmem:[#allocation5] sm:$0xff] %vm953_vm7, %v942_v46 }
 0x631   :  { %v906_v2 = vpop.permute.xlu1 %905  ;;  %v958_v7 = vld [vmem:[#allocation5] sm:$0xff] }
 0x632   :  { %915 = vst.msk [vmem:[#allocation5 + $0x18] sm:$0xff] %vm911_vm5, %v906_v2  ;;  %v962_v5 = vpack.c.bf16 %v959_v11, %v958_v7  ;;  %v2636_v2 = vld [vmem:[%s4012_s1 + $0x48] sm:$0xff] }
 0x633   :  { %936 = vst.msk [vmem:[#allocation5 + $0x18] sm:$0xff] %vm932_vm6, %v927_v47  ;;  %1143 = vmatpush.bf16.msra.mxu0 %v2636_v2 }
 0x634   :  { %2513 = vmatmul.msk.bf16.vlgmr.msrb.gmra.mxu1 %vm153_vm1, %v962_v5  ;;  %v2635_v5 = vld [vmem:[%s4012_s1 + $0x40] sm:$0xff] }
 0x637   :  { %1144 = vmatpush.bf16.msra.mxu0 %v2635_v5 }
 0x642   :  { %v948_v44 = vpop.permute.xlu2 %947 }
 0x643   :  { %957 = vst.msk [vmem:[#allocation5 + $0x18] sm:$0xff] %vm953_vm7, %v948_v44 }
 0x64a   :  { %v961_v6 = vld [vmem:[#allocation5 + $0x18] sm:$0xff] }
 0x652   :  { %v946_v8 = vpop.permute.xlu1 %945 }
 0x653   :  { %956 = vst.msk [vmem:[#allocation5 + $0x10] sm:$0xff] %vm953_vm7, %v946_v8 }
 0x65a   :  { %v960_v14 = vld [vmem:[#allocation5 + $0x10] sm:$0xff] }
 0x65b   :  { %v963_v59 = vpack.c.bf16 %v961_v6, %v960_v14 }
 0x65d   :  { %2514 = vmatmul.msk.bf16.gmra.mxu1 %vm153_vm1, %v963_v59 }
 0x6b1   :  { %v997_v13 = vpop.f32.mrf.mxu1 }
 0x6b2   :  { %v998_v23 = vadd.f32 %v2678_v18, %v997_v13 }
 0x6b4   :  { %v3423_v21 = vadd.f32 %v998_v23, %v2936_v12 }
 0x6b6   :  { %v1013_v3 = vsel %vm153_vm1, %v3423_v21, 0.0 }
 0x6b7   :  { %1014 = vadd.xlane.f32.xlu0 %v1013_v3 }
 0x6b9   :  { %v999_v35 = vpop.f32.mrf.mxu1 }
 0x6ba   :  { %v1000_v0 = vadd.f32 %v2678_v18, %v999_v35 }
 0x6bc   :  { %v3428_v27 = vadd.f32 %v1000_v0, %v2943_v16 }
 0x6be   :  { %v1016_v39 = vsel %vm153_vm1, %v3428_v27, 0.0 }
 0x6bf   :  { %1017 = vadd.xlane.f32.xlu1 %v1016_v39 }
 0x6da   :  { %v1002_v40 = vpop.f32.mrf.mxu1 }
 0x6db   :  { %v1003_v28 = vadd.f32 %v2678_v18, %v1002_v40 }
 0x6dd   :  { %v3433_v42 = vadd.f32 %v1003_v28, %v2950_v20 }
 0x6df   :  { %v1019_v12 = vsel %vm153_vm1, %v3433_v42, 0.0 }
 0x6e0   :  { %1020 = vadd.xlane.f32.xlu2 %v1019_v12 }
 0x6e2   :  { %v1004_v36 = vpop.f32.mrf.mxu1 }
 0x6e3   :  { %v1005_v30 = vadd.f32 %v2678_v18, %v1004_v36  ;;  %v2679_v36 = vld [vmem:[%s4013_s2 + $0x4] ss:$0 sm:$0xff] }
 0x6e5   :  { %v3438_v29 = vadd.f32 %v1005_v30, %v2957_v24 }
 0x6e7   :  { %v1022_v16 = vsel %vm153_vm1, %v3438_v29, 0.0 }
 0x6e8   :  { %1023 = vadd.xlane.f32.xlu0 %v1022_v16 }
 0x72a   :  { %v1015_v48 = vpop.xlane.xlu0 %1014 }
 0x72b   :  { %v1025_v49 = vmul.f32 %v1015_v48, %v2961_v32 }
 0x72d   :  { %v1029_v51 = vsub.f32 %v3423_v21, %v1025_v49  ;;  %v2680_v49 = vld [vmem:[%s4013_s2 + $0x5] ss:$0 sm:$0xff] }
 0x72f   :  { %v1033_v20 = vmul.f32 %v1029_v51, %v1029_v51 }
 0x731   :  { %v1037_v10 = vsel %vm153_vm1, %v1033_v20, 0.0 }
 0x732   :  { %1038 = vadd.xlane.f32.xlu1 %v1037_v10  ;;  %v1018_v37 = vpop.xlane.xlu1 %1017 }
 0x733   :  { %v1026_v4 = vmul.f32 %v1018_v37, %v2961_v32 }
 0x735   :  { %v1030_v22 = vsub.f32 %v3428_v27, %v1026_v4 }
 0x737   :  { %v1034_v24 = vmul.f32 %v1030_v22, %v1030_v22 }
 0x739   :  { %v1040_v33 = vsel %vm153_vm1, %v1034_v24, 0.0 }
 0x73a   :  { %1041 = vadd.xlane.f32.xlu2 %v1040_v33 }
 0x753   :  { %v1021_v41 = vpop.xlane.xlu2 %1020 }
 0x754   :  { %v1027_v62 = vmul.f32 %v1021_v41, %v2961_v32 }
 0x756   :  { %v3450_v60 = vsub.f32 %v3433_v42, %v1027_v62 }
 0x758   :  { %v1035_v58 = vmul.f32 %v3450_v60, %v3450_v60 }
 0x75a   :  { %v1043_v55 = vsel %vm153_vm1, %v1035_v58, 0.0 }
 0x75b   :  { %v1024_v57 = vpop.xlane.xlu0 %1023  ;;  %1044 = vadd.xlane.f32.xlu0 %v1043_v55 }
 0x75c   :  { %v1028_v53 = vmul.f32 %v1024_v57, %v2961_v32 }
 0x75e   :  { %v3457_v56 = vsub.f32 %v3438_v29, %v1028_v53 }
 0x760   :  { %v1036_v1 = vmul.f32 %v3457_v56, %v3457_v56 }
 0x762   :  { %v1046_v46 = vsel %vm153_vm1, %v1036_v1, 0.0 }
 0x763   :  { %1047 = vadd.xlane.f32.xlu1 %v1046_v46 }
 0x7a5   :  { %v1039_v7 = vpop.xlane.xlu1 %1038 }
 0x7a6   :  { %v1049_v11 = vmul.f32 %v1039_v7, %v2961_v32 }
 0x7a8   :  { %v1053_v47 = vadd.f32 1e-05, %v1049_v11 }
 0x7aa   :  { %2767 = vrsqrt.f32 %v1053_v47  ;;  %vm1063_vm9 = vweird.f32 %v1053_v47 }
 0x7ad   :  { %v1042_v44 = vpop.xlane.xlu2 %1041 }
 0x7ae   :  { %v1050_v8 = vmul.f32 %v1042_v44, %v2961_v32 }
 0x7b0   :  { %v2768_v14 = vpop.eup %2767  ;;  %v1054_v6 = vadd.f32 1e-05, %v1050_v8 }
 0x7b1   :  { %v1058_v59 = vmul.f32 %v2768_v14, %v1053_v47  ;;  %vm1064_vm8 = vweird.f32 %v2768_v14 }
 0x7b2   :  { %2769 = vrsqrt.f32 %v1054_v6  ;;  %vm1065_vm10 = vmor %vm1063_vm9, %vm1064_vm8  ;;  %vm1073_vm12 = vweird.f32 %v1054_v6 }
 0x7b3   :  { %v1059_v18 = vmul.f32 %v2768_v14, %v1058_v59 }
 0x7b5   :  { %v1060_v13 = vmul.f32 0.5, %v1059_v18 }
 0x7b7   :  { %v1061_v23 = vsub.f32 1.5, %v1060_v13 }
 0x7b8   :  { %v2770_v3 = vpop.eup %2769 }
 0x7b9   :  { %v1062_v35 = vmul.f32 %v2768_v14, %v1061_v23  ;;  %v1068_v0 = vmul.f32 %v2770_v3, %v1054_v6  ;;  %vm1074_vm11 = vweird.f32 %v2770_v3 }
 0x7ba   :  { %vm1075_vm13 = vmor %vm1073_vm12, %vm1074_vm11 }
 0x7bb   :  { %v1069_v39 = vmul.f32 %v2770_v3, %v1068_v0  ;;  %v1066_v40 = vsel %vm1065_vm10, %v2768_v14, %v1062_v35 }
 0x7bc   :  { %v1097_v30 = vmul.f32 %v1066_v40, %v1029_v51  ;;  %v2640_v40 = vld [vmem:[%s4012_s1 + $0x68] sm:$0xff] }
 0x7bd   :  { %v1070_v28 = vmul.f32 0.5, %v1069_v39  ;;  %1238 = vmatpush.bf16.msra.mxu1 %v2640_v40 }
 0x7be   :  { %v1102_v20 = vmul.f32 %v2679_v36, %v1097_v30 }
 0x7bf   :  { %v1071_v12 = vsub.f32 1.5, %v1070_v28  ;;  %v2637_v28 = vld [vmem:[%s4012_s1 + $0x50] sm:$0xff] }
 0x7c0   :  { %v1107_v4 = vadd.f32 %v2680_v49, %v1102_v20 }
 0x7c1   :  { %v1072_v16 = vmul.f32 %v2770_v3, %v1071_v12  ;;  %v2681_v12 = vld [vmem:[%s4013_s2 + $0x6] ss:$0 sm:$0xff] }
 0x7c3   :  { %v1076_v48 = vsel %vm1075_vm13, %v2770_v3, %v1072_v16 }
 0x7c4   :  { %v1098_v10 = vmul.f32 %v1076_v48, %v1030_v22 }
 0x7c6   :  { %v1103_v37 = vmul.f32 %v2679_v36, %v1098_v10 }
 0x7c8   :  { %v1108_v24 = vadd.f32 %v2680_v49, %v1103_v37 }
 0x7ca   :  { %v1111_v33 = vpack.c.bf16 %v1108_v24, %v1107_v4 }
 0x7cc   :  { %2523 = vmatmul.msk.bf16.vlgmr.msra.gmra.mxu0 %vm153_vm1, %v1111_v33 }
 0x7ce   :  { %v1045_v41 = vpop.xlane.xlu0 %1044 }
 0x7cf   :  { %v1051_v62 = vmul.f32 %v1045_v41, %v2961_v32 }
 0x7d1   :  { %v1055_v51 = vadd.f32 1e-05, %v1051_v62 }
 0x7d3   :  { %2771 = vrsqrt.f32 %v1055_v51  ;;  %vm1083_vm2 = vweird.f32 %v1055_v51 }
 0x7d6   :  { %v1048_v58 = vpop.xlane.xlu1 %1047 }
 0x7d7   :  { %v1052_v55 = vmul.f32 %v1048_v58, %v2961_v32 }
 0x7d9   :  { %v2772_v57 = vpop.eup %2771  ;;  %v1056_v53 = vadd.f32 1e-05, %v1052_v55 }
 0x7da   :  { %v1078_v1 = vmul.f32 %v2772_v57, %v1055_v51  ;;  %vm1084_vm14 = vweird.f32 %v2772_v57 }
 0x7db   :  { %2773 = vrsqrt.f32 %v1056_v53  ;;  %vm1085_vm3 = vmor %vm1083_vm2, %vm1084_vm14  ;;  %vm1093_vm8 = vweird.f32 %v1056_v53 }
 0x7dc   :  { %v1079_v46 = vmul.f32 %v2772_v57, %v1078_v1 }
 0x7de   :  { %v1080_v22 = vmul.f32 0.5, %v1079_v46 }
 0x7e0   :  { %v1081_v2 = vsub.f32 1.5, %v1080_v22 }
 0x7e1   :  { %v2774_v7 = vpop.eup %2773 }
 0x7e2   :  { %v1082_v11 = vmul.f32 %v2772_v57, %v1081_v2  ;;  %v1088_v47 = vmul.f32 %v2774_v7, %v1056_v53  ;;  %vm1094_vm4 = vweird.f32 %v2774_v7 }
 0x7e3   :  { %vm1095_vm9 = vmor %vm1093_vm8, %vm1094_vm4 }
 0x7e4   :  { %v1089_v5 = vmul.f32 %v2774_v7, %v1088_v47  ;;  %v1086_v44 = vsel %vm1085_vm3, %v2772_v57, %v1082_v11 }
 0x7e5   :  { %v1099_v6 = vmul.f32 %v1086_v44, %v3450_v60  ;;  %v2639_v60 = vld [vmem:[%s4012_s1 + $0x60] sm:$0xff] }
 0x7e6   :  { %v1090_v8 = vmul.f32 0.5, %v1089_v5  ;;  %1239 = vmatpush.bf16.msra.mxu1 %v2639_v60 }
 0x7e7   :  { %v1104_v23 = vmul.f32 %v2679_v36, %v1099_v6 }
 0x7e8   :  { %v1091_v14 = vsub.f32 1.5, %v1090_v8 }
 0x7e9   :  { %v1109_v35 = vadd.f32 %v2680_v49, %v1104_v23 }
 0x7ea   :  { %v1092_v59 = vmul.f32 %v2774_v7, %v1091_v14 }
 0x7ec   :  { %v1096_v18 = vsel %vm1095_vm9, %v2774_v7, %v1092_v59 }
 0x7ed   :  { %v1100_v13 = vmul.f32 %v1096_v18, %v3457_v56  ;;  %v2638_v56 = vld [vmem:[%s4012_s1 + $0x58] sm:$0xff] }
 0x7ee   :  { %1240 = vmatpush.bf16.msra.mxu1 %v2638_v56 }
 0x7ef   :  { %v1105_v3 = vmul.f32 %v2679_v36, %v1100_v13 }
 0x7f1   :  { %v1110_v0 = vadd.f32 %v2680_v49, %v1105_v3 }
 0x7f2   :  { %1241 = vmatpush.bf16.msra.mxu1 %v2637_v28 }
 0x7f3   :  { %v1112_v39 = vpack.c.bf16 %v1110_v0, %v1109_v35 }
 0x7f5   :  { %2524 = vmatmul.msk.bf16.gmra.mxu0 %vm153_vm1, %v1112_v39 }
 0x849   :  { %v1146_v36 = vpop.f32.mrf.mxu0 }
 0x84a   :  { %v1147_v30 = vadd.f32 %v2681_v12, %v1146_v36 }
 0x84c   :  { %v1160_v16 = vmul.f32 0.044715, %v1147_v30  ;;  %v1156_v53 = vmul.f32 0.5, %v1147_v30 }
 0x84e   :  { %v1164_v48 = vmul.f32 %v1160_v16, %v1147_v30 }
 0x850   :  { %v1168_v49 = vmul.f32 %v1164_v48, %v1147_v30 }
 0x851   :  { %v1148_v20 = vpop.f32.mrf.mxu0 }
 0x852   :  { %v1172_v10 = vadd.f32 %v1168_v49, %v1147_v30  ;;  %v1149_v37 = vadd.f32 %v2681_v12, %v1148_v20 }
 0x854   :  { %v1161_v4 = vmul.f32 0.044715, %v1149_v37  ;;  %v1176_v24 = vmul.f32 0.7978846, %v1172_v10  ;;  %v1157_v1 = vmul.f32 0.5, %v1149_v37 }
 0x856   :  { %v1165_v33 = vmul.f32 %v1161_v4, %v1149_v37  ;;  %2775 = vtanh.f32 %v1176_v24 }
 0x858   :  { %v1169_v41 = vmul.f32 %v1165_v33, %v1149_v37 }
 0x85a   :  { %v1173_v62 = vadd.f32 %v1169_v41, %v1149_v37 }
 0x85c   :  { %v1177_v51 = vmul.f32 0.7978846, %v1173_v62  ;;  %v2776_v58 = vpop.eup %2775 }
 0x85d   :  { %v1184_v55 = vadd.f32 1.0, %v2776_v58 }
 0x85e   :  { %2777 = vtanh.f32 %v1177_v51 }
 0x85f   :  { %v1188_v22 = vmul.f32 %v1184_v55, %v1156_v53 }
 0x864   :  { %v2778_v57 = vpop.eup %2777 }
 0x865   :  { %v1185_v46 = vadd.f32 1.0, %v2778_v57 }
 0x867   :  { %v1189_v2 = vmul.f32 %v1185_v46, %v1157_v1 }
 0x869   :  { %v1192_v7 = vpack.c.bf16 %v1189_v2, %v1188_v22 }
 0x86b   :  { %2541 = vmatmul.msk.bf16.vlgmr.msra.gmra.mxu1 %vm125_vm0, %v1192_v7 }
 0x872   :  { %v1151_v11 = vpop.f32.mrf.mxu0 }
 0x873   :  { %v1152_v47 = vadd.f32 %v2681_v12, %v1151_v11 }
 0x875   :  { %v1162_v5 = vmul.f32 0.044715, %v1152_v47  ;;  %v1158_v56 = vmul.f32 0.5, %v1152_v47 }
 0x877   :  { %v1166_v44 = vmul.f32 %v1162_v5, %v1152_v47 }
 0x879   :  { %v1170_v8 = vmul.f32 %v1166_v44, %v1152_v47 }
 0x87a   :  { %v1153_v14 = vpop.f32.mrf.mxu0 }
 0x87b   :  { %v1154_v6 = vadd.f32 %v2681_v12, %v1153_v14  ;;  %v1174_v59 = vadd.f32 %v1170_v8, %v1152_v47  ;;  %v2682_v12 = vld [vmem:[%s4013_s2 + $0x7] ss:$0 sm:$0xff] }
 0x87d   :  { %v1163_v18 = vmul.f32 0.044715, %v1154_v6  ;;  %v1178_v23 = vmul.f32 0.7978846, %v1174_v59  ;;  %v1159_v28 = vmul.f32 0.5, %v1154_v6 }
 0x87f   :  { %v1167_v13 = vmul.f32 %v1163_v18, %v1154_v6  ;;  %2779 = vtanh.f32 %v1178_v23 }
 0x881   :  { %v1171_v3 = vmul.f32 %v1167_v13, %v1154_v6 }
 0x883   :  { %v1175_v35 = vadd.f32 %v1171_v3, %v1154_v6 }
 0x885   :  { %v1179_v0 = vmul.f32 0.7978846, %v1175_v35  ;;  %v2780_v39 = vpop.eup %2779 }
 0x886   :  { %v1186_v40 = vadd.f32 1.0, %v2780_v39 }
 0x887   :  { %2781 = vtanh.f32 %v1179_v0  ;;  %v2642_v0 = vld [vmem:[%s4012_s1 + $0x78] sm:$0xff] }
 0x888   :  { %v1190_v30 = vmul.f32 %v1186_v40, %v1158_v56  ;;  %1389 = vmatpush.bf16.msrb.mxu0 %v2642_v0  ;;  %v2641_v56 = vld [vmem:[%s4012_s1 + $0x70] sm:$0xff] }
 0x88c   :  { %1390 = vmatpush.bf16.msrb.mxu0 %v2641_v56 }
 0x88d   :  { %v2782_v60 = vpop.eup %2781 }
 0x88e   :  { %v1187_v36 = vadd.f32 1.0, %v2782_v60 }
 0x890   :  { %v1191_v16 = vmul.f32 %v1187_v36, %v1159_v28 }
 0x892   :  { %v1193_v48 = vpack.c.bf16 %v1191_v16, %v1190_v30 }
 0x894   :  { %2542 = vmatmul.msk.bf16.gmra.mxu1 %vm125_vm0, %v1193_v48 }
 0x8e8   :  { %v1243_v49 = vpop.f32.mrf.mxu1 }
 0x8e9   :  { %v1244_v20 = vadd.f32 %v2682_v12, %v1243_v49 }
 0x8eb   :  { %v3503_v10 = vadd.f32 %v1244_v20, %v3423_v21 }
 0x8ed   :  { %v1259_v37 = vsel %vm153_vm1, %v3503_v10, 0.0 }
 0x8ee   :  { %1260 = vadd.xlane.f32.xlu2 %v1259_v37 }
 0x8f0   :  { %v1245_v4 = vpop.f32.mrf.mxu1 }
 0x8f1   :  { %v1246_v24 = vadd.f32 %v2682_v12, %v1245_v4 }
 0x8f3   :  { %v3508_v33 = vadd.f32 %v1246_v24, %v3428_v27 }
 0x8f5   :  { %v1262_v41 = vsel %vm153_vm1, %v3508_v33, 0.0 }
 0x8f6   :  { %1263 = vadd.xlane.f32.xlu0 %v1262_v41 }
 0x911   :  { %v1248_v62 = vpop.f32.mrf.mxu1 }
 0x912   :  { %v1249_v51 = vadd.f32 %v2682_v12, %v1248_v62 }
 0x914   :  { %v3513_v58 = vadd.f32 %v1249_v51, %v3433_v42 }
 0x916   :  { %v1265_v21 = vsel %vm153_vm1, %v3513_v58, 0.0 }
 0x917   :  { %1266 = vadd.xlane.f32.xlu1 %v1265_v21 }
 0x919   :  { %v1250_v55 = vpop.f32.mrf.mxu1 }
 0x91a   :  { %v1251_v57 = vadd.f32 %v2682_v12, %v1250_v55  ;;  %v2683_v55 = vld [vmem:[%s4013_s2 + $0x8] ss:$0 sm:$0xff] }
 0x91c   :  { %v3518_v53 = vadd.f32 %v1251_v57, %v3438_v29 }
 0x91e   :  { %v1268_v27 = vsel %vm153_vm1, %v3518_v53, 0.0 }
 0x91f   :  { %1269 = vadd.xlane.f32.xlu2 %v1268_v27 }
 0x961   :  { %v1261_v1 = vpop.xlane.xlu2 %1260 }
 0x962   :  { %v1271_v46 = vmul.f32 %v1261_v1, %v2961_v32 }
 0x964   :  { %v1275_v22 = vsub.f32 %v3503_v10, %v1271_v46  ;;  %v2684_v46 = vld [vmem:[%s4013_s2 + $0x9] ss:$0 sm:$0xff] }
 0x966   :  { %v1279_v42 = vmul.f32 %v1275_v22, %v1275_v22 }
 0x968   :  { %v1283_v2 = vsel %vm153_vm1, %v1279_v42, 0.0 }
 0x969   :  { %v1264_v7 = vpop.xlane.xlu0 %1263  ;;  %1284 = vadd.xlane.f32.xlu0 %v1283_v2 }
 0x96a   :  { %v1272_v11 = vmul.f32 %v1264_v7, %v2961_v32 }
 0x96c   :  { %v1276_v47 = vsub.f32 %v3508_v33, %v1272_v11 }
 0x96e   :  { %v1280_v29 = vmul.f32 %v1276_v47, %v1276_v47 }
 0x970   :  { %v1286_v5 = vsel %vm153_vm1, %v1280_v29, 0.0 }
 0x971   :  { %1287 = vadd.xlane.f32.xlu1 %v1286_v5 }
 0x98a   :  { %v1267_v44 = vpop.xlane.xlu1 %1266 }
 0x98b   :  { %v1273_v8 = vmul.f32 %v1267_v44, %v2961_v32 }
 0x98d   :  { %v3530_v14 = vsub.f32 %v3513_v58, %v1273_v8 }
 0x98f   :  { %v1281_v6 = vmul.f32 %v3530_v14, %v3530_v14 }
 0x991   :  { %v1289_v59 = vsel %vm153_vm1, %v1281_v6, 0.0 }
 0x992   :  { %v1270_v18 = vpop.xlane.xlu2 %1269  ;;  %1290 = vadd.xlane.f32.xlu2 %v1289_v59 }
 0x993   :  { %v1274_v13 = vmul.f32 %v1270_v18, %v2961_v32 }
 0x995   :  { %v3537_v23 = vsub.f32 %v3518_v53, %v1274_v13 }
 0x997   :  { %v1282_v3 = vmul.f32 %v3537_v23, %v3537_v23 }
 0x999   :  { %v1292_v35 = vsel %vm153_vm1, %v1282_v3, 0.0 }
 0x99a   :  { %1293 = vadd.xlane.f32.xlu0 %v1292_v35 }
 0x9dc   :  { %v1285_v39 = vpop.xlane.xlu0 %1284 }
 0x9dd   :  { %v1295_v40 = vmul.f32 %v1285_v39, %v2961_v32 }
 0x9df   :  { %v1299_v60 = vadd.f32 1e-05, %v1295_v40 }
 0x9e1   :  { %2783 = vrsqrt.f32 %v1299_v60  ;;  %vm1309_vm11 = vweird.f32 %v1299_v60 }
 0x9e4   :  { %v1288_v28 = vpop.xlane.xlu1 %1287 }
 0x9e5   :  { %v1296_v36 = vmul.f32 %v1288_v28, %v2961_v32 }
 0x9e7   :  { %v2784_v30 = vpop.eup %2783  ;;  %v1300_v16 = vadd.f32 1e-05, %v1296_v36 }
 0x9e8   :  { %v1304_v48 = vmul.f32 %v2784_v30, %v1299_v60  ;;  %vm1310_vm10 = vweird.f32 %v2784_v30 }
 0x9e9   :  { %2785 = vrsqrt.f32 %v1300_v16  ;;  %vm1311_vm12 = vmor %vm1309_vm11, %vm1310_vm10  ;;  %vm1319_vm14 = vweird.f32 %v1300_v16 }
 0x9ea   :  { %v1305_v12 = vmul.f32 %v2784_v30, %v1304_v48 }
 0x9ec   :  { %v1306_v49 = vmul.f32 0.5, %v1305_v12 }
 0x9ee   :  { %v1307_v20 = vsub.f32 1.5, %v1306_v49 }
 0x9ef   :  { %v2786_v37 = vpop.eup %2785 }
 0x9f0   :  { %v1308_v4 = vmul.f32 %v2784_v30, %v1307_v20  ;;  %v1314_v24 = vmul.f32 %v2786_v37, %v1300_v16  ;;  %vm1320_vm13 = vweird.f32 %v2786_v37 }
 0x9f1   :  { %vm1321_vm2 = vmor %vm1319_vm14, %vm1320_vm13 }
 0x9f2   :  { %v1315_v41 = vmul.f32 %v2786_v37, %v1314_v24  ;;  %v1312_v62 = vsel %vm1311_vm12, %v2784_v30, %v1308_v4 }
 0x9f3   :  { %v1343_v57 = vmul.f32 %v1312_v62, %v1275_v22  ;;  %v2685_v62 = vld [vmem:[%s4013_s2 + $0xa] ss:$0 sm:$0xff] }
 0x9f4   :  { %v1316_v51 = vmul.f32 0.5, %v1315_v41 }
 0x9f5   :  { %v1348_v42 = vmul.f32 %v2683_v55, %v1343_v57 }
 0x9f6   :  { %v1317_v21 = vsub.f32 1.5, %v1316_v51 }
 0x9f7   :  { %v1353_v11 = vadd.f32 %v2684_v46, %v1348_v42 }
 0x9f8   :  { %v1318_v27 = vmul.f32 %v2786_v37, %v1317_v21 }
 0x9fa   :  { %v1322_v1 = vsel %vm1321_vm2, %v2786_v37, %v1318_v27 }
 0x9fb   :  { %v1344_v2 = vmul.f32 %v1322_v1, %v1276_v47 }
 0x9fd   :  { %v1349_v7 = vmul.f32 %v2683_v55, %v1344_v2 }
 0x9ff   :  { %v1354_v29 = vadd.f32 %v2684_v46, %v1349_v7 }
 0xa01   :  { %v1357_v5 = vpack.c.bf16 %v1354_v29, %v1353_v11 }
 0xa03   :  { %2551 = vmatmul.msk.bf16.vlgmr.msrb.gmra.mxu0 %vm153_vm1, %v1357_v5 }
 0xa05   :  { %v1291_v44 = vpop.xlane.xlu2 %1290 }
 0xa06   :  { %v1297_v8 = vmul.f32 %v1291_v44, %v2961_v32 }
 0xa08   :  { %v1301_v22 = vadd.f32 1e-05, %v1297_v8 }
 0xa0a   :  { %2787 = vrsqrt.f32 %v1301_v22  ;;  %vm1329_vm4 = vweird.f32 %v1301_v22 }
 0xa0d   :  { %v1294_v6 = vpop.xlane.xlu0 %1293 }
 0xa0e   :  { %v1298_v59 = vmul.f32 %v1294_v6, %v2961_v32 }
 0xa10   :  { %v2788_v18 = vpop.eup %2787  ;;  %v1302_v13 = vadd.f32 1e-05, %v1298_v59 }
 0xa11   :  { %v1324_v3 = vmul.f32 %v2788_v18, %v1301_v22  ;;  %vm1330_vm3 = vweird.f32 %v2788_v18 }
 0xa12   :  { %2789 = vrsqrt.f32 %v1302_v13  ;;  %vm1331_vm8 = vmor %vm1329_vm4, %vm1330_vm3  ;;  %vm1339_vm10 = vweird.f32 %v1302_v13 }
 0xa13   :  { %v1325_v35 = vmul.f32 %v2788_v18, %v1324_v3 }
 0xa15   :  { %v1326_v47 = vmul.f32 0.5, %v1325_v35 }
 0xa17   :  { %v1327_v0 = vsub.f32 1.5, %v1326_v47 }
 0xa18   :  { %v2790_v39 = vpop.eup %2789 }
 0xa19   :  { %v1328_v40 = vmul.f32 %v2788_v18, %v1327_v0  ;;  %v1334_v60 = vmul.f32 %v2790_v39, %v1302_v13  ;;  %vm1340_vm9 = vweird.f32 %v2790_v39 }
 0xa1a   :  { %vm1341_vm11 = vmor %vm1339_vm10, %vm1340_vm9 }
 0xa1b   :  { %v1335_v56 = vmul.f32 %v2790_v39, %v1334_v60  ;;  %v1332_v28 = vsel %vm1331_vm8, %v2788_v18, %v1328_v40 }
 0xa1c   :  { %v1345_v16 = vmul.f32 %v1332_v28, %v3530_v14 }
 0xa1d   :  { %v1336_v36 = vmul.f32 0.5, %v1335_v56 }
 0xa1e   :  { %v1350_v20 = vmul.f32 %v2683_v55, %v1345_v16 }
 0xa1f   :  { %v1337_v30 = vsub.f32 1.5, %v1336_v36 }
 0xa20   :  { %v1355_v4 = vadd.f32 %v2684_v46, %v1350_v20 }
 0xa21   :  { %v1338_v48 = vmul.f32 %v2790_v39, %v1337_v30 }
 0xa23   :  { %v1342_v12 = vsel %vm1341_vm11, %v2790_v39, %v1338_v48 }
 0xa24   :  { %v1346_v49 = vmul.f32 %v1342_v12, %v3537_v23 }
 0xa26   :  { %v1351_v37 = vmul.f32 %v2683_v55, %v1346_v49 }
 0xa28   :  { %v1356_v24 = vadd.f32 %v2684_v46, %v1351_v37 }
 0xa2a   :  { %v1358_v41 = vpack.c.bf16 %v1356_v24, %v1355_v4 }
 0xa2c   :  { %2552 = vmatmul.msk.bf16.gmra.mxu0 %vm153_vm1, %v1358_v41 }
 0xa80   :  { %v1392_v51 = vpop.f32.mrf.mxu0 }
 0xa81   :  { %v3565_v21 = vadd.f32 %v2685_v62, %v1392_v51 }
 0xa83   :  { %1402 = vst.msk [vmem:[#allocation2] sm:$0xff] %vm304_vm15, %v3565_v21  ;;  %1554 = vrot.lane.b32.xlu0 %v3565_v21, %s2872_s18 }
 0xa88   :  { %v1394_v14 = vpop.f32.mrf.mxu0 }
 0xa89   :  { %v3571_v23 = vadd.f32 %v2685_v62, %v1394_v14 }
 0xa8b   :  { %1403 = vst.msk [vmem:[#allocation2 + $0x8] sm:$0xff] %vm304_vm15, %v3571_v23 }
 0xaa9   :  { %v1397_v55 = vpop.f32.mrf.mxu0 }
 0xaaa   :  { %v3575_v57 = vadd.f32 %v2685_v62, %v1397_v55 }
 0xaac   :  { %1404 = vst.msk [vmem:[#allocation2 + $0x10] sm:$0xff] %vm304_vm15, %v3575_v57  ;;  %1558 = vrot.lane.b32.xlu1 %v3575_v57, %s2872_s18  ;;  %1510 = vrot.lane.b32.xlu0 %v3575_v57, %s2873_s19 }
 0xab1   :  { %v1399_v27 = vpop.f32.mrf.mxu0 }
 0xab2   :  { %v3583_v1 = vadd.f32 %v2685_v62, %v1399_v27 }
 0xab4   :  { %1405 = vst.msk [vmem:[#allocation2 + $0x18] sm:$0xff] %vm304_vm15, %v3583_v1  ;;  %1560 = vrot.lane.b32.xlu2 %v3583_v1, %s2872_s18  ;;  %1556 = vrot.lane.b32.xlu1 %v3571_v23, %s2872_s18 }
 0xab5   :  { %1508 = vrot.lane.b32.xlu0 %v3571_v23, %s2873_s19 }
 0xabc   :  { %1512 = vrot.lane.b32.xlu2 %v3583_v1, %s2873_s19  ;;  %1506 = vrot.lane.b32.xlu1 %v3565_v21, %s2873_s19 }
 0xabd   :  { %1458 = vrot.lane.b32.xlu0 %v3565_v21, %s2874_s20 }
 0xac4   :  { %1462 = vrot.lane.b32.xlu2 %v3575_v57, %s2874_s20  ;;  %1464 = vrot.lane.b32.xlu1 %v3583_v1, %s2874_s20 }
 0xac5   :  { %1416 = vrot.lane.b32.xlu0 %v3583_v1, %s2875_s21 }
 0xacc   :  { %1460 = vrot.lane.b32.xlu2 %v3571_v23, %s2874_s20  ;;  %1414 = vrot.lane.b32.xlu1 %v3575_v57, %s2875_s21 }
 0xacd   :  { %1442 = vrot.lane.b32.xlu0 %v3565_v21, %s2876_s22 }
 0xad4   :  { %1410 = vrot.lane.b32.xlu2 %v3565_v21, %s2875_s21  ;;  %1412 = vrot.lane.b32.xlu1 %v3571_v23, %s2875_s21 }
 0xad5   :  { %1448 = vrot.lane.b32.xlu0 %v3583_v1, %s2876_s22 }
 0xadc   :  { %1444 = vrot.lane.b32.xlu2 %v3571_v23, %s2876_s22  ;;  %1446 = vrot.lane.b32.xlu1 %v3575_v57, %s2876_s22 }
 0xadd   :  { %1494 = vrot.lane.b32.xlu0 %v3575_v57, %s2877_s23 }
 0xae4   :  { %1490 = vrot.lane.b32.xlu2 %v3565_v21, %s2877_s23  ;;  %1492 = vrot.lane.b32.xlu1 %v3571_v23, %s2877_s23 }
 0xae5   :  { %1540 = vrot.lane.b32.xlu0 %v3571_v23, %s2878_s24 }
 0xaec   :  { %1496 = vrot.lane.b32.xlu2 %v3583_v1, %s2877_s23  ;;  %1538 = vrot.lane.b32.xlu1 %v3565_v21, %s2878_s24 }
 0xaed   :  { %1574 = vrot.lane.b32.xlu0 %v3575_v57, %s2881_s27 }
 0xaf4   :  { %1542 = vrot.lane.b32.xlu2 %v3575_v57, %s2878_s24  ;;  %1522 = vrot.lane.b32.xlu1 %v3565_v21, %s2879_s25 }
 0xaf5   :  { %v1555_v46 = vpop.permute.xlu0 %1554  ;;  %1572 = vrot.lane.b32.xlu0 %v3571_v23, %s2881_s27 }
 0xaf6   :  { %1566 = vst.msk [vmem:[#allocation3 + $0x60] sm:$0xff] %vm304_vm15, %v1555_v46 }
 0xafc   :  { %1570 = vrot.lane.b32.xlu2 %v3565_v21, %s2881_s27  ;;  %1524 = vrot.lane.b32.xlu1 %v3571_v23, %s2879_s25 }
 0xafd   :  { %1526 = vrot.lane.b32.xlu0 %v3575_v57, %s2879_s25  ;;  %v1622_v47 = vld [vmem:[#allocation3 + $0x60] sm:$0xff] }
 0xb04   :  { %1478 = vrot.lane.b32.xlu1 %v3575_v57, %s2880_s26 }
 0xb0c   :  { %1544 = vrot.lane.b32.xlu1 %v3583_v1, %s2878_s24 }
 0xb0e   :  { %v1561_v42 = vpop.permute.xlu2 %1560 }
 0xb0f   :  { %1569 = vst.msk [vmem:[#allocation3 + $0x78] sm:$0xff] %vm304_vm15, %v1561_v42 }
 0xb14   :  { %1474 = vrot.lane.b32.xlu1 %v3565_v21, %s2880_s26 }
 0xb16   :  { %v1513_v2 = vpop.permute.xlu2 %1512  ;;  %v1625_v6 = vld [vmem:[#allocation3 + $0x78] sm:$0xff] }
 0xb17   :  { %1521 = vst.msk [vmem:[#allocation3 + $0x58] sm:$0xff] %vm304_vm15, %v1513_v2 }
 0xb1c   :  { %1576 = vrot.lane.b32.xlu1 %v3583_v1, %s2881_s27 }
 0xb1e   :  { %v1463_v7 = vpop.permute.xlu2 %1462  ;;  %v1559_v11 = vpop.permute.xlu1 %1558  ;;  %v1621_v56 = vld [vmem:[#allocation3 + $0x58] sm:$0xff] }
 0xb1f   :  { %1472 = vst.msk [vmem:[#allocation3 + $0x30] sm:$0xff] %vm304_vm15, %v1463_v7  ;;  %v1511_v29 = vpop.permute.xlu0 %1510 }
 0xb20   :  { %1568 = vst.msk [vmem:[#allocation3 + $0x70] sm:$0xff] %vm304_vm15, %v1559_v11 }
 0xb21   :  { %1520 = vst.msk [vmem:[#allocation3 + $0x50] sm:$0xff] %vm304_vm15, %v1511_v29 }
 0xb24   :  { %1528 = vrot.lane.b32.xlu1 %v3583_v1, %s2879_s25 }
 0xb26   :  { %v1461_v5 = vpop.permute.xlu2 %1460  ;;  %v1557_v44 = vpop.permute.xlu1 %1556  ;;  %v1616_v51 = vld [vmem:[#allocation3 + $0x30] sm:$0xff] }
 0xb27   :  { %1471 = vst.msk [vmem:[#allocation3 + $0x28] sm:$0xff] %vm304_vm15, %v1461_v5  ;;  %v1509_v8 = vpop.permute.xlu0 %1508  ;;  %v1624_v22 = vld [vmem:[#allocation3 + $0x70] sm:$0xff] }
 0xb28   :  { %1567 = vst.msk [vmem:[#allocation3 + $0x68] sm:$0xff] %vm304_vm15, %v1557_v44  ;;  %v1633_v59 = vpack.c.bf16 %v1625_v6, %v1624_v22  ;;  %v1620_v60 = vld [vmem:[#allocation3 + $0x50] sm:$0xff] }
 0xb29   :  { %1519 = vst.msk [vmem:[#allocation3 + $0x48] sm:$0xff] %vm304_vm15, %v1509_v8  ;;  %v1631_v30 = vpack.c.bf16 %v1621_v56, %v1620_v60 }
 0xb2a   :  { %v1680_v18 = vsel %vm304_vm15, %v1633_v59, 0 }
 0xb2b   :  { %1682 = vmatpush.bf16.xpose.msrb.mxu1 %v1680_v18  ;;  %v1674_v48 = vsel %vm304_vm15, %v1631_v30, 0 }
 0xb2c   :  { %1480 = vrot.lane.b32.xlu1 %v3583_v1, %s2880_s26 }
 0xb2e   :  { %v1411_v13 = vpop.permute.xlu2 %1410  ;;  %v1507_v3 = vpop.permute.xlu1 %1506  ;;  %v1615_v7 = vld [vmem:[#allocation3 + $0x28] sm:$0xff] }
 0xb2f   :  { %1422 = vst.msk [vmem:[#allocation3] sm:$0xff] %vm304_vm15, %v1411_v13  ;;  %v1459_v35 = vpop.permute.xlu0 %1458  ;;  %v1623_v0 = vld [vmem:[#allocation3 + $0x68] sm:$0xff] }
 0xb30   :  { %1518 = vst.msk [vmem:[#allocation3 + $0x40] sm:$0xff] %vm304_vm15, %v1507_v3  ;;  %v1632_v39 = vpack.c.bf16 %v1623_v0, %v1622_v47  ;;  %v1619_v49 = vld [vmem:[#allocation3 + $0x48] sm:$0xff] }
 0xb31   :  { %1470 = vst.msk [vmem:[#allocation3 + $0x20] sm:$0xff] %vm304_vm15, %v1459_v35 }
 0xb32   :  { %v1677_v40 = vsel %vm304_vm15, %v1632_v39, 0 }
 0xb33   :  { %1683 = vmatpush.bf16.xpose.msrb.mxu1 %v1677_v40 }
 0xb36   :  { %v1445_v28 = vpop.permute.xlu2 %1444  ;;  %v1465_v36 = vpop.permute.xlu1 %1464  ;;  %v1610_v0 = vld [vmem:[#allocation3] sm:$0xff] }
 0xb37   :  { %1455 = vst.msk [vmem:[#allocation2 + $0x28] sm:$0xff] %vm304_vm15, %v1445_v28  ;;  %v1417_v16 = vpop.permute.xlu0 %1416  ;;  %v1618_v12 = vld [vmem:[#allocation3 + $0x40] sm:$0xff]  ;;  %v1587_v28 = vld [vmem:[#allocation2 + $0x8] sm:$0xff] }
 0xb38   :  { %1473 = vst.msk [vmem:[#allocation3 + $0x38] sm:$0xff] %vm304_vm15, %v1465_v36  ;;  %v1630_v4 = vpack.c.bf16 %v1619_v49, %v1618_v12  ;;  %v1614_v2 = vld [vmem:[#allocation3 + $0x20] sm:$0xff] }
 0xb39   :  { %1425 = vst.msk [vmem:[#allocation3 + $0x18] sm:$0xff] %vm304_vm15, %v1417_v16  ;;  %v1628_v5 = vpack.c.bf16 %v1615_v7, %v1614_v2  ;;  %v1586_v16 = vld [vmem:[#allocation2] sm:$0xff] }
 0xb3a   :  { %v1671_v41 = vsel %vm304_vm15, %v1630_v4, 0  ;;  %v1588_v4 = vld [vmem:[#allocation2 + $0x10] sm:$0xff] }
 0xb3b   :  { %1684 = vmatpush.bf16.xpose.msrb.mxu1 %v1674_v48  ;;  %v1665_v8 = vsel %vm304_vm15, %v1628_v5, 0  ;;  %v1602_v48 = vpack.c.bf16 %v1587_v28, %v1586_v16 }
 0xb3e   :  { %v1491_v20 = vpop.permute.xlu2 %1490  ;;  %v1415_v37 = vpop.permute.xlu1 %1414 }
 0xb3f   :  { %1502 = vst.msk [vmem:[#allocation2 + $0x40] sm:$0xff] %vm304_vm15, %v1491_v20  ;;  %v1443_v24 = vpop.permute.xlu0 %1442  ;;  %v1617_v62 = vld [vmem:[#allocation3 + $0x38] sm:$0xff] }
 0xb40   :  { %1424 = vst.msk [vmem:[#allocation3 + $0x10] sm:$0xff] %vm304_vm15, %v1415_v37  ;;  %v1629_v27 = vpack.c.bf16 %v1617_v62, %v1616_v51  ;;  %v1613_v6 = vld [vmem:[#allocation3 + $0x18] sm:$0xff] }
 0xb41   :  { %1454 = vst.msk [vmem:[#allocation2 + $0x20] sm:$0xff] %vm304_vm15, %v1443_v24  ;;  %v1589_v20 = vld [vmem:[#allocation2 + $0x18] sm:$0xff] }
 0xb42   :  { %v1668_v42 = vsel %vm304_vm15, %v1629_v27, 0  ;;  %v1603_v24 = vpack.c.bf16 %v1589_v20, %v1588_v4 }
 0xb43   :  { %1685 = vmatpush.bf16.xpose.msrb.mxu1 %v1671_v41 }
 0xb46   :  { %v1497_v14 = vpop.permute.xlu2 %1496  ;;  %v1413_v55 = vpop.permute.xlu1 %1412 }
 0xb47   :  { %1505 = vst.msk [vmem:[#allocation2 + $0x58] sm:$0xff] %vm304_vm15, %v1497_v14  ;;  %v1449_v46 = vpop.permute.xlu0 %1448  ;;  %v1612_v22 = vld [vmem:[#allocation3 + $0x10] sm:$0xff]  ;;  %v1591_v14 = vld [vmem:[#allocation2 + $0x28] sm:$0xff] }
 0xb48   :  { %1423 = vst.msk [vmem:[#allocation3 + $0x8] sm:$0xff] %vm304_vm15, %v1413_v55  ;;  %v1627_v13 = vpack.c.bf16 %v1613_v6, %v1612_v22  ;;  %v1590_v62 = vld [vmem:[#allocation2 + $0x20] sm:$0xff] }
 0xb49   :  { %1457 = vst.msk [vmem:[#allocation2 + $0x38] sm:$0xff] %vm304_vm15, %v1449_v46  ;;  %v1604_v55 = vpack.c.bf16 %v1591_v14, %v1590_v62 }
 0xb4a   :  { %v1662_v35 = vsel %vm304_vm15, %v1627_v13, 0 }
 0xb4b   :  { %1686 = vmatpush.bf16.xpose.msrb.mxu1 %v1668_v42 }
 0xb4e   :  { %v1543_v11 = vpop.permute.xlu2 %1542  ;;  %v1447_v29 = vpop.permute.xlu1 %1446 }
 0xb4f   :  { %1552 = vst.msk [vmem:[#allocation2 + $0x70] sm:$0xff] %vm304_vm15, %v1543_v11  ;;  %v1495_v44 = vpop.permute.xlu0 %1494  ;;  %v1611_v47 = vld [vmem:[#allocation3 + $0x8] sm:$0xff] }
 0xb50   :  { %1456 = vst.msk [vmem:[#allocation2 + $0x30] sm:$0xff] %vm304_vm15, %v1447_v29  ;;  %v1626_v40 = vpack.c.bf16 %v1611_v47, %v1610_v0  ;;  %v1593_v11 = vld [vmem:[#allocation2 + $0x38] sm:$0xff] }
 0xb51   :  { %1504 = vst.msk [vmem:[#allocation2 + $0x50] sm:$0xff] %vm304_vm15, %v1495_v44 }
 0xb52   :  { %v1659_v56 = vsel %vm304_vm15, %v1626_v40, 0 }
 0xb53   :  { %1687 = vmatpush.bf16.xpose.msrb.mxu1 %v1665_v8 }
 0xb56   :  { %v1571_v59 = vpop.permute.xlu2 %1570  ;;  %v1493_v18 = vpop.permute.xlu1 %1492 }
 0xb57   :  { %1582 = vst.msk [vmem:[#allocation4 + $0x60] sm:$0xff] %vm304_vm15, %v1571_v59  ;;  %v1541_v3 = vpop.permute.xlu0 %1540  ;;  %v1592_v46 = vld [vmem:[#allocation2 + $0x30] sm:$0xff] }
 0xb58   :  { %1503 = vst.msk [vmem:[#allocation2 + $0x48] sm:$0xff] %vm304_vm15, %v1493_v18  ;;  %v1605_v5 = vpack.c.bf16 %v1593_v11, %v1592_v46 }
 0xb59   :  { %1551 = vst.msk [vmem:[#allocation2 + $0x68] sm:$0xff] %vm304_vm15, %v1541_v3 }
 0xb5b   :  { %1688 = vmatpush.bf16.xpose.msrb.mxu1 %v1662_v35 }
 0xb5e   :  { %v1539_v39 = vpop.permute.xlu1 %1538  ;;  %v1927_v8 = vld [vmem:[#allocation4 + $0x60] sm:$0xff] }
 0xb5f   :  { %1550 = vst.msk [vmem:[#allocation2 + $0x60] sm:$0xff] %vm304_vm15, %v1539_v39  ;;  %v1575_v60 = vpop.permute.xlu0 %1574  ;;  %v1595_v0 = vld [vmem:[#allocation2 + $0x48] sm:$0xff] }
 0xb60   :  { %1584 = vst.msk [vmem:[#allocation4 + $0x70] sm:$0xff] %vm304_vm15, %v1575_v60  ;;  %v1594_v60 = vld [vmem:[#allocation2 + $0x40] sm:$0xff] }
 0xb61   :  { %v1606_v28 = vpack.c.bf16 %v1595_v0, %v1594_v60 }
 0xb63   :  { %1689 = vmatpush.bf16.xpose.msrb.mxu1 %v1659_v56 }
 0xb66   :  { %v1523_v36 = vpop.permute.xlu1 %1522 }
 0xb67   :  { %1534 = vst.msk [vmem:[#allocation4 + $0x40] sm:$0xff] %vm304_vm15, %v1523_v36  ;;  %v1573_v30 = vpop.permute.xlu0 %1572  ;;  %v1929_v2 = vld [vmem:[#allocation4 + $0x70] sm:$0xff] }
 0xb68   :  { %1583 = vst.msk [vmem:[#allocation4 + $0x68] sm:$0xff] %vm304_vm15, %v1573_v30  ;;  %v1596_v36 = vld [vmem:[#allocation2 + $0x50] sm:$0xff]  ;;  %v1597_v30 = vld [vmem:[#allocation2 + $0x58] sm:$0xff] }
 0xb69   :  { %v1607_v16 = vpack.c.bf16 %v1597_v30, %v1596_v36 }
 0xb6a   :  { %2553 = vmatmul.msk.bf16.vlgmr.msrb.gmra.mxu1 %vm304_vm15, %v1602_v48  ;;  %v1598_v48 = vld [vmem:[#allocation2 + $0x60] sm:$0xff] }
 0xb6e   :  { %v1525_v12 = vpop.permute.xlu1 %1524  ;;  %v1923_v35 = vld [vmem:[#allocation4 + $0x40] sm:$0xff] }
 0xb6f   :  { %1535 = vst.msk [vmem:[#allocation4 + $0x48] sm:$0xff] %vm304_vm15, %v1525_v12  ;;  %v1527_v49 = vpop.permute.xlu0 %1526  ;;  %v1928_v44 = vld [vmem:[#allocation4 + $0x68] sm:$0xff] }
 0xb70   :  { %1536 = vst.msk [vmem:[#allocation4 + $0x50] sm:$0xff] %vm304_vm15, %v1527_v49  ;;  %v1937_v22 = vpack.c.bf16 %v1928_v44, %v1927_v8  ;;  %v1599_v12 = vld [vmem:[#allocation2 + $0x68] sm:$0xff] }
 0xb71   :  { %v1608_v49 = vpack.c.bf16 %v1599_v12, %v1598_v48 }
 0xb76   :  { %v1479_v37 = vpop.permute.xlu1 %1478  ;;  %v1924_v3 = vld [vmem:[#allocation4 + $0x48] sm:$0xff] }
 0xb77   :  { %1488 = vst.msk [vmem:[#allocation4 + $0x30] sm:$0xff] %vm304_vm15, %v1479_v37  ;;  %v1925_v59 = vld [vmem:[#allocation4 + $0x50] sm:$0xff]  ;;  %v1935_v47 = vpack.c.bf16 %v1924_v3, %v1923_v35 }
 0xb78   :  { %v1600_v37 = vld [vmem:[#allocation2 + $0x70] sm:$0xff] }
 0xb7a   :  { %2554 = vmatmul.msk.bf16.gmra.mxu1 %vm304_vm15, %v1603_v24 }
 0xb7e   :  { %v1545_v41 = vpop.permute.xlu1 %1544  ;;  %v1921_v39 = vld [vmem:[#allocation4 + $0x30] sm:$0xff] }
 0xb7f   :  { %1553 = vst.msk [vmem:[#allocation2 + $0x78] sm:$0xff] %vm304_vm15, %v1545_v41 }
 0xb86   :  { %v1475_v51 = vpop.permute.xlu1 %1474  ;;  %v1601_v20 = vld [vmem:[#allocation2 + $0x78] sm:$0xff] }
 0xb87   :  { %1486 = vst.msk [vmem:[#allocation4 + $0x20] sm:$0xff] %vm304_vm15, %v1475_v51  ;;  %v1609_v4 = vpack.c.bf16 %v1601_v20, %v1600_v37 }
 0xb8a   :  { %2555 = vmatmul.msk.bf16.gmra.mxu1 %vm304_vm15, %v1604_v55 }
 0xb8e   :  { %v1577_v27 = vpop.permute.xlu1 %1576 }
 0xb8f   :  { %1585 = vst.msk [vmem:[#allocation4 + $0x78] sm:$0xff] %vm304_vm15, %v1577_v27 }
 0xb96   :  { %v1529_v42 = vpop.permute.xlu1 %1528  ;;  %v1930_v7 = vld [vmem:[#allocation4 + $0x78] sm:$0xff] }
 0xb97   :  { %1537 = vst.msk [vmem:[#allocation4 + $0x58] sm:$0xff] %vm304_vm15, %v1529_v42  ;;  %v1938_v29 = vpack.c.bf16 %v1930_v7, %v1929_v2 }
 0xb99   :  { %1939 = vmatpush.bf16.msra.mxu0 %v1938_v29 }
 0xb9a   :  { %2556 = vmatmul.msk.bf16.gmra.mxu1 %vm304_vm15, %v1605_v5 }
 0xb9d   :  { %1940 = vmatpush.bf16.msra.mxu0 %v1937_v22 }
 0xb9e   :  { %v1481_v6 = vpop.permute.xlu1 %1480  ;;  %v1926_v18 = vld [vmem:[#allocation4 + $0x58] sm:$0xff] }
 0xb9f   :  { %1489 = vst.msk [vmem:[#allocation4 + $0x38] sm:$0xff] %vm304_vm15, %v1481_v6  ;;  %v1936_v13 = vpack.c.bf16 %v1926_v18, %v1925_v59 }
 0xba1   :  { %1941 = vmatpush.bf16.msra.mxu0 %v1936_v13 }
 0xba5   :  { %1942 = vmatpush.bf16.msra.mxu0 %v1935_v47 }
 0xba6   :  { %v1922_v40 = vld [vmem:[#allocation4 + $0x38] sm:$0xff] }
 0xba7   :  { %v1934_v56 = vpack.c.bf16 %v1922_v40, %v1921_v39 }
 0xba9   :  { %1943 = vmatpush.bf16.msra.mxu0 %v1934_v56 }
 0xbaa   :  { %2557 = vmatmul.msk.bf16.gmra.mxu1 %vm304_vm15, %v1606_v28 }
 0xbba   :  { %2558 = vmatmul.msk.bf16.gmra.mxu1 %vm304_vm15, %v1607_v16 }
 0xbca   :  { %2559 = vmatmul.msk.bf16.gmra.mxu1 %vm304_vm15, %v1608_v49 }
 0xbda   :  { %2560 = vmatmul.msk.bf16.gmra.mxu1 %vm304_vm15, %v1609_v4 }
 0xbe7   :  { %v1691_v24 = vpop.f32.mrf.mxu1 }
 0xbe8   :  { %v1731_v41 = vmul.f32 0.35355338, %v1691_v24 }
 0xbea   :  { %v1747_v62 = vadd.f32 %v1731_v41, %v3171_v9 }
 0xbec   :  { %1763 = vmax.xlane.f32.xlu0 %v1747_v62 }
 0xbef   :  { %v1693_v51 = vpop.f32.mrf.mxu1 }
 0xbf0   :  { %v1732_v14 = vmul.f32 0.35355338, %v1693_v51 }
 0xbf2   :  { %v1748_v55 = vadd.f32 %v1732_v14, %v3180_v17 }
 0xbf4   :  { %1765 = vmax.xlane.f32.xlu2 %v1748_v55 }
 0xbf7   :  { %v1696_v27 = vpop.f32.mrf.mxu1 }
 0xbf8   :  { %v1733_v46 = vmul.f32 0.35355338, %v1696_v27 }
 0xbfa   :  { %v1749_v42 = vadd.f32 %v1733_v46, %v3189_v25 }
 0xbfc   :  { %1767 = vmax.xlane.f32.xlu1 %v1749_v42 }
 0xbff   :  { %v1698_v2 = vpop.f32.mrf.mxu1 }
 0xc00   :  { %v1734_v7 = vmul.f32 0.35355338, %v1698_v2  ;;  %1430 = vrot.lane.b32.xlu0 %v3575_v57, %s2883_s28 }
 0xc02   :  { %v1750_v11 = vadd.f32 %v1734_v7, %v3198_v31  ;;  %v1919_v7 = vld [vmem:[#allocation4 + $0x20] sm:$0xff] }
 0xc04   :  { %1769 = vmax.xlane.f32.xlu2 %v1750_v11 }
 0xc07   :  { %v1701_v9 = vpop.f32.mrf.mxu1 }
 0xc08   :  { %v1735_v29 = vmul.f32 0.35355338, %v1701_v9 }
 0xc0a   :  { %v1751_v5 = vadd.f32 %v1735_v29, %v3207_v38 }
 0xc0c   :  { %1771 = vmax.xlane.f32.xlu2 %v1751_v5 }
 0xc0f   :  { %v1703_v17 = vpop.f32.mrf.mxu1 }
 0xc10   :  { %v1736_v44 = vmul.f32 0.35355338, %v1703_v17 }
 0xc12   :  { %v3726_v25 = vadd.f32 %v1736_v44, %v3215_v43 }
 0xc15   :  { %1432 = vrot.lane.b32.xlu1 %v3583_v1, %s2883_s28 }
 0xc17   :  { %v1706_v31 = vpop.f32.mrf.mxu1 }
 0xc18   :  { %v1737_v8 = vmul.f32 0.35355338, %v1706_v31 }
 0xc1a   :  { %v3730_v22 = vadd.f32 %v1737_v8, %v3232_v52 }
 0xc1f   :  { %v1708_v57 = vpop.f32.mrf.mxu1 }
 0xc20   :  { %v1738_v1 = vmul.f32 0.35355338, %v1708_v57 }
 0xc22   :  { %v3738_v43 = vadd.f32 %v1738_v1, %v3242_v50 }
 0xc24   :  { %1476 = vrot.lane.b32.xlu2 %v3571_v23, %s2880_s26 }
 0xc27   :  { %v1711_v38 = vpop.f32.mrf.mxu1 }
 0xc28   :  { %v1739_v56 = vmul.f32 0.35355338, %v1711_v38 }
 0xc2a   :  { %1773 = vmax.xlane.f32.xlu0 %v3726_v25  ;;  %v3753_v16 = vadd.f32 %v1739_v56, %v3268_v26 }
 0xc2f   :  { %v1713_v6 = vpop.f32.mrf.mxu1 }
 0xc30   :  { %v1740_v59 = vmul.f32 0.35355338, %v1713_v6 }
 0xc32   :  { %v3742_v52 = vadd.f32 %v1740_v59, %v3250_v63 }
 0xc3e   :  { %1426 = vrot.lane.b32.xlu0 %v3565_v21, %s2883_s28 }
 0xc3f   :  { %1775 = vmax.xlane.f32.xlu1 %v3730_v22 }
 0xc46   :  { %1428 = vrot.lane.b32.xlu0 %v3571_v23, %s2883_s28  ;;  %v1716_v23 = vpop.f32.mrf.mxu1 }
 0xc47   :  { %v1741_v26 = vmul.f32 0.35355338, %v1716_v23 }
 0xc4d   :  { %1777 = vmax.xlane.f32.xlu2 %v3738_v43 }
 0xc4e   :  { %v1718_v60 = vpop.f32.mrf.mxu1 }
 0xc4f   :  { %v1742_v41 = vmul.f32 0.35355338, %v1718_v60 }
 0xc51   :  { %v3770_v46 = vadd.f32 %v1742_v41, %v3292_v54 }
 0xc55   :  { %1781 = vmax.xlane.f32.xlu2 %v3742_v52 }
 0xc56   :  { %v1721_v12 = vpop.f32.mrf.mxu1 }
 0xc57   :  { %v1743_v2 = vmul.f32 0.35355338, %v1721_v12 }
 0xc59   :  { %v3779_v29 = vadd.f32 %v1743_v2, %v3315_v19 }
 0xc5e   :  { %v1723_v14 = vpop.f32.mrf.mxu1 }
 0xc5f   :  { %v1764_v21 = vpop.xlane.xlu0 %1763 }
 0xc60   :  { %v1795_v18 = vsub.f32 %v1747_v62, %v1764_v21 }
 0xc62   :  { %v1811_v13 = vmul.f32 1.442695, %v1795_v18 }
 0xc64   :  { %2791 = vpow2.f32 %v1811_v13 }
 0xc67   :  { %v1766_v3 = vpop.xlane.xlu2 %1765 }
 0xc68   :  { %v1796_v35 = vsub.f32 %v1748_v55, %v1766_v3  ;;  %v3764_v55 = vadd.f32 %v1741_v26, %v3289_v45 }
 0xc6a   :  { %v1813_v47 = vmul.f32 1.442695, %v1796_v35  ;;  %v3745_v50 = vpop.eup %2791 }
 0xc6c   :  { %2793 = vpow2.f32 %v1813_v47 }
 0xc6f   :  { %v1768_v0 = vpop.xlane.xlu1 %1767 }
 0xc70   :  { %1843 = vadd.xlane.f32.xlu0 %v3745_v50  ;;  %v1797_v40 = vsub.f32 %v1749_v42, %v1768_v0  ;;  %v1744_v42 = vmul.f32 0.35355338, %v1723_v14 }
 0xc72   :  { %v3748_v39 = vpop.eup %2793  ;;  %v1431_v63 = vpop.permute.xlu0 %1430  ;;  %v1815_v28 = vmul.f32 1.442695, %v1797_v40  ;;  %v3776_v45 = vadd.f32 %v1744_v42, %v3312_v15 }
 0xc73   :  { %1440 = vst.msk [vmem:[#allocation4 + $0x10] sm:$0xff] %vm304_vm15, %v1431_v63  ;;  %1845 = vadd.xlane.f32.xlu1 %v3748_v39 }
 0xc74   :  { %2795 = vpow2.f32 %v1815_v28 }
 0xc77   :  { %v1770_v36 = vpop.xlane.xlu2 %1769 }
 0xc78   :  { %v1798_v30 = vsub.f32 %v1750_v11, %v1770_v36 }
 0xc7a   :  { %v1817_v48 = vmul.f32 1.442695, %v1798_v30  ;;  %v3756_v37 = vpop.eup %2795  ;;  %v1917_v17 = vld [vmem:[#allocation4 + $0x10] sm:$0xff] }
 0xc7b   :  { %1779 = vmax.xlane.f32.xlu1 %v3753_v16 }
 0xc7c   :  { %2797 = vpow2.f32 %v1817_v48 }
 0xc7f   :  { %v1772_v49 = vpop.xlane.xlu2 %1771 }
 0xc80   :  { %v1799_v20 = vsub.f32 %v1751_v5, %v1772_v49  ;;  %v1726_v5 = vpop.f32.mrf.mxu1 }
 0xc81   :  { %v1745_v44 = vmul.f32 0.35355338, %v1726_v5 }
 0xc82   :  { %v3758_v4 = vpop.eup %2797  ;;  %v1819_v24 = vmul.f32 1.442695, %v1799_v20 }
 0xc83   :  { %1847 = vadd.xlane.f32.xlu1 %v3756_v37  ;;  %1849 = vadd.xlane.f32.xlu2 %v3758_v4  ;;  %v3784_v57 = vadd.f32 %v1745_v44, %v3331_v34 }
 0xc84   :  { %2799 = vpow2.f32 %v1819_v24 }
 0xc87   :  { %v1433_v62 = vpop.permute.xlu1 %1432  ;;  %v1477_v51 = vpop.permute.xlu2 %1476 }
 0xc88   :  { %1441 = vst.msk [vmem:[#allocation4 + $0x18] sm:$0xff] %vm304_vm15, %v1433_v62 }
 0xc89   :  { %1487 = vst.msk [vmem:[#allocation4 + $0x28] sm:$0xff] %vm304_vm15, %v1477_v51 }
 0xc8a   :  { %v3767_v27 = vpop.eup %2799 }
 0xc8b   :  { %1851 = vadd.xlane.f32.xlu0 %v3767_v27  ;;  %1783 = vmax.xlane.f32.xlu1 %v3764_v55 }
 0xc8c   :  { %1785 = vmax.xlane.f32.xlu2 %v3770_v46 }
 0xc8f   :  { %v1918_v54 = vld [vmem:[#allocation4 + $0x18] sm:$0xff] }
 0xc90   :  { %v1920_v11 = vld [vmem:[#allocation4 + $0x28] sm:$0xff]  ;;  %v1932_v31 = vpack.c.bf16 %v1918_v54, %v1917_v17 }
 0xc91   :  { %v1933_v9 = vpack.c.bf16 %v1920_v11, %v1919_v7 }
 0xc93   :  { %1944 = vmatpush.bf16.msra.mxu0 %v1933_v9  ;;  %1789 = vmax.xlane.f32.xlu0 %v3776_v45 }
 0xc94   :  { %1787 = vmax.xlane.f32.xlu2 %v3779_v29 }
 0xc97   :  { %1945 = vmatpush.bf16.msra.mxu0 %v1932_v31 }
 0xc9b   :  { %1791 = vmax.xlane.f32.xlu0 %v3784_v57 }
 0xc9d   :  { %v1774_v15 = vpop.xlane.xlu0 %1773 }
 0xc9e   :  { %v1800_v19 = vsub.f32 %v3726_v25, %v1774_v15  ;;  %v1728_v25 = vpop.f32.mrf.mxu1 }
 0xc9f   :  { %v1746_v13 = vmul.f32 0.35355338, %v1728_v25 }
 0xca0   :  { %v1821_v8 = vmul.f32 1.442695, %v1800_v19 }
 0xca2   :  { %2801 = vpow2.f32 %v1821_v8 }
 0xca8   :  { %v3788_v38 = vpop.eup %2801 }
 0xca9   :  { %1853 = vadd.xlane.f32.xlu1 %v3788_v38 }
 0xcb0   :  { %v1427_v1 = vpop.permute.xlu0 %1426 }
 0xcb1   :  { %1438 = vst.msk [vmem:[#allocation4] sm:$0xff] %vm304_vm15, %v1427_v1 }
 0xcb2   :  { %v1776_v6 = vpop.xlane.xlu1 %1775 }
 0xcb3   :  { %v1801_v59 = vsub.f32 %v3730_v22, %v1776_v6  ;;  %v3799_v22 = vadd.f32 %v1746_v13, %v3345_v61 }
 0xcb5   :  { %v1823_v21 = vmul.f32 1.442695, %v1801_v59 }
 0xcb7   :  { %2803 = vpow2.f32 %v1823_v21 }
 0xcb8   :  { %v1429_v34 = vpop.permute.xlu0 %1428  ;;  %v1915_v35 = vld [vmem:[#allocation4] sm:$0xff] }
 0xcb9   :  { %1439 = vst.msk [vmem:[#allocation4 + $0x8] sm:$0xff] %vm304_vm15, %v1429_v34 }
 0xcbd   :  { %v3794_v18 = vpop.eup %2803 }
 0xcbe   :  { %1855 = vadd.xlane.f32.xlu1 %v3794_v18 }
 0xcc0   :  { %v1778_v3 = vpop.xlane.xlu2 %1777  ;;  %v1916_v23 = vld [vmem:[#allocation4 + $0x8] sm:$0xff] }
 0xcc1   :  { %v1802_v47 = vsub.f32 %v3738_v43, %v1778_v3  ;;  %v1931_v0 = vpack.c.bf16 %v1916_v23, %v1915_v35 }
 0xcc3   :  { %v1825_v63 = vmul.f32 1.442695, %v1802_v47  ;;  %1946 = vmatpush.bf16.msra.mxu0 %v1931_v0 }
 0xcc5   :  { %2805 = vpow2.f32 %v1825_v63 }
 0xcc6   :  { %1793 = vmax.xlane.f32.xlu1 %v3799_v22 }
 0xcc8   :  { %v1782_v40 = vpop.xlane.xlu2 %1781 }
 0xcc9   :  { %v1804_v60 = vsub.f32 %v3742_v52, %v1782_v40 }
 0xccb   :  { %v3803_v56 = vpop.eup %2805  ;;  %v1829_v28 = vmul.f32 1.442695, %v1804_v60 }
 0xccc   :  { %1857 = vadd.xlane.f32.xlu2 %v3803_v56 }
 0xccd   :  { %2807 = vpow2.f32 %v1829_v28 }
 0xcd3   :  { %v3806_v36 = vpop.eup %2807 }
 0xcd4   :  { %1861 = vadd.xlane.f32.xlu0 %v3806_v36 }
 0xce3   :  { %v1844_v43 = vpop.xlane.xlu0 %1843 }
 0xce4   :  { %2809 = vrcp.f32 %v1844_v43 }
 0xce6   :  { %v1846_v61 = vpop.xlane.xlu1 %1845 }
 0xce7   :  { %2811 = vrcp.f32 %v1846_v61 }
 0xcea   :  { %v2810_v30 = vpop.eup %2809 }
 0xceb   :  { %v1891_v12 = vmul.f32 %v2810_v30, %v3745_v50 }
 0xced   :  { %v2812_v48 = vpop.eup %2811 }
 0xcee   :  { %v1892_v52 = vmul.f32 %v2812_v48, %v3748_v39  ;;  %v1780_v49 = vpop.xlane.xlu1 %1779 }
 0xcef   :  { %v1803_v20 = vsub.f32 %v3753_v16, %v1780_v49 }
 0xcf0   :  { %v1907_v24 = vpack.c.bf16 %v1892_v52, %v1891_v12 }
 0xcf1   :  { %v1827_v26 = vmul.f32 1.442695, %v1803_v20 }
 0xcf2   :  { %1947 = vmatmul.bf16.vlgmr.msra.gmra.mxu0 %v1907_v24 }
 0xcf3   :  { %2813 = vpow2.f32 %v1827_v26 }
 0xcf6   :  { %v1848_v41 = vpop.xlane.xlu1 %1847  ;;  %v1850_v62 = vpop.xlane.xlu2 %1849 }
 0xcf7   :  { %2815 = vrcp.f32 %v1848_v41 }
 0xcf8   :  { %2817 = vrcp.f32 %v1850_v62 }
 0xcf9   :  { %v3812_v51 = vpop.eup %2813 }
 0xcfa   :  { %1859 = vadd.xlane.f32.xlu2 %v3812_v51 }
 0xcfd   :  { %v2816_v14 = vpop.eup %2815 }
 0xcfe   :  { %v2818_v42 = vpop.eup %2817  ;;  %v1852_v50 = vpop.xlane.xlu0 %1851  ;;  %v1893_v39 = vmul.f32 %v2816_v14, %v3756_v37 }
 0xcff   :  { %v1784_v2 = vpop.xlane.xlu1 %1783  ;;  %v1786_v7 = vpop.xlane.xlu2 %1785  ;;  %v1894_v11 = vmul.f32 %v2818_v42, %v3758_v4 }
 0xd00   :  { %v1805_v16 = vsub.f32 %v3764_v55, %v1784_v2  ;;  %v1806_v9 = vsub.f32 %v3770_v46, %v1786_v7 }
 0xd01   :  { %v1908_v54 = vpack.c.bf16 %v1894_v11, %v1893_v39 }
 0xd02   :  { %v1831_v5 = vmul.f32 1.442695, %v1805_v16  ;;  %v1833_v17 = vmul.f32 1.442695, %v1806_v9 }
 0xd03   :  { %1952 = vmatmul.bf16.gmra.mxu0 %v1908_v54 }
 0xd04   :  { %2819 = vpow2.f32 %v1831_v5 }
 0xd05   :  { %2821 = vpow2.f32 %v1833_v17 }
 0xd06   :  { %v1790_v44 = vpop.xlane.xlu0 %1789 }
 0xd07   :  { %v1788_v31 = vpop.xlane.xlu2 %1787  ;;  %v1808_v15 = vsub.f32 %v3776_v45, %v1790_v44 }
 0xd08   :  { %v1807_v19 = vsub.f32 %v3779_v29, %v1788_v31 }
 0xd09   :  { %v1837_v55 = vmul.f32 1.442695, %v1808_v15 }
 0xd0a   :  { %v3821_v37 = vpop.eup %2819  ;;  %v1835_v4 = vmul.f32 1.442695, %v1807_v19 }
 0xd0b   :  { %v3823_v8 = vpop.eup %2821  ;;  %1863 = vadd.xlane.f32.xlu1 %v3821_v37  ;;  %2823 = vpow2.f32 %v1837_v55 }
 0xd0c   :  { %1865 = vadd.xlane.f32.xlu2 %v3823_v8  ;;  %2825 = vpow2.f32 %v1835_v4 }
 0xd0e   :  { %v1792_v46 = vpop.xlane.xlu0 %1791 }
 0xd0f   :  { %v1809_v1 = vsub.f32 %v3784_v57, %v1792_v46 }
 0xd11   :  { %v3828_v6 = vpop.eup %2823  ;;  %v1839_v45 = vmul.f32 1.442695, %v1809_v1 }
 0xd12   :  { %v3830_v59 = vpop.eup %2825 }
 0xd13   :  { %1869 = vadd.xlane.f32.xlu1 %v3828_v6  ;;  %2827 = vpow2.f32 %v1839_v45  ;;  %1867 = vadd.xlane.f32.xlu0 %v3830_v59 }
 0xd14   :  { %2829 = vrcp.f32 %v1852_v50 }
 0xd19   :  { %v3834_v29 = vpop.eup %2827 }
 0xd1a   :  { %1871 = vadd.xlane.f32.xlu2 %v3834_v29  ;;  %v2830_v34 = vpop.eup %2829 }
 0xd1b   :  { %v1895_v57 = vmul.f32 %v2830_v34, %v3767_v27 }
 0xd1c   :  { %v1854_v21 = vpop.xlane.xlu1 %1853 }
 0xd1d   :  { %2831 = vrcp.f32 %v1854_v21 }
 0xd23   :  { %v2832_v25 = vpop.eup %2831 }
 0xd24   :  { %v1896_v13 = vmul.f32 %v2832_v25, %v3788_v38 }
 0xd26   :  { %v1909_v3 = vpack.c.bf16 %v1896_v13, %v1895_v57 }
 0xd28   :  { %1957 = vmatmul.bf16.gmra.mxu0 %v1909_v3  ;;  %v2643_v3 = vld [vmem:[%s4012_s1 + $0x80] sm:$0xff] }
 0xd31   :  { %v1856_v35 = vpop.xlane.xlu1 %1855 }
 0xd32   :  { %2833 = vrcp.f32 %v1856_v35 }
 0xd38   :  { %v2834_v40 = vpop.eup %2833 }
 0xd39   :  { %v1794_v23 = vpop.xlane.xlu1 %1793  ;;  %v1897_v43 = vmul.f32 %v2834_v40, %v3794_v18 }
 0xd3a   :  { %v1810_v47 = vsub.f32 %v3799_v22, %v1794_v23 }
 0xd3c   :  { %v1841_v0 = vmul.f32 1.442695, %v1810_v47 }
 0xd3e   :  { %2835 = vpow2.f32 %v1841_v0 }
 0xd3f   :  { %v1858_v63 = vpop.xlane.xlu2 %1857 }
 0xd40   :  { %2837 = vrcp.f32 %v1858_v63 }
 0xd44   :  { %v2836_v60 = vpop.eup %2835 }
 0xd45   :  { %1873 = vadd.xlane.f32.xlu0 %v2836_v60 }
 0xd46   :  { %v2838_v28 = vpop.eup %2837 }
 0xd47   :  { %v1898_v27 = vmul.f32 %v2838_v28, %v3803_v56  ;;  %v1862_v61 = vpop.xlane.xlu0 %1861 }
 0xd48   :  { %2839 = vrcp.f32 %v1862_v61 }
 0xd49   :  { %v1910_v38 = vpack.c.bf16 %v1898_v27, %v1897_v43 }
 0xd4b   :  { %1962 = vmatmul.bf16.gmra.mxu0 %v1910_v38 }
 0xd4e   :  { %v2840_v48 = vpop.eup %2839 }
 0xd4f   :  { %v1900_v49 = vmul.f32 %v2840_v48, %v3806_v36 }
 0xd6d   :  { %v1860_v30 = vpop.xlane.xlu2 %1859 }
 0xd6e   :  { %2841 = vrcp.f32 %v1860_v30 }
 0xd6f   :  { %v1948_v22 = vpop.f32.mrf.mxu0 }
 0xd70   :  { %1988 = vst.msk [vmem:[#allocation5] sm:$0xff] %vm304_vm15, %v1948_v22 }
 0xd74   :  { %v2842_v12 = vpop.eup %2841 }
 0xd75   :  { %v1899_v52 = vmul.f32 %v2842_v12, %v3812_v51 }
 0xd77   :  { %v1950_v20 = vpop.f32.mrf.mxu0  ;;  %v1911_v24 = vpack.c.bf16 %v1900_v49, %v1899_v52  ;;  %v2686_v52 = vld [vmem:[%s4013_s2 + $0xb] ss:$0 sm:$0xff] }
 0xd78   :  { %1989 = vst.msk [vmem:[#allocation5 + $0x8] sm:$0xff] %vm304_vm15, %v1950_v20 }
 0xd79   :  { %1967 = vmatmul.bf16.gmra.mxu0 %v1911_v24 }
 0xd7e   :  { %v1864_v18 = vpop.xlane.xlu1 %1863 }
 0xd7f   :  { %v1866_v56 = vpop.xlane.xlu2 %1865  ;;  %2843 = vrcp.f32 %v1864_v18 }
 0xd80   :  { %2845 = vrcp.f32 %v1866_v56  ;;  %v1953_v26 = vpop.f32.mrf.mxu0 }
 0xd81   :  { %1990 = vst.msk [vmem:[#allocation5 + $0x10] sm:$0xff] %vm304_vm15, %v1953_v26 }
 0xd85   :  { %v2844_v41 = vpop.eup %2843 }
 0xd86   :  { %v2846_v62 = vpop.eup %2845  ;;  %v1901_v14 = vmul.f32 %v2844_v41, %v3821_v37  ;;  %v1870_v42 = vpop.xlane.xlu1 %1869 }
 0xd87   :  { %v1902_v51 = vmul.f32 %v2846_v62, %v3823_v8  ;;  %v1868_v36 = vpop.xlane.xlu0 %1867  ;;  %2847 = vrcp.f32 %v1870_v42 }
 0xd88   :  { %v1955_v50 = vpop.f32.mrf.mxu0  ;;  %2849 = vrcp.f32 %v1868_v36 }
 0xd89   :  { %v1912_v2 = vpack.c.bf16 %v1902_v51, %v1901_v14  ;;  %1991 = vst.msk [vmem:[#allocation5 + $0x18] sm:$0xff] %vm304_vm15, %v1955_v50 }
 0xd8b   :  { %1972 = vmatmul.bf16.gmra.mxu0 %v1912_v2 }
 0xd8d   :  { %v2848_v39 = vpop.eup %2847  ;;  %v1872_v17 = vpop.xlane.xlu2 %1871 }
 0xd8e   :  { %v2850_v16 = vpop.eup %2849  ;;  %v1904_v11 = vmul.f32 %v2848_v39, %v3828_v6  ;;  %2851 = vrcp.f32 %v1872_v17 }
 0xd8f   :  { %v1903_v7 = vmul.f32 %v2850_v16, %v3830_v59  ;;  %v2644_v59 = vld [vmem:[%s4012_s1 + $0x88] sm:$0xff] }
 0xd90   :  { %2088 = vmatpush.bf16.msrb.mxu3 %v2644_v59 }
 0xd91   :  { %v1913_v9 = vpack.c.bf16 %v1904_v11, %v1903_v7 }
 0xd94   :  { %v2852_v31 = vpop.eup %2851  ;;  %2089 = vmatpush.bf16.msrb.mxu3 %v2643_v3 }
 0xd95   :  { %v1905_v19 = vmul.f32 %v2852_v31, %v3834_v29 }
 0xd9b   :  { %1977 = vmatmul.bf16.gmra.mxu0 %v1913_v9 }
 0xda5   :  { %v1958_v5 = vpop.f32.mrf.mxu0 }
 0xda6   :  { %1996 = vrot.lane.b32.xlu1 %v1958_v5, %s2884_s29 }
 0xdad   :  { %v1960_v54 = vpop.f32.mrf.mxu0 }
 0xdae   :  { %1998 = vrot.lane.b32.xlu2 %v1960_v54, %s2884_s29 }
 0xdb8   :  { %v1874_v44 = vpop.xlane.xlu0 %1873 }
 0xdb9   :  { %2853 = vrcp.f32 %v1874_v44  ;;  %v2646_v44 = vld [vmem:[%s4012_s1 + $0x98] sm:$0xff] }
 0xdba   :  { %2237 = vmatpush.bf16.msrb.mxu2 %v2646_v44 }
 0xdbf   :  { %v2854_v15 = vpop.eup %2853 }
 0xdc0   :  { %v1906_v37 = vmul.f32 %v2854_v15, %v2836_v60 }
 0xdc2   :  { %v1914_v55 = vpack.c.bf16 %v1906_v37, %v1905_v19 }
 0xdc4   :  { %1982 = vmatmul.bf16.gmra.mxu0 %v1914_v55 }
 0xdc8   :  { %v1963_v8 = vpop.f32.mrf.mxu0 }
 0xdd0   :  { %v1965_v4 = vpop.f32.mrf.mxu0 }
 0xdf6   :  { %v1968_v46 = vpop.f32.mrf.mxu0 }
 0xdf7   :  { %2016 = vrot.lane.b32.xlu0 %v1968_v46, %s2885_s30 }
 0xdfe   :  { %v1970_v1 = vpop.f32.mrf.mxu0 }
 0xdff   :  { %2018 = vrot.lane.b32.xlu0 %v1970_v1, %s2885_s30 }
 0xe07   :  { %2000 = vrot.lane.b32.xlu0 %v1963_v8, %s2884_s29 }
 0xe08   :  { %v1973_v6 = vpop.f32.mrf.mxu0  ;;  %v1999_v45 = vpop.permute.xlu2 %1998 }
 0xe09   :  { %2009 = vst.msk [vmem:[#allocation5 + $0x8] sm:$0xff] %vm911_vm5, %v1999_v45  ;;  %v2645_v45 = vld [vmem:[%s4012_s1 + $0x90] sm:$0xff] }
 0xe0a   :  { %2238 = vmatpush.bf16.msrb.mxu2 %v2645_v45  ;;  %v2647_v45 = vld [vmem:[%s4012_s1 + $0xa0] sm:$0xff] }
 0xe10   :  { %v1975_v29 = vpop.f32.mrf.mxu0 }
 0xe11   :  { %2022 = vrot.lane.b32.xlu0 %v1975_v29, %s2885_s30 }
 0xe18   :  { %v1978_v21 = vpop.f32.mrf.mxu0  ;;  %v1997_v34 = vpop.permute.xlu1 %1996 }
 0xe19   :  { %2036 = vrot.lane.b32.xlu2 %v1978_v21, %s2886_s4  ;;  %2008 = vst.msk [vmem:[#allocation5] sm:$0xff] %vm911_vm5, %v1997_v34 }
 0xe20   :  { %v1980_v25 = vpop.f32.mrf.mxu0 }
 0xe21   :  { %2002 = vrot.lane.b32.xlu2 %v1965_v4, %s2884_s29  ;;  %2038 = vrot.lane.b32.xlu1 %v1980_v25, %s2886_s4 }
 0xe29   :  { %2020 = vrot.lane.b32.xlu1 %v1973_v6, %s2885_s30 }
 0xe41   :  { %v1983_v57 = vpop.f32.mrf.mxu0 }
 0xe42   :  { %2040 = vrot.lane.b32.xlu2 %v1983_v57, %s2886_s4 }
 0xe49   :  { %v1985_v13 = vpop.f32.mrf.mxu0 }
 0xe4a   :  { %2042 = vrot.lane.b32.xlu1 %v1985_v13, %s2886_s4 }
 0xe69   :  { %v2017_v35 = vpop.permute.xlu0 %2016 }
 0xe6a   :  { %2028 = vst.msk [vmem:[#allocation5] sm:$0xff] %vm932_vm6, %v2017_v35 }
 0xe71   :  { %v2019_v23 = vpop.permute.xlu0 %2018 }
 0xe72   :  { %2029 = vst.msk [vmem:[#allocation5 + $0x8] sm:$0xff] %vm932_vm6, %v2019_v23 }
 0xe73   :  { %v2037_v47 = vpop.permute.xlu2 %2036 }
 0xe74   :  { %2048 = vst.msk [vmem:[#allocation5] sm:$0xff] %vm953_vm7, %v2037_v47 }
 0xe79   :  { %v2001_v0 = vpop.permute.xlu0 %2000 }
 0xe7a   :  { %2010 = vst.msk [vmem:[#allocation5 + $0x10] sm:$0xff] %vm911_vm5, %v2001_v0 }
 0xe7b   :  { %v2003_v63 = vpop.permute.xlu2 %2002  ;;  %v2052_v43 = vld [vmem:[#allocation5] sm:$0xff] }
 0xe7c   :  { %2011 = vst.msk [vmem:[#allocation5 + $0x18] sm:$0xff] %vm911_vm5, %v2003_v63 }
 0xe83   :  { %v2023_v40 = vpop.permute.xlu0 %2022 }
 0xe84   :  { %2031 = vst.msk [vmem:[#allocation5 + $0x18] sm:$0xff] %vm932_vm6, %v2023_v40 }
 0xe93   :  { %v2039_v60 = vpop.permute.xlu1 %2038 }
 0xe94   :  { %2049 = vst.msk [vmem:[#allocation5 + $0x8] sm:$0xff] %vm953_vm7, %v2039_v60 }
 0xe9b   :  { %v2021_v28 = vpop.permute.xlu1 %2020  ;;  %v2053_v27 = vld [vmem:[#allocation5 + $0x8] sm:$0xff] }
 0xe9c   :  { %2030 = vst.msk [vmem:[#allocation5 + $0x10] sm:$0xff] %vm932_vm6, %v2021_v28  ;;  %v2056_v38 = vpack.c.bf16 %v2053_v27, %v2052_v43  ;;  %v2041_v61 = vpop.permute.xlu2 %2040 }
 0xe9d   :  { %2050 = vst.msk [vmem:[#allocation5 + $0x10] sm:$0xff] %vm953_vm7, %v2041_v61  ;;  %v2687_v61 = vld [vmem:[%s4013_s2 + $0xc] ss:$0 sm:$0xff] }
 0xe9e   :  { %2569 = vmatmul.msk.bf16.vlgmr.msrb.gmra.mxu3 %vm153_vm1, %v2056_v38 }
 0xea4   :  { %v2054_v22 = vld [vmem:[#allocation5 + $0x10] sm:$0xff] }
 0xebc   :  { %v2043_v30 = vpop.permute.xlu1 %2042 }
 0xebd   :  { %2051 = vst.msk [vmem:[#allocation5 + $0x18] sm:$0xff] %vm953_vm7, %v2043_v30 }
 0xec4   :  { %v2055_v48 = vld [vmem:[#allocation5 + $0x18] sm:$0xff] }
 0xec5   :  { %v2057_v12 = vpack.c.bf16 %v2055_v48, %v2054_v22 }
 0xec7   :  { %2570 = vmatmul.msk.bf16.gmra.mxu3 %vm153_vm1, %v2057_v12 }
 0xf21   :  { %v2091_v49 = vpop.f32.mrf.mxu3 }
 0xf22   :  { %v2092_v20 = vadd.f32 %v2686_v52, %v2091_v49 }
 0xf24   :  { %v3889_v24 = vadd.f32 %v2092_v20, %v3503_v10 }
 0xf26   :  { %v2107_v18 = vsel %vm153_vm1, %v3889_v24, 0.0 }
 0xf27   :  { %2108 = vadd.xlane.f32.xlu0 %v2107_v18 }
 0xf29   :  { %v2093_v56 = vpop.f32.mrf.mxu3 }
 0xf2a   :  { %v2094_v26 = vadd.f32 %v2686_v52, %v2093_v56 }
 0xf2c   :  { %v3894_v41 = vadd.f32 %v2094_v26, %v3508_v33 }
 0xf2e   :  { %v2110_v62 = vsel %vm153_vm1, %v3894_v41, 0.0 }
 0xf2f   :  { %2111 = vadd.xlane.f32.xlu2 %v2110_v62 }
 0xf4a   :  { %v2096_v14 = vpop.f32.mrf.mxu3 }
 0xf4b   :  { %v2097_v51 = vadd.f32 %v2686_v52, %v2096_v14 }
 0xf4d   :  { %v3899_v42 = vadd.f32 %v2097_v51, %v3513_v58 }
 0xf4f   :  { %v2113_v10 = vsel %vm153_vm1, %v3899_v42, 0.0 }
 0xf50   :  { %2114 = vadd.xlane.f32.xlu1 %v2113_v10 }
 0xf52   :  { %v2098_v36 = vpop.f32.mrf.mxu3 }
 0xf53   :  { %v2099_v50 = vadd.f32 %v2686_v52, %v2098_v36  ;;  %v2688_v52 = vld [vmem:[%s4013_s2 + $0xd] ss:$0 sm:$0xff] }
 0xf55   :  { %v3904_v2 = vadd.f32 %v2099_v50, %v3518_v53 }
 0xf57   :  { %v2116_v33 = vsel %vm153_vm1, %v3904_v2, 0.0 }
 0xf58   :  { %2117 = vadd.xlane.f32.xlu0 %v2116_v33 }
 0xf9a   :  { %v2109_v39 = vpop.xlane.xlu0 %2108 }
 0xf9b   :  { %v2119_v16 = vmul.f32 %v2109_v39, %v2961_v32 }
 0xf9d   :  { %v2123_v7 = vsub.f32 %v3889_v24, %v2119_v16 }
 0xf9f   :  { %v2127_v58 = vmul.f32 %v2123_v7, %v2123_v7 }
 0xfa1   :  { %v2131_v11 = vsel %vm153_vm1, %v2127_v58, 0.0 }
 0xfa2   :  { %v2112_v9 = vpop.xlane.xlu2 %2111  ;;  %2132 = vadd.xlane.f32.xlu2 %v2131_v11 }
 0xfa3   :  { %v2120_v5 = vmul.f32 %v2112_v9, %v2961_v32 }
 0xfa5   :  { %v2124_v54 = vsub.f32 %v3894_v41, %v2120_v5 }
 0xfa7   :  { %v2128_v53 = vmul.f32 %v2124_v54, %v2124_v54 }
 0xfa9   :  { %v2134_v17 = vsel %vm153_vm1, %v2128_v53, 0.0 }
 0xfaa   :  { %2135 = vadd.xlane.f32.xlu1 %v2134_v17 }
 0xfc3   :  { %v2115_v31 = vpop.xlane.xlu1 %2114 }
 0xfc4   :  { %v2121_v15 = vmul.f32 %v2115_v31, %v2961_v32 }
 0xfc6   :  { %v3919_v19 = vsub.f32 %v3899_v42, %v2121_v15 }
 0xfc8   :  { %v2129_v37 = vmul.f32 %v3919_v19, %v3919_v19 }
 0xfca   :  { %v2137_v55 = vsel %vm153_vm1, %v2129_v37, 0.0 }
 0xfcb   :  { %v2118_v8 = vpop.xlane.xlu0 %2117  ;;  %2138 = vadd.xlane.f32.xlu0 %v2137_v55 }
 0xfcc   :  { %v2122_v4 = vmul.f32 %v2118_v8, %v2961_v32 }
 0xfce   :  { %v3926_v46 = vsub.f32 %v3904_v2, %v2122_v4 }
 0xfd0   :  { %v2130_v1 = vmul.f32 %v3926_v46, %v3926_v46 }
 0xfd2   :  { %v2140_v6 = vsel %vm153_vm1, %v2130_v1, 0.0 }
 0xfd3   :  { %2141 = vadd.xlane.f32.xlu2 %v2140_v6  ;;  %v2650_v6 = vld [vmem:[%s4012_s1 + $0xb8] sm:$0xff] }
 0xfd4   :  { %2332 = vmatpush.bf16.msra.mxu3 %v2650_v6 }
0x1015   :  { %v2133_v59 = vpop.xlane.xlu2 %2132 }
0x1016   :  { %v2143_v29 = vmul.f32 %v2133_v59, %v2961_v32  ;;  %v2689_v59 = vld [vmem:[%s4013_s2 + $0xe] ss:$0 sm:$0xff] }
0x1018   :  { %v2147_v21 = vadd.f32 1e-05, %v2143_v29 }
0x101a   :  { %2855 = vrsqrt.f32 %v2147_v21  ;;  %vm2157_vm5 = vweird.f32 %v2147_v21 }
0x101d   :  { %v2136_v34 = vpop.xlane.xlu1 %2135 }
0x101e   :  { %v2144_v25 = vmul.f32 %v2136_v34, %v2961_v32 }
0x1020   :  { %v2856_v57 = vpop.eup %2855  ;;  %v2148_v13 = vadd.f32 1e-05, %v2144_v25 }
0x1021   :  { %v2152_v3 = vmul.f32 %v2856_v57, %v2147_v21  ;;  %vm2158_vm15 = vweird.f32 %v2856_v57 }
0x1022   :  { %2857 = vrsqrt.f32 %v2148_v13  ;;  %vm2159_vm6 = vmor %vm2157_vm5, %vm2158_vm15  ;;  %vm2167_vm12 = vweird.f32 %v2148_v13 }
0x1023   :  { %v2153_v35 = vmul.f32 %v2856_v57, %v2152_v3 }
0x1025   :  { %v2154_v23 = vmul.f32 0.5, %v2153_v35 }
0x1027   :  { %v2155_v47 = vsub.f32 1.5, %v2154_v23 }
0x1028   :  { %v2858_v0 = vpop.eup %2857 }
0x1029   :  { %v2156_v63 = vmul.f32 %v2856_v57, %v2155_v47  ;;  %v2162_v40 = vmul.f32 %v2858_v0, %v2148_v13  ;;  %vm2168_vm7 = vweird.f32 %v2858_v0 }
0x102a   :  { %vm2169_vm13 = vmor %vm2167_vm12, %vm2168_vm7 }
0x102b   :  { %v2163_v60 = vmul.f32 %v2858_v0, %v2162_v40  ;;  %v2160_v28 = vsel %vm2159_vm6, %v2856_v57, %v2156_v63 }
0x102c   :  { %v2191_v38 = vmul.f32 %v2160_v28, %v2123_v7 }
0x102d   :  { %v2164_v43 = vmul.f32 0.5, %v2163_v60 }
0x102e   :  { %v2196_v12 = vmul.f32 %v2687_v61, %v2191_v38 }
0x102f   :  { %v2165_v27 = vsub.f32 1.5, %v2164_v43 }
0x1030   :  { %v2201_v20 = vadd.f32 %v2688_v52, %v2196_v12 }
0x1031   :  { %v2166_v30 = vmul.f32 %v2858_v0, %v2165_v27 }
0x1033   :  { %v2170_v22 = vsel %vm2169_vm13, %v2858_v0, %v2166_v30 }
0x1034   :  { %v2192_v48 = vmul.f32 %v2170_v22, %v2124_v54 }
0x1036   :  { %v2197_v49 = vmul.f32 %v2687_v61, %v2192_v48 }
0x1038   :  { %v2202_v18 = vadd.f32 %v2688_v52, %v2197_v49 }
0x103a   :  { %v2205_v56 = vpack.c.bf16 %v2202_v18, %v2201_v20 }
0x103c   :  { %2579 = vmatmul.msk.bf16.vlgmr.msrb.gmra.mxu2 %vm153_vm1, %v2205_v56 }
0x103e   :  { %v2139_v26 = vpop.xlane.xlu0 %2138 }
0x103f   :  { %v2145_v62 = vmul.f32 %v2139_v26, %v2961_v32 }
0x1041   :  { %v2149_v14 = vadd.f32 1e-05, %v2145_v62 }
0x1043   :  { %2859 = vrsqrt.f32 %v2149_v14  ;;  %vm2177_vm2 = vweird.f32 %v2149_v14 }
0x1046   :  { %v2142_v51 = vpop.xlane.xlu2 %2141 }
0x1047   :  { %v2146_v10 = vmul.f32 %v2142_v51, %v2961_v32 }
0x1049   :  { %v2860_v36 = vpop.eup %2859  ;;  %v2150_v50 = vadd.f32 1e-05, %v2146_v10 }
0x104a   :  { %v2172_v33 = vmul.f32 %v2860_v36, %v2149_v14  ;;  %vm2178_vm14 = vweird.f32 %v2860_v36 }
0x104b   :  { %2861 = vrsqrt.f32 %v2150_v50  ;;  %vm2179_vm3 = vmor %vm2177_vm2, %vm2178_vm14  ;;  %vm2187_vm8 = vweird.f32 %v2150_v50 }
0x104c   :  { %v2173_v39 = vmul.f32 %v2860_v36, %v2172_v33 }
0x104e   :  { %v2174_v16 = vmul.f32 0.5, %v2173_v39 }
0x1050   :  { %v2175_v7 = vsub.f32 1.5, %v2174_v16 }
0x1051   :  { %v2862_v58 = vpop.eup %2861 }
0x1052   :  { %v2176_v11 = vmul.f32 %v2860_v36, %v2175_v7  ;;  %v2182_v9 = vmul.f32 %v2862_v58, %v2150_v50  ;;  %vm2188_vm4 = vweird.f32 %v2862_v58 }
0x1053   :  { %vm2189_vm9 = vmor %vm2187_vm8, %vm2188_vm4 }
0x1054   :  { %v2183_v5 = vmul.f32 %v2862_v58, %v2182_v9  ;;  %v2180_v54 = vsel %vm2179_vm3, %v2860_v36, %v2176_v11 }
0x1055   :  { %v2193_v32 = vmul.f32 %v2180_v54, %v3919_v19  ;;  %v2649_v19 = vld [vmem:[%s4012_s1 + $0xb0] sm:$0xff] }
0x1056   :  { %v2184_v53 = vmul.f32 0.5, %v2183_v5  ;;  %2333 = vmatpush.bf16.msra.mxu3 %v2649_v19 }
0x1057   :  { %v2198_v37 = vmul.f32 %v2687_v61, %v2193_v32  ;;  %v2652_v32 = vld [vmem:[%s4012_s1 + $0xc8] sm:$0xff] }
0x1058   :  { %v2185_v17 = vsub.f32 1.5, %v2184_v53  ;;  %2383 = vmatpush.bf16.msra.mxu2 %v2652_v32 }
0x1059   :  { %v2203_v8 = vadd.f32 %v2688_v52, %v2198_v37 }
0x105a   :  { %v2186_v44 = vmul.f32 %v2862_v58, %v2185_v17 }
0x105c   :  { %v2190_v31 = vsel %vm2189_vm9, %v2862_v58, %v2186_v44  ;;  %v2651_v44 = vld [vmem:[%s4012_s1 + $0xc0] sm:$0xff] }
0x105d   :  { %v2194_v15 = vmul.f32 %v2190_v31, %v3926_v46  ;;  %v2648_v46 = vld [vmem:[%s4012_s1 + $0xa8] sm:$0xff]  ;;  %2384 = vmatpush.bf16.msra.mxu2 %v2651_v44 }
0x105e   :  { %2334 = vmatpush.bf16.msra.mxu3 %v2648_v46 }
0x105f   :  { %v2199_v55 = vmul.f32 %v2687_v61, %v2194_v15  ;;  %v2690_v15 = vld [vmem:[%s4013_s2 + $0xf] ss:$0 sm:$0xff] }
0x1061   :  { %v2204_v4 = vadd.f32 %v2688_v52, %v2199_v55 }
0x1062   :  { %2335 = vmatpush.bf16.msra.mxu3 %v2647_v45 }
0x1063   :  { %v2206_v1 = vpack.c.bf16 %v2204_v4, %v2203_v8 }
0x1065   :  { %2580 = vmatmul.msk.bf16.gmra.mxu2 %vm153_vm1, %v2206_v1 }
0x10bf   :  { %v2240_v29 = vpop.f32.mrf.mxu2 }
0x10c0   :  { %v2241_v21 = vadd.f32 %v2689_v59, %v2240_v29 }
0x10c2   :  { %v2254_v34 = vmul.f32 0.044715, %v2241_v21  ;;  %v2250_v38 = vmul.f32 0.5, %v2241_v21 }
0x10c4   :  { %v2258_v25 = vmul.f32 %v2254_v34, %v2241_v21 }
0x10c6   :  { %v2262_v57 = vmul.f32 %v2258_v25, %v2241_v21  ;;  %v2654_v25 = vld [vmem:[%s4012_s1 + $0xd8] sm:$0xff] }
0x10c7   :  { %v2242_v13 = vpop.f32.mrf.mxu2 }
0x10c8   :  { %v2266_v3 = vadd.f32 %v2262_v57, %v2241_v21  ;;  %v2243_v35 = vadd.f32 %v2689_v59, %v2242_v13  ;;  %v2691_v57 = vld [vmem:[%s4013_s2 + $0x10] ss:$0 sm:$0xff] }
0x10ca   :  { %v2255_v23 = vmul.f32 0.044715, %v2243_v35  ;;  %v2270_v47 = vmul.f32 0.7978846, %v2266_v3  ;;  %v2251_v61 = vmul.f32 0.5, %v2243_v35 }
0x10cc   :  { %v2259_v0 = vmul.f32 %v2255_v23, %v2243_v35  ;;  %2863 = vtanh.f32 %v2270_v47 }
0x10ce   :  { %v2263_v63 = vmul.f32 %v2259_v0, %v2243_v35 }
0x10d0   :  { %v2267_v40 = vadd.f32 %v2263_v63, %v2243_v35 }
0x10d2   :  { %v2271_v60 = vmul.f32 0.7978846, %v2267_v40  ;;  %v2864_v28 = vpop.eup %2863 }
0x10d3   :  { %v2278_v43 = vadd.f32 1.0, %v2864_v28 }
0x10d4   :  { %2865 = vtanh.f32 %v2271_v60 }
0x10d5   :  { %v2282_v22 = vmul.f32 %v2278_v43, %v2250_v38 }
0x10da   :  { %v2866_v27 = vpop.eup %2865 }
0x10db   :  { %v2279_v30 = vadd.f32 1.0, %v2866_v27 }
0x10dd   :  { %v2283_v48 = vmul.f32 %v2279_v30, %v2251_v61  ;;  %v2692_v61 = vld [vmem:[%s4013_s2 + $0x11] ss:$0 sm:$0xff] }
0x10df   :  { %v2286_v12 = vpack.c.bf16 %v2283_v48, %v2282_v22 }
0x10e1   :  { %2597 = vmatmul.msk.bf16.vlgmr.msra.gmra.mxu3 %vm125_vm0, %v2286_v12 }
0x10e8   :  { %v2245_v52 = vpop.f32.mrf.mxu2 }
0x10e9   :  { %v2246_v49 = vadd.f32 %v2689_v59, %v2245_v52 }
0x10eb   :  { %v2256_v20 = vmul.f32 0.044715, %v2246_v49  ;;  %v2252_v11 = vmul.f32 0.5, %v2246_v49 }
0x10ed   :  { %v2260_v18 = vmul.f32 %v2256_v20, %v2246_v49 }
0x10ef   :  { %v2264_v56 = vmul.f32 %v2260_v18, %v2246_v49 }
0x10f0   :  { %v2247_v26 = vpop.f32.mrf.mxu2 }
0x10f1   :  { %v2248_v62 = vadd.f32 %v2689_v59, %v2247_v26  ;;  %v2268_v14 = vadd.f32 %v2264_v56, %v2246_v49 }
0x10f3   :  { %v2257_v51 = vmul.f32 0.044715, %v2248_v62  ;;  %v2272_v36 = vmul.f32 0.7978846, %v2268_v14  ;;  %v2253_v9 = vmul.f32 0.5, %v2248_v62 }
0x10f5   :  { %v2261_v10 = vmul.f32 %v2257_v51, %v2248_v62  ;;  %2867 = vtanh.f32 %v2272_v36 }
0x10f7   :  { %v2265_v50 = vmul.f32 %v2261_v10, %v2248_v62 }
0x10f9   :  { %v2269_v33 = vadd.f32 %v2265_v50, %v2248_v62 }
0x10fb   :  { %v2273_v39 = vmul.f32 0.7978846, %v2269_v33  ;;  %v2868_v16 = vpop.eup %2867 }
0x10fc   :  { %v2280_v7 = vadd.f32 1.0, %v2868_v16 }
0x10fd   :  { %2869 = vtanh.f32 %v2273_v39 }
0x10fe   :  { %v2284_v54 = vmul.f32 %v2280_v7, %v2252_v11 }
0x1103   :  { %v2870_v58 = vpop.eup %2869 }
0x1104   :  { %v2281_v5 = vadd.f32 1.0, %v2870_v58 }
0x1106   :  { %v2285_v53 = vmul.f32 %v2281_v5, %v2253_v9 }
0x1108   :  { %v2287_v17 = vpack.c.bf16 %v2285_v53, %v2284_v54 }
0x110a   :  { %2598 = vmatmul.msk.bf16.gmra.mxu3 %vm125_vm0, %v2287_v17 }
0x1164   :  { %v2337_v31 = vpop.f32.mrf.mxu3 }
0x1165   :  { %v2338_v37 = vadd.f32 %v2690_v15, %v2337_v31 }
0x1167   :  { %v2347_v4 = vadd.f32 %v2338_v37, %v3889_v24  ;;  %v2656_v24 = vld [vmem:[%s4012_s1 + $0xe8] sm:$0xff] }
0x1168   :  { %2446 = vmatpush.bf16.msrb.mxu3 %v2656_v24 }
0x116c   :  { %v2339_v55 = vpop.f32.mrf.mxu3 }
0x116d   :  { %v2340_v8 = vadd.f32 %v2690_v15, %v2339_v55 }
0x116f   :  { %v2348_v1 = vadd.f32 %v2340_v8, %v3894_v41  ;;  %v2655_v41 = vld [vmem:[%s4012_s1 + $0xe0] sm:$0xff] }
0x1170   :  { %2447 = vmatpush.bf16.msrb.mxu3 %v2655_v41 }
0x1171   :  { %v2351_v6 = vpack.c.bf16 %v2348_v1, %v2347_v4 }
0x1173   :  { %2607 = vmatmul.msk.bf16.vlgmr.msra.gmra.mxu2 %vm153_vm1, %v2351_v6 }
0x1174   :  { %2448 = vmatpush.bf16.msrb.mxu3 %v2654_v25 }
0x118d   :  { %v2342_v19 = vpop.f32.mrf.mxu3 }
0x118e   :  { %v2343_v46 = vadd.f32 %v2690_v15, %v2342_v19 }
0x1190   :  { %v2349_v29 = vadd.f32 %v2343_v46, %v3899_v42  ;;  %v2653_v42 = vld [vmem:[%s4012_s1 + $0xd0] sm:$0xff] }
0x1191   :  { %2449 = vmatpush.bf16.msrb.mxu3 %v2653_v42 }
0x1195   :  { %v2344_v45 = vpop.f32.mrf.mxu3 }
0x1196   :  { %v2345_v59 = vadd.f32 %v2690_v15, %v2344_v45 }
0x1198   :  { %v2350_v21 = vadd.f32 %v2345_v59, %v3904_v2 }
0x119a   :  { %v2352_v34 = vpack.c.bf16 %v2350_v21, %v2349_v29 }
0x119c   :  { %2608 = vmatmul.msk.bf16.gmra.mxu2 %vm153_vm1, %v2352_v34 }
0x11f6   :  { %v2386_v2 = vpop.f32.mrf.mxu2 }
0x11f7   :  { %v2387_v13 = vadd.f32 %v2691_v57, %v2386_v2 }
0x11f9   :  { %v2396_v23 = vmax.f32 %v2387_v13, 0.0 }
0x11fe   :  { %v2388_v3 = vpop.f32.mrf.mxu2 }
0x11ff   :  { %v2389_v35 = vadd.f32 %v2691_v57, %v2388_v3 }
0x1201   :  { %v2397_v47 = vmax.f32 %v2389_v35, 0.0 }
0x1203   :  { %v2400_v0 = vpack.c.bf16 %v2397_v47, %v2396_v23 }
0x1205   :  { %2625 = vmatmul.msk.bf16.vlgmr.msrb.gmra.mxu3 %vm125_vm0, %v2400_v0 }
0x121f   :  { %v2391_v63 = vpop.f32.mrf.mxu2 }
0x1220   :  { %v2392_v40 = vadd.f32 %v2691_v57, %v2391_v63 }
0x1222   :  { %v2398_v43 = vmax.f32 %v2392_v40, 0.0 }
0x1227   :  { %v2393_v60 = vpop.f32.mrf.mxu2 }
0x1228   :  { %v2394_v28 = vadd.f32 %v2691_v57, %v2393_v60 }
0x122a   :  { %v2399_v27 = vmax.f32 %v2394_v28, 0.0 }
0x122c   :  { %v2401_v38 = vpack.c.bf16 %v2399_v27, %v2398_v43 }
0x122e   :  { %2626 = vmatmul.msk.bf16.gmra.mxu3 %vm125_vm0, %v2401_v38 }
0x1288   :  { %v2451_v30 = vpop.f32.mrf.mxu3 }
0x1289   :  { %v2452_v22 = vadd.f32 %v2692_v61, %v2451_v30 }
0x128b   :  { %2461 = vst [vmem:[%s4015_s3] sm:$0xff] %v2452_v22 }
0x1290   :  { %v2453_v48 = vpop.f32.mrf.mxu3 }
0x1291   :  { %v2454_v12 = vadd.f32 %v2692_v61, %v2453_v48 }
0x1293   :  { %2462 = vst [vmem:[%s4015_s3 + $0x8] sm:$0xff] %v2454_v12 }
0x12b1   :  { %v2456_v52 = vpop.f32.mrf.mxu3 }
0x12b2   :  { %v2457_v49 = vadd.f32 %v2692_v61, %v2456_v52 }
0x12b4   :  { %2463 = vst [vmem:[%s4015_s3 + $0x10] sm:$0xff] %v2457_v49 }
0x12b9   :  { %v2458_v20 = vpop.f32.mrf.mxu3 }
0x12ba   :  { %v2459_v18 = vadd.f32 %v2692_v61, %v2458_v20 }
0x12bc   :  { %2464 = vst [vmem:[%s4015_s3 + $0x18] sm:$0xff] %v2459_v18 }

</bundles_post_ra>
